<compile_context>
chip_gen: v6e
topology: v6e:2x2x1
jax: 0.10.0
libtpu: 0.0.40
codegen_flags: <defaults>
</compile_context>

<pallas_src>
import functools

import numpy as np
import jax
import jax.numpy as jnp
from jax.experimental import pallas as pl
from jax.experimental.pallas import tpu as pltpu


# --------------------------------------------------------------------------- #
# Pallas kernel: one block of B images per grid step.
# --------------------------------------------------------------------------- #
def attnpool_kernel(x_ref, pos_m_ref, pos_s_ref, sel_ref, selt_ref,
                    wq_ref, bq_ref, wk_ref, bk_ref, wv_ref, bv_ref,
                    wc_ref, bc_ref, out_ref, *, scale, compute_dtype):
    B, HW, C = x_ref.shape
    Hh = sel_ref.shape[1]
    cd = compute_dtype

    # ---- token prep fused in-kernel (mean token + positional embedding) ---- #
    xs = x_ref[...].astype(jnp.float32)                         # (B, HW, C)
    tm = jnp.mean(xs, axis=1) + pos_m_ref[...]                  # (B, C)  mean token
    ts = (xs + pos_s_ref[...][None, :, :]).reshape(B * HW, C)   # (B*HW, C) spatial

    tm_c = tm.astype(cd)
    ts_c = ts.astype(cd)

    # ---- projections (f32 accumulation on the MXU) ------------------------- #
    q = (jnp.dot(tm_c, wq_ref[...], preferred_element_type=jnp.float32)
         + bq_ref[...]) * scale                                             # (B, C)
    k_m = jnp.dot(tm_c, wk_ref[...], preferred_element_type=jnp.float32) + bk_ref[...]
    v_m = jnp.dot(tm_c, wv_ref[...], preferred_element_type=jnp.float32) + bv_ref[...]
    k_s = jnp.dot(ts_c, wk_ref[...], preferred_element_type=jnp.float32) + bk_ref[...]
    v_s = jnp.dot(ts_c, wv_ref[...], preferred_element_type=jnp.float32) + bv_ref[...]

    # ---- per-head scores via head-selector matmuls (no per-head loop) ------ #
    sel = sel_ref[...]                                          # (C, Hh) one-hot, f32
    selt = selt_ref[...]                                        # (Hh, C)
    qk_s = (q[:, None, :] * k_s.reshape(B, HW, C)).reshape(B * HW, C)
    s_s = jnp.dot(qk_s, sel, preferred_element_type=jnp.float32).reshape(B, HW, Hh)
    s_m = jnp.dot(q * k_m, sel, preferred_element_type=jnp.float32)         # (B, Hh)

    # ---- one softmax over the S = HW+1 tokens, per image & head ------------ #
    m = jnp.maximum(jnp.max(s_s, axis=1), s_m)                  # (B, Hh)
    e_s = jnp.exp(s_s - m[:, None, :])                          # (B, HW, Hh)
    e_m = jnp.exp(s_m - m)                                      # (B, Hh)
    inv = 1.0 / (jnp.sum(e_s, axis=1) + e_m)                    # (B, Hh)

    # ---- expand head probabilities back to channel lanes, combine with v --- #
    pw_s = jnp.dot((e_s * inv[:, None, :]).reshape(B * HW, Hh), selt,
                   preferred_element_type=jnp.float32).reshape(B, HW, C)
    pw_m = jnp.dot(e_m * inv, selt, preferred_element_type=jnp.float32)     # (B, C)
    attn = jnp.sum(pw_s * v_s.reshape(B, HW, C), axis=1) + pw_m * v_m       # (B, C)

    # ---- output projection -------------------------------------------------- #
    out = jnp.dot(attn.astype(cd), wc_ref[...],
                  preferred_element_type=jnp.float32) + bc_ref[...]         # (B, D)
    out_ref[...] = out.astype(out_ref.dtype)


# --------------------------------------------------------------------------- #
# Wrapper: layout plumbing + pallas_call with a batch-blocked grid.
# --------------------------------------------------------------------------- #
def attention_pool2d_forward(x_nchw, params, num_heads, *, block_b=8,
                             matmul_dtype=jnp.float32,
                             vmem_limit_bytes=48 * 1024 * 1024):
    N, C, H, W = x_nchw.shape
    HW = H * W
    S = HW + 1
    assert C % num_heads == 0
    head_dim = C // num_heads
    D = params["wc"].shape[0]
    cd = matmul_dtype

    # NCHW -> (N, HW, C) rows.  Mean / +pos / concat are fused in the kernel so
    # the (N, S, C) token tensor is never materialized in HBM.
    xs = jnp.transpose(x_nchw, (0, 2, 3, 1)).reshape(N, HW, C)

    # Pad batch up to a multiple of the per-step block.
    n_blocks = pl.cdiv(N, block_b)
    n_pad = n_blocks * block_b
    if n_pad != N:
        xs = jnp.pad(xs, ((0, n_pad - N), (0, 0), (0, 0)))
    xs = xs.astype(cd)

    # PyTorch Linear is x @ W.T + b; pre-transpose once outside the kernel.
    wq_t = params["wq"].T.astype(cd)
    wk_t = params["wk"].T.astype(cd)
    wv_t = params["wv"].T.astype(cd)
    wc_t = params["wc"].T.astype(cd)                          # (C, D)
    bq = params["bq"][None, :].astype(jnp.float32)
    bk = params["bk"][None, :].astype(jnp.float32)
    bv = params["bv"][None, :].astype(jnp.float32)
    bc = params["bc"][None, :].astype(jnp.float32)
    pos_m = params["pos"][0:1, :].astype(jnp.float32)         # (1, C)  mean-token pos
    pos_s = params["pos"][1:, :].astype(jnp.float32)          # (HW, C) spatial pos

    # One-hot head selector (C, H) + transpose: per-head score reduction and
    # probability expansion become two full-width matmuls.
    sel_np = (np.arange(C)[:, None] // head_dim
              == np.arange(num_heads)[None, :]).astype(np.float32)
    sel = jnp.asarray(sel_np)                                 # (C, Hh)
    sel_t = jnp.asarray(sel_np.T)                             # (Hh, C)

    kernel = functools.partial(attnpool_kernel,
                               scale=float(head_dim) ** -0.5,
                               compute_dtype=cd)

    itemsize = jnp.dtype(cd).itemsize
    flops = int(n_pad * (2 * C * C * (1 + 2 * S)      # q + k/v projections
                         + 4 * S * C                   # q*k and p*v elementwise
                         + 4 * S * C * num_heads       # selector matmuls
                         + 2 * C * D))                 # output projection
    bytes_accessed = int(itemsize * (n_pad * HW * C + 3 * C * C + C * D)
                         + 4 * (S * C + 3 * C + D + 2 * C * num_heads + n_pad * D))
    cost = pl.CostEstimate(flops=flops,
                           transcendentals=int(n_pad * num_heads * S),
                           bytes_accessed=bytes_accessed)

    out = pl.pallas_call(
        kernel,
        out_shape=jax.ShapeDtypeStruct((n_pad, D), jnp.float32),
        grid=(n_blocks,),
        in_specs=[
            pl.BlockSpec((block_b, HW, C), lambda b: (b, 0, 0)),   # streamed x block
            pl.BlockSpec((1, C), lambda b: (0, 0)),                # pos (mean token)
            pl.BlockSpec((HW, C), lambda b: (0, 0)),               # pos (spatial)
            pl.BlockSpec((C, num_heads), lambda b: (0, 0)),        # head selector
            pl.BlockSpec((num_heads, C), lambda b: (0, 0)),        # head selector^T
            pl.BlockSpec((C, C), lambda b: (0, 0)),                # wq (VMEM-resident)
            pl.BlockSpec((1, C), lambda b: (0, 0)),                # bq
            pl.BlockSpec((C, C), lambda b: (0, 0)),                # wk
            pl.BlockSpec((1, C), lambda b: (0, 0)),                # bk
            pl.BlockSpec((C, C), lambda b: (0, 0)),                # wv
            pl.BlockSpec((1, C), lambda b: (0, 0)),                # bv
            pl.BlockSpec((C, D), lambda b: (0, 0)),                # wc
            pl.BlockSpec((1, D), lambda b: (0, 0)),                # bc
        ],
        out_specs=pl.BlockSpec((block_b, D), lambda b: (b, 0)),
        compiler_params=pltpu.CompilerParams(
            dimension_semantics=("parallel",),
            vmem_limit_bytes=vmem_limit_bytes),
        cost_estimate=cost,
    )(xs, pos_m, pos_s, sel, sel_t, wq_t, bq, wk_t, bk, wv_t, bv, wc_t, bc)

    return out[:N]


# --------------------------------------------------------------------------- #
# Parameter init (mirrors the PyTorch module's parameters).
# --------------------------------------------------------------------------- #
def init_params(key, spacial_dim, embed_dim, output_dim):
    S = spacial_dim ** 2 + 1
    ks = jax.random.split(key, 5)

    def linear(k, out_f, in_f):
        k1, k2 = jax.random.split(k)
        bound = 1.0 / np.sqrt(in_f)
        w = jax.random.uniform(k1, (out_f, in_f), jnp.float32, -bound, bound)
        b = jax.random.uniform(k2, (out_f,), jnp.float32, -bound, bound)
        return w, b

    pos = jax.random.normal(ks[0], (S, embed_dim), jnp.float32) / np.sqrt(embed_dim)
    wq, bq = linear(ks[1], embed_dim, embed_dim)
    wk, bk = linear(ks[2], embed_dim, embed_dim)
    wv, bv = linear(ks[3], embed_dim, embed_dim)
    wc, bc = linear(ks[4], output_dim, embed_dim)
    return {"pos": pos, "wq": wq, "bq": bq, "wk": wk, "bk": bk,
            "wv": wv, "bv": bv, "wc": wc, "bc": bc}


# --------------------------------------------------------------------------- #
# Pure-JAX reference replicating F.multi_head_attention_forward semantics.
# --------------------------------------------------------------------------- #
def reference_forward(x_nchw, params, num_heads):
    N, C, H, W = x_nchw.shape
    HW = H * W
    S = HW + 1
    hd = C // num_heads
    prec = jax.lax.Precision.HIGHEST

    t = jnp.transpose(x_nchw, (0, 2, 3, 1)).reshape(N, HW, C)
    t = jnp.concatenate([jnp.mean(t, axis=1, keepdims=True), t], axis=1)  # (N, S, C)
    t = t + params["pos"][None]

    def lin(z, w, b):
        return jnp.einsum("nsc,dc->nsd", z, w, precision=prec) + b

    q = lin(t[:, :1], params["wq"], params["bq"]) * (hd ** -0.5)          # (N, 1, C)
    k = lin(t, params["wk"], params["bk"])                                # (N, S, C)
    v = lin(t, params["wv"], params["bv"])                                # (N, S, C)

    qh = q.reshape(N, 1, num_heads, hd).transpose(0, 2, 1, 3)             # (N, Hh, 1, hd)
    kh = k.reshape(N, S, num_heads, hd).transpose(0, 2, 1, 3)             # (N, Hh, S, hd)
    vh = v.reshape(N, S, num_heads, hd).transpose(0, 2, 1, 3)

    s = jnp.einsum("nhqd,nhkd->nhqk", qh, kh, precision=prec)             # (N, Hh, 1, S)
    p = jax.nn.softmax(s, axis=-1)
    o = jnp.einsum("nhqk,nhkd->nhqd", p, vh, precision=prec)              # (N, Hh, 1, hd)
    o = o.transpose(0, 2, 1, 3).reshape(N, 1, C)

    out = jnp.einsum("nsc,dc->nsd", o, params["wc"], precision=prec) + params["bc"]
    return out[:, 0, :]                                                   # (N, D)


if __name__ == "__main__":
    N = 16
    embed_dim = 128
    num_heads = 4
    spacial_dim = 8          # H = W = 8  ->  S = 65 tokens
    output_dim = 128
    block_b = 8              # 2 grid steps; B*HW = 512 rows per k/v matmul

    key = jax.random.PRNGKey(0)
    kx, kp = jax.random.split(key)
    x = jax.random.normal(kx, (N, embed_dim, spacial_dim, spacial_dim), jnp.float32)
    params = init_params(kp, spacial_dim, embed_dim, output_dim)

    ref = reference_forward(x, params, num_heads)

    # f32 matmul-operand path (tight tolerance).
    out = attention_pool2d_forward(x, params, num_heads, block_b=block_b)
    out = jax.block_until_ready(out)
    assert out.shape == ref.shape == (N, output_dim)
    err = float(jnp.max(jnp.abs(out - ref)))
    assert err < 1e-3, f"f32 path max abs error too large: {err}"

    # bf16 matmul-operand path (v6e/v7x recommendation); f32 accumulation,
    # softmax in f32; loosened tolerance per the review.
    out_bf16 = attention_pool2d_forward(x, params, num_heads, block_b=block_b,
                                        matmul_dtype=jnp.bfloat16)
    out_bf16 = jax.block_until_ready(out_bf16)
    err_bf16 = float(jnp.max(jnp.abs(out_bf16 - ref)))
    assert err_bf16 < 1e-1, f"bf16 path max abs error too large: {err_bf16}"

    print("KERNEL_OK")
</pallas_src>

<mosaic_0001>
module attributes {stable_mosaic.version = 11 : i64} {
  func.func @attnpool_kernel(%arg0: i32, %arg1: memref<8x64x128xf32, #tpu.memory_space<vmem>>, %arg2: memref<1x128xf32, #tpu.memory_space<vmem>>, %arg3: memref<64x128xf32, #tpu.memory_space<vmem>>, %arg4: memref<128x4xf32, #tpu.memory_space<vmem>>, %arg5: memref<4x128xf32, #tpu.memory_space<vmem>>, %arg6: memref<128x128xf32, #tpu.memory_space<vmem>>, %arg7: memref<1x128xf32, #tpu.memory_space<vmem>>, %arg8: memref<128x128xf32, #tpu.memory_space<vmem>>, %arg9: memref<1x128xf32, #tpu.memory_space<vmem>>, %arg10: memref<128x128xf32, #tpu.memory_space<vmem>>, %arg11: memref<1x128xf32, #tpu.memory_space<vmem>>, %arg12: memref<128x128xf32, #tpu.memory_space<vmem>>, %arg13: memref<1x128xf32, #tpu.memory_space<vmem>>, %arg14: memref<8x128xf32, #tpu.memory_space<vmem>>) attributes {dimension_semantics = [#tpu.dimension_semantics<parallel>], iteration_bounds = array<i64: 2>, scalar_prefetch = 0 : i64, scratch_operands = 0 : i64, tpu.core_type = #tpu.core_type<tc>, window_params = [{transform_indices = @transform_0, window_bounds = array<i64: 8, 64, 128>}, {pipeline_mode = #tpu.pipeline_mode<synchronous>, transform_indices = @transform_1, window_bounds = array<i64: 1, 128>}, {pipeline_mode = #tpu.pipeline_mode<synchronous>, transform_indices = @transform_2, window_bounds = array<i64: 64, 128>}, {pipeline_mode = #tpu.pipeline_mode<synchronous>, transform_indices = @transform_3, window_bounds = array<i64: 128, 4>}, {pipeline_mode = #tpu.pipeline_mode<synchronous>, transform_indices = @transform_4, window_bounds = array<i64: 4, 128>}, {pipeline_mode = #tpu.pipeline_mode<synchronous>, transform_indices = @transform_5, window_bounds = array<i64: 128, 128>}, {pipeline_mode = #tpu.pipeline_mode<synchronous>, transform_indices = @transform_6, window_bounds = array<i64: 1, 128>}, {pipeline_mode = #tpu.pipeline_mode<synchronous>, transform_indices = @transform_7, window_bounds = array<i64: 128, 128>}, {pipeline_mode = #tpu.pipeline_mode<synchronous>, transform_indices = @transform_8, window_bounds = array<i64: 1, 128>}, {pipeline_mode = #tpu.pipeline_mode<synchronous>, transform_indices = @transform_9, window_bounds = array<i64: 128, 128>}, {pipeline_mode = #tpu.pipeline_mode<synchronous>, transform_indices = @transform_10, window_bounds = array<i64: 1, 128>}, {pipeline_mode = #tpu.pipeline_mode<synchronous>, transform_indices = @transform_11, window_bounds = array<i64: 128, 128>}, {pipeline_mode = #tpu.pipeline_mode<synchronous>, transform_indices = @transform_12, window_bounds = array<i64: 1, 128>}, {transform_indices = @transform_13, window_bounds = array<i64: 8, 128>}]} {
    %c0 = arith.constant 0 : index
    %c0_0 = arith.constant 0 : index
    %c0_1 = arith.constant 0 : index
    %0 = vector.load %arg1[%c0, %c0_0, %c0_1] : memref<8x64x128xf32, #tpu.memory_space<vmem>>, vector<8x64x128xf32>
    %cst = arith.constant dense<0.000000e+00> : vector<8x128xf32>
    %1 = vector.multi_reduction <add>, %0, %cst [1] : vector<8x64x128xf32> to vector<8x128xf32>
    %cst_2 = arith.constant 6.400000e+01 : f32
    %2 = vector.broadcast %cst_2 : f32 to vector<8x128xf32>
    %3 = arith.divf %1, %2 : vector<8x128xf32>
    %c0_3 = arith.constant 0 : index
    %c0_4 = arith.constant 0 : index
    %4 = vector.load %arg2[%c0_3, %c0_4] : memref<1x128xf32, #tpu.memory_space<vmem>>, vector<1x128xf32>
    %5 = vector.broadcast %4 : vector<1x128xf32> to vector<8x128xf32>
    %6 = arith.addf %3, %5 : vector<8x128xf32>
    %c0_5 = arith.constant 0 : index
    %c0_6 = arith.constant 0 : index
    %7 = vector.load %arg3[%c0_5, %c0_6] : memref<64x128xf32, #tpu.memory_space<vmem>>, vector<64x128xf32>
    %8 = vector.shape_cast %7 : vector<64x128xf32> to vector<1x64x128xf32>
    %9 = vector.broadcast %8 : vector<1x64x128xf32> to vector<8x64x128xf32>
    %10 = arith.addf %0, %9 : vector<8x64x128xf32>
    %11 = vector.shape_cast %10 : vector<8x64x128xf32> to vector<512x128xf32>
    %c0_7 = arith.constant 0 : index
    %c0_8 = arith.constant 0 : index
    %12 = vector.load %arg6[%c0_7, %c0_8] : memref<128x128xf32, #tpu.memory_space<vmem>>, vector<128x128xf32>
    %cst_9 = arith.constant dense<0.000000e+00> : vector<8x128xf32>
    %13 = tpu.matmul %6, %12, %cst_9 {dimension_numbers = #tpu.dot_dimension_numbers<[1], [0], [0], [1], [0, 0, 1, 1], [], []>} : vector<8x128xf32>, vector<128x128xf32>, vector<8x128xf32> -> vector<8x128xf32>
    %c0_10 = arith.constant 0 : index
    %c0_11 = arith.constant 0 : index
    %14 = vector.load %arg7[%c0_10, %c0_11] : memref<1x128xf32, #tpu.memory_space<vmem>>, vector<1x128xf32>
    %15 = vector.broadcast %14 : vector<1x128xf32> to vector<8x128xf32>
    %16 = arith.addf %13, %15 : vector<8x128xf32>
    %cst_12 = arith.constant 0.176776692 : f32
    %17 = vector.broadcast %cst_12 : f32 to vector<8x128xf32>
    %18 = arith.mulf %16, %17 : vector<8x128xf32>
    %c0_13 = arith.constant 0 : index
    %c0_14 = arith.constant 0 : index
    %19 = vector.load %arg8[%c0_13, %c0_14] : memref<128x128xf32, #tpu.memory_space<vmem>>, vector<128x128xf32>
    %cst_15 = arith.constant dense<0.000000e+00> : vector<8x128xf32>
    %20 = tpu.matmul %6, %19, %cst_15 {dimension_numbers = #tpu.dot_dimension_numbers<[1], [0], [0], [1], [0, 0, 1, 1], [], []>} : vector<8x128xf32>, vector<128x128xf32>, vector<8x128xf32> -> vector<8x128xf32>
    %c0_16 = arith.constant 0 : index
    %c0_17 = arith.constant 0 : index
    %21 = vector.load %arg9[%c0_16, %c0_17] : memref<1x128xf32, #tpu.memory_space<vmem>>, vector<1x128xf32>
    %22 = vector.broadcast %21 : vector<1x128xf32> to vector<8x128xf32>
    %23 = arith.addf %20, %22 : vector<8x128xf32>
    %c0_18 = arith.constant 0 : index
    %c0_19 = arith.constant 0 : index
    %24 = vector.load %arg10[%c0_18, %c0_19] : memref<128x128xf32, #tpu.memory_space<vmem>>, vector<128x128xf32>
    %cst_20 = arith.constant dense<0.000000e+00> : vector<8x128xf32>
    %25 = tpu.matmul %6, %24, %cst_20 {dimension_numbers = #tpu.dot_dimension_numbers<[1], [0], [0], [1], [0, 0, 1, 1], [], []>} : vector<8x128xf32>, vector<128x128xf32>, vector<8x128xf32> -> vector<8x128xf32>
    %c0_21 = arith.constant 0 : index
    %c0_22 = arith.constant 0 : index
    %26 = vector.load %arg11[%c0_21, %c0_22] : memref<1x128xf32, #tpu.memory_space<vmem>>, vector<1x128xf32>
    %27 = vector.broadcast %26 : vector<1x128xf32> to vector<8x128xf32>
    %28 = arith.addf %25, %27 : vector<8x128xf32>
    %c0_23 = arith.constant 0 : index
    %c0_24 = arith.constant 0 : index
    %29 = vector.load %arg8[%c0_23, %c0_24] : memref<128x128xf32, #tpu.memory_space<vmem>>, vector<128x128xf32>
    %cst_25 = arith.constant dense<0.000000e+00> : vector<512x128xf32>
    %30 = tpu.matmul %11, %29, %cst_25 {dimension_numbers = #tpu.dot_dimension_numbers<[1], [0], [0], [1], [0, 0, 1, 1], [], []>} : vector<512x128xf32>, vector<128x128xf32>, vector<512x128xf32> -> vector<512x128xf32>
    %c0_26 = arith.constant 0 : index
    %c0_27 = arith.constant 0 : index
    %31 = vector.load %arg9[%c0_26, %c0_27] : memref<1x128xf32, #tpu.memory_space<vmem>>, vector<1x128xf32>
    %32 = vector.broadcast %31 : vector<1x128xf32> to vector<512x128xf32>
    %33 = arith.addf %30, %32 : vector<512x128xf32>
    %c0_28 = arith.constant 0 : index
    %c0_29 = arith.constant 0 : index
    %34 = vector.load %arg10[%c0_28, %c0_29] : memref<128x128xf32, #tpu.memory_space<vmem>>, vector<128x128xf32>
    %cst_30 = arith.constant dense<0.000000e+00> : vector<512x128xf32>
    %35 = tpu.matmul %11, %34, %cst_30 {dimension_numbers = #tpu.dot_dimension_numbers<[1], [0], [0], [1], [0, 0, 1, 1], [], []>} : vector<512x128xf32>, vector<128x128xf32>, vector<512x128xf32> -> vector<512x128xf32>
    %c0_31 = arith.constant 0 : index
    %c0_32 = arith.constant 0 : index
    %36 = vector.load %arg11[%c0_31, %c0_32] : memref<1x128xf32, #tpu.memory_space<vmem>>, vector<1x128xf32>
    %37 = vector.broadcast %36 : vector<1x128xf32> to vector<512x128xf32>
    %38 = arith.addf %35, %37 : vector<512x128xf32>
    %c0_33 = arith.constant 0 : index
    %c0_34 = arith.constant 0 : index
    %39 = vector.load %arg4[%c0_33, %c0_34] : memref<128x4xf32, #tpu.memory_space<vmem>>, vector<128x4xf32>
    %c0_35 = arith.constant 0 : index
    %c0_36 = arith.constant 0 : index
    %40 = vector.load %arg5[%c0_35, %c0_36] : memref<4x128xf32, #tpu.memory_space<vmem>>, vector<4x128xf32>
    %41 = vector.shape_cast %18 : vector<8x128xf32> to vector<8x1x128xf32>
    %42 = vector.shape_cast %33 : vector<512x128xf32> to vector<8x64x128xf32>
    %43 = vector.broadcast %41 : vector<8x1x128xf32> to vector<8x64x128xf32>
    %44 = arith.mulf %43, %42 : vector<8x64x128xf32>
    %45 = vector.shape_cast %44 : vector<8x64x128xf32> to vector<512x128xf32>
    %cst_37 = arith.constant dense<0.000000e+00> : vector<512x4xf32>
    %46 = tpu.matmul %45, %39, %cst_37 {dimension_numbers = #tpu.dot_dimension_numbers<[1], [0], [0], [1], [0, 0, 1, 1], [], []>} : vector<512x128xf32>, vector<128x4xf32>, vector<512x4xf32> -> vector<512x4xf32>
    %47 = vector.shape_cast %46 : vector<512x4xf32> to vector<8x64x4xf32>
    %48 = arith.mulf %18, %23 : vector<8x128xf32>
    %cst_38 = arith.constant dense<0.000000e+00> : vector<8x4xf32>
    %49 = tpu.matmul %48, %39, %cst_38 {dimension_numbers = #tpu.dot_dimension_numbers<[1], [0], [0], [1], [0, 0, 1, 1], [], []>} : vector<8x128xf32>, vector<128x4xf32>, vector<8x4xf32> -> vector<8x4xf32>
    %cst_39 = arith.constant dense<0xFF800000> : vector<8x4xf32>
    %50 = vector.multi_reduction <maximumf>, %47, %cst_39 [1] : vector<8x64x4xf32> to vector<8x4xf32>
    %51 = arith.maximumf %50, %49 : vector<8x4xf32>
    %52 = vector.shape_cast %51 : vector<8x4xf32> to vector<8x1x4xf32>
    %53 = vector.broadcast %52 : vector<8x1x4xf32> to vector<8x64x4xf32>
    %54 = arith.subf %47, %53 : vector<8x64x4xf32>
    %55 = math.exp %54 : vector<8x64x4xf32>
    %56 = arith.subf %49, %51 : vector<8x4xf32>
    %57 = math.exp %56 : vector<8x4xf32>
    %cst_40 = arith.constant dense<0.000000e+00> : vector<8x4xf32>
    %58 = vector.multi_reduction <add>, %55, %cst_40 [1] : vector<8x64x4xf32> to vector<8x4xf32>
    %59 = arith.addf %58, %57 : vector<8x4xf32>
    %cst_41 = arith.constant 1.000000e+00 : f32
    %60 = vector.broadcast %cst_41 : f32 to vector<8x4xf32>
    %61 = arith.divf %60, %59 : vector<8x4xf32>
    %62 = vector.shape_cast %61 : vector<8x4xf32> to vector<8x1x4xf32>
    %63 = vector.broadcast %62 : vector<8x1x4xf32> to vector<8x64x4xf32>
    %64 = arith.mulf %55, %63 : vector<8x64x4xf32>
    %65 = vector.shape_cast %64 : vector<8x64x4xf32> to vector<512x4xf32>
    %cst_42 = arith.constant dense<0.000000e+00> : vector<512x128xf32>
    %66 = tpu.matmul %65, %40, %cst_42 {dimension_numbers = #tpu.dot_dimension_numbers<[1], [0], [0], [1], [0, 0, 1, 1], [], []>} : vector<512x4xf32>, vector<4x128xf32>, vector<512x128xf32> -> vector<512x128xf32>
    %67 = vector.shape_cast %66 : vector<512x128xf32> to vector<8x64x128xf32>
    %68 = arith.mulf %57, %61 : vector<8x4xf32>
    %cst_43 = arith.constant dense<0.000000e+00> : vector<8x128xf32>
    %69 = tpu.matmul %68, %40, %cst_43 {dimension_numbers = #tpu.dot_dimension_numbers<[1], [0], [0], [1], [0, 0, 1, 1], [], []>} : vector<8x4xf32>, vector<4x128xf32>, vector<8x128xf32> -> vector<8x128xf32>
    %70 = vector.shape_cast %38 : vector<512x128xf32> to vector<8x64x128xf32>
    %71 = arith.mulf %67, %70 : vector<8x64x128xf32>
    %cst_44 = arith.constant dense<0.000000e+00> : vector<8x128xf32>
    %72 = vector.multi_reduction <add>, %71, %cst_44 [1] : vector<8x64x128xf32> to vector<8x128xf32>
    %73 = arith.mulf %69, %28 : vector<8x128xf32>
    %74 = arith.addf %72, %73 : vector<8x128xf32>
    %c0_45 = arith.constant 0 : index
    %c0_46 = arith.constant 0 : index
    %75 = vector.load %arg12[%c0_45, %c0_46] : memref<128x128xf32, #tpu.memory_space<vmem>>, vector<128x128xf32>
    %cst_47 = arith.constant dense<0.000000e+00> : vector<8x128xf32>
    %76 = tpu.matmul %74, %75, %cst_47 {dimension_numbers = #tpu.dot_dimension_numbers<[1], [0], [0], [1], [0, 0, 1, 1], [], []>} : vector<8x128xf32>, vector<128x128xf32>, vector<8x128xf32> -> vector<8x128xf32>
    %c0_48 = arith.constant 0 : index
    %c0_49 = arith.constant 0 : index
    %77 = vector.load %arg13[%c0_48, %c0_49] : memref<1x128xf32, #tpu.memory_space<vmem>>, vector<1x128xf32>
    %78 = vector.broadcast %77 : vector<1x128xf32> to vector<8x128xf32>
    %79 = arith.addf %76, %78 : vector<8x128xf32>
    %c0_50 = arith.constant 0 : index
    %c0_51 = arith.constant 0 : index
    %80 = vector.load %arg14[%c0_50, %c0_51] : memref<8x128xf32, #tpu.memory_space<vmem>>, vector<8x128xf32>
    tpu.vector_store %arg14[%c0_50, %c0_51], %79 {strides = array<i32>} : memref<8x128xf32, #tpu.memory_space<vmem>>, vector<8x128xf32>,
    return
  }
  func.func @transform_0(%arg0: i32) -> (i32, i32, i32) {
    %c0_i32 = arith.constant 0 : i32
    %c0_i32_0 = arith.constant 0 : i32
    %c0_i32_1 = arith.constant 0 : i32
    return %arg0, %c0_i32, %c0_i32_0 : i32, i32, i32
  }
  func.func @transform_1(%arg0: i32) -> (i32, i32) {
    %c0_i32 = arith.constant 0 : i32
    %c0_i32_0 = arith.constant 0 : i32
    %c0_i32_1 = arith.constant 0 : i32
    return %c0_i32, %c0_i32_0 : i32, i32
  }
  func.func @transform_2(%arg0: i32) -> (i32, i32) {
    %c0_i32 = arith.constant 0 : i32
    %c0_i32_0 = arith.constant 0 : i32
    %c0_i32_1 = arith.constant 0 : i32
    return %c0_i32, %c0_i32_0 : i32, i32
  }
  func.func @transform_3(%arg0: i32) -> (i32, i32) {
    %c0_i32 = arith.constant 0 : i32
    %c0_i32_0 = arith.constant 0 : i32
    %c0_i32_1 = arith.constant 0 : i32
    return %c0_i32, %c0_i32_0 : i32, i32
  }
  func.func @transform_4(%arg0: i32) -> (i32, i32) {
    %c0_i32 = arith.constant 0 : i32
    %c0_i32_0 = arith.constant 0 : i32
    %c0_i32_1 = arith.constant 0 : i32
    return %c0_i32, %c0_i32_0 : i32, i32
  }
  func.func @transform_5(%arg0: i32) -> (i32, i32) {
    %c0_i32 = arith.constant 0 : i32
    %c0_i32_0 = arith.constant 0 : i32
    %c0_i32_1 = arith.constant 0 : i32
    return %c0_i32, %c0_i32_0 : i32, i32
  }
  func.func @transform_6(%arg0: i32) -> (i32, i32) {
    %c0_i32 = arith.constant 0 : i32
    %c0_i32_0 = arith.constant 0 : i32
    %c0_i32_1 = arith.constant 0 : i32
    return %c0_i32, %c0_i32_0 : i32, i32
  }
  func.func @transform_7(%arg0: i32) -> (i32, i32) {
    %c0_i32 = arith.constant 0 : i32
    %c0_i32_0 = arith.constant 0 : i32
    %c0_i32_1 = arith.constant 0 : i32
    return %c0_i32, %c0_i32_0 : i32, i32
  }
  func.func @transform_8(%arg0: i32) -> (i32, i32) {
    %c0_i32 = arith.constant 0 : i32
    %c0_i32_0 = arith.constant 0 : i32
    %c0_i32_1 = arith.constant 0 : i32
    return %c0_i32, %c0_i32_0 : i32, i32
  }
  func.func @transform_9(%arg0: i32) -> (i32, i32) {
    %c0_i32 = arith.constant 0 : i32
    %c0_i32_0 = arith.constant 0 : i32
    %c0_i32_1 = arith.constant 0 : i32
    return %c0_i32, %c0_i32_0 : i32, i32
  }
  func.func @transform_10(%arg0: i32) -> (i32, i32) {
    %c0_i32 = arith.constant 0 : i32
    %c0_i32_0 = arith.constant 0 : i32
    %c0_i32_1 = arith.constant 0 : i32
    return %c0_i32, %c0_i32_0 : i32, i32
  }
  func.func @transform_11(%arg0: i32) -> (i32, i32) {
    %c0_i32 = arith.constant 0 : i32
    %c0_i32_0 = arith.constant 0 : i32
    %c0_i32_1 = arith.constant 0 : i32
    return %c0_i32, %c0_i32_0 : i32, i32
  }
  func.func @transform_12(%arg0: i32) -> (i32, i32) {
    %c0_i32 = arith.constant 0 : i32
    %c0_i32_0 = arith.constant 0 : i32
    %c0_i32_1 = arith.constant 0 : i32
    return %c0_i32, %c0_i32_0 : i32, i32
  }
  func.func @transform_13(%arg0: i32) -> (i32, i32) {
    %c0_i32 = arith.constant 0 : i32
    %c0_i32_0 = arith.constant 0 : i32
    return %arg0, %c0_i32 : i32, i32
  }
}

</mosaic_0001>

<bundles_post_ra>
// kernel: tpu_custom_call.1
= control target key start
LH: loop header
LB: loop body
LE: loop exit
PB: predicated region body
PF: predicated region fallthrough
CT: control target
= control target key end

     0   :  { %s8616_s0 = inlined_call_operand.hbm [shape: f32[16,64,128], index: 0, kind: input, shape index: {}]   ;;  %s8617_s1 = inlined_call_operand.vmem [shape: f32[1,128], index: 1, kind: input, shape index: {}]   ;;  %s8618_s2 = inlined_call_operand.hbm [shape: f32[64,128], index: 2, kind: input, shape index: {}]   ;;  %s8619_s3 = inlined_call_operand.vmem [shape: f32[128,4], index: 3, kind: input, shape index: {}]   ;;  %s8620_s4 = inlined_call_operand.vmem [shape: f32[4,128], index: 4, kind: input, shape index: {}]   ;;  %s8621_s5 = inlined_call_operand.vmem [shape: f32[128,128], index: 5, kind: input, shape index: {}]   ;;  %s8622_s6 = inlined_call_operand.vmem [shape: f32[1,128], index: 6, kind: input, shape index: {}]   ;;  %s8623_s7 = inlined_call_operand.hbm [shape: f32[128,128], index: 7, kind: input, shape index: {}]   ;;  %s8624_s8 = inlined_call_operand.vmem [shape: f32[1,128], index: 8, kind: input, shape index: {}]   ;;  %s8625_s9 = inlined_call_operand.hbm [shape: f32[128,128], index: 9, kind: input, shape index: {}]   ;;  %s8626_s10 = inlined_call_operand.vmem [shape: f32[1,128], index: 10, kind: input, shape index: {}]   ;;  %s8627_s11 = inlined_call_operand.hbm [shape: f32[128,128], index: 11, kind: input, shape index: {}]   ;;  %s8628_s12 = inlined_call_operand.vmem [shape: f32[1,128], index: 12, kind: input, shape index: {}]   ;;  %s8629_s13 = inlined_call_operand.hbm [shape: f32[16,128], index: 13, kind: output, shape index: {}]  }
   0x1   :  { %8743 = sst [smem:[#allocation119_spill]] %s8618_s2 }
   0x2   :  { %8744 = sst [smem:[#allocation120_spill]] %s8623_s7 }
   0x3   :  { %8745 = sst [smem:[#allocation121_spill]] %s8625_s9 }
   0x4   :  { %8746 = sst [smem:[#allocation122_spill]] %s8627_s11 }
   0x5   :  { %18 = vsyncpa [#allocation3], 0 }
   0x6   :  { %20 = vsyncpa [#allocation3 + $0x1], 0 }
   0x7   :  { %21 = vsyncpa [#allocation6], 0 }
   0x8   :  { %22 = vsyncpa [#allocation9], 0 }
   0x9   :  { %23 = vsyncpa [#allocation4], 0 }
   0xa   :  { %25 = vsyncpa [#allocation4 + $0x1], 0  ;;  %s6022_s25 = smov 0   ;;  %s6024_s26 = smov 0  }
   0xb   :  { %s6026_s27 = smov 0   ;;  %s6028_s28 = smov 0  }
   0xc LB: > { %8747 = sst [smem:[#allocation16_spill]] %s5927_s25  ;;  %s6043_s29 = sadd.s32 4294967295, %s5939_s28   ;;  %s5939_s28 = sphi %s6028_s28, %s9101_s28   ;;  %s5935_s27 = sphi %s6026_s27, %s9100_s27   ;;  %s5931_s26 = sphi %s6024_s26, %s9099_s26   ;;  %s5927_s25 = sphi %s6022_s25, %s9098_s25  }
   0xd   : > { %s4347_s30 = sadd.s32 4294967294, %s5939_s28   ;;  %p51_p0 = scmp.ne.s32.totalorder %s5931_s26, %s5927_s25 }
   0xe   : > { %p8632_p1 = scmp.eq.s32.totalorder %s6043_s29, 0  ;;  %p327_p2 = scmp.eq.s32.totalorder %s6043_s29, 1 }
   0xf   : > { %p333_p3 = scmp.eq.s32.totalorder %s4347_s30, 1  ;;  %p4348_p5 = scmp.ge.s32.totalorder %s5939_s28, 1 }
  0x10   : > { %p6052_p4 = por %p8632_p1, %p51_p0  ;;  %p340_p7 = scmp.lt.s32.totalorder %s5939_s28, 3 }
  0x11   : > { %p6057_p6 = por %p333_p3, %p51_p0  ;;  %s5941_s17 = smov [#allocation5]  }
  0x12   : > { %s8748_s14 = scalar_select %p6052_p4, 1, 0 }
  0x13   : > { %s8749_s15 = scalar_select %p6057_p6, 1, 0 }
  0x14   : > { %p6062_p8 = pnand %p4348_p5, %p340_p7  ;;  %s355_s18 = sshll.u32 %s5941_s17, 4  ;;  %s356_s18 = int_to_ptr.vmem [resolvable:$true] %s355_s18 }
  0x15   : > { %8750 = sst [smem:[#allocation17_spill]] %s8749_s15  ;;  %s5942_s20 = smov [#allocation8]  }
  0x16   : > { %s8751_s16 = scalar_select %p6062_p8, 1, 0 }
  0x17   : > { %p5517_p9 = pneg %p6062_p8  ;;  %s396_s21 = sshll.u32 %s5942_s20, 4  ;;  %s397_s21 = int_to_ptr.vmem [resolvable:$true] %s396_s21 }
  0x18   : > { %s5943_s22 = smov [#allocation7]   ;;  %s5746_s24 = scalar_lea.vmem %s356_s18, 1024 }
  0x19   : > { %p6071_p11 = pnand %p5517_p9, %p8632_p1  ;;  %s380_s23 = sshll.u32 %s5943_s22, 4  ;;  %s381_s23 = int_to_ptr.vmem [resolvable:$true] %s380_s23 }
  0x1a   : > { %p5747_p13 = scmp.ne.s32.totalorder %s356_s18, %s5746_s24  ;;  %p5754_p5 = scmp.lt.s32.totalorder %s356_s18, %s356_s18 }
  0x1b   : > { %p5737_p12 = pneg %p6071_p11  ;;  %p5755_p7 = scmp.lt.s32.totalorder %s5746_s24, %s5746_s24 }
  0x1d   : > { %p5749_p0 = pnand %p5747_p13, %p5737_p12  ;;  %p5756_p9 = por %p5755_p7, %p5754_p5 }
  0x1f   : > { %p5750_p3 = pneg %p5749_p0 }
  0x21   : > { %p5757_p10 = pnand %p5756_p9, %p5750_p3 }
  0x23   : > { %5760 = shalt.err (!%p5757_p10)
}
  0x24   : > { %s8633_s30 = smov 128   ;;  %s8634_s17 = smov 8  }
  0x25   : > { %s8753_s2 = sld [smem:[#allocation119_spill]]  ;;  %s5772_s15 = scalar_lea.vmem %s397_s21, 2048 }
  0x26   : > { %p5773_p13 = scmp.ne.s32.totalorder %s397_s21, %s5772_s15  ;;  %p5780_p3 = scmp.lt.s32.totalorder %s397_s21, %s397_s21 }
  0x27   : > { %p5781_p10 = scmp.lt.s32.totalorder %s5772_s15, %s5772_s15 }
  0x28   : > { %p5775_p0 = pnand %p5773_p13, %p5737_p12 }
  0x29   : > { %p5782_p7 = por %p5781_p10, %p5780_p3 }
  0x2a   : > { %p5776_p5 = pneg %p5775_p0 }
  0x2b   : > { %5520 = dma.hbm_to_vmem [thread:$0]  (!%p6071_p11), %s8753_s2, 1024, %s356_s18, [#allocation6], %s8633_s30, %s8633_s30, %s8634_s17  }
  0x2c   : > { %p5783_p9 = pnand %p5782_p7, %p5776_p5 }
  0x2e   : > { %5786 = shalt.err (!%p5783_p9)
}
  0x2f   : > { %s8754_s9 = sld [smem:[#allocation121_spill]]  ;;  %s5798_s18 = scalar_lea.vmem %s381_s23, 2048 }
  0x30   : > { %p5799_p1 = scmp.ne.s32.totalorder %s381_s23, %s5798_s18  ;;  %p5806_p3 = scmp.lt.s32.totalorder %s381_s23, %s381_s23 }
  0x31   : > { %p5807_p5 = scmp.lt.s32.totalorder %s5798_s18, %s5798_s18 }
  0x32   : > { %p5801_p13 = pnand %p5799_p1, %p5737_p12 }
  0x33   : > { %p5808_p10 = por %p5807_p5, %p5806_p3 }
  0x34   : > { %p5802_p0 = pneg %p5801_p13 }
  0x35   : > { %5526 = dma.hbm_to_vmem [thread:$0]  (!%p6071_p11), %s8754_s9, 2048, %s397_s21, [#allocation9], %s8633_s30, %s8633_s30, %s8634_s17  }
  0x36   : > { %p5809_p7 = pnand %p5808_p10, %p5802_p0 }
  0x38   : > { %5812 = shalt.err (!%p5809_p7)
}
  0x39   : > { %s8755_s7 = sld [smem:[#allocation120_spill]]  ;;  %s5946_s21 = smov [#allocation10]  }
  0x3a   : > { %s412_s20 = sshll.u32 %s5946_s21, 4  ;;  %s413_s20 = int_to_ptr.vmem [resolvable:$true] %s412_s20 }
  0x3b   : > { %s5824_s22 = scalar_lea.vmem %s413_s20, 2048  ;;  %p5832_p0 = scmp.lt.s32.totalorder %s413_s20, %s413_s20 }
  0x3c   : > { %p5825_p1 = scmp.ne.s32.totalorder %s413_s20, %s5824_s22  ;;  %p5833_p3 = scmp.lt.s32.totalorder %s5824_s22, %s5824_s22 }
  0x3e   : > { %p5827_p9 = pnand %p5825_p1, %p5737_p12  ;;  %p5834_p5 = por %p5833_p3, %p5832_p0 }
  0x3f   : > { %5523 = dma.hbm_to_vmem [thread:$0]  (!%p6071_p11), %s8755_s7, 2048, %s381_s23, [#allocation6], %s8633_s30, %s8633_s30, %s8634_s17  }
  0x40   : > { %p5828_p13 = pneg %p5827_p9 }
  0x42   : > { %p5835_p10 = pnand %p5834_p5, %p5828_p13 }
  0x44   : > { %5838 = shalt.err (!%p5835_p10)
}
  0x45   : > { %s8756_s11 = sld [smem:[#allocation122_spill]]  ;;  %s6122_s18 = sadd.s32 1, %s5939_s28  }
  0x46   : > { %s38_s19 = sadd.s32 1, %s5935_s27  ;;  %s35_s25 = ssub.s32 %s5939_s28, %s6122_s18 }
  0x47   : > { %p45_p12 = scmp.ne.s32.totalorder %s5935_s27, %s5931_s26  ;;  %p36_p7 = scmp.eq.s32.totalorder %s35_s25, 0 }
  0x48   : > { %p46_p1 = scmp.eq.s32.totalorder %s5939_s28, 0  ;;  %p5542_p13 = scmp.lt.s32.totalorder %s5939_s28, 2 }
  0x49   : > { %p6132_p9 = por %p327_p2, %p45_p12  ;;  %s429_s22 = sand.u32 1, %s5935_s27  }
  0x4a   : > { %s6138_s21 = scalar_select %p36_p7, %s5935_s27, %s38_s19  }
  0x4b   : > { %5529 = dma.hbm_to_vmem [thread:$0]  (!%p6071_p11), %s8756_s11, 2048, %s413_s20, [#allocation9], %s8633_s30, %s8633_s30, %s8634_s17  }
  0x4c   : > { %s8757_s15 = scalar_select %p6132_p9, 1, 0 }
  0x4d   : > { %8758 = sst [smem:[#allocation18_spill]] %s6138_s21  ;;  %p47_p0 = por %p46_p1, %p45_p12 }
  0x4e   : > { %s4354_s23 = sshll.u32 %s429_s22, 9  ;;  %s4442_s20 = sshll.u32 %s5939_s28, 13 }
  0x4f   : > { %s6145_s17 = scalar_lea.hbm %s8616_s0, %s4442_s20  ;;  %s433_s25 = scalar_lea.vmem [#allocation2], %s4354_s23 }
  0x50   : > { %s441_s2 = sshll.u32 %s433_s25, 4  ;;  %p6149_p2 = pnand %p5542_p13, %p47_p0  ;;  %s6147_s2 = int_to_ptr.vmem [resolvable:$true] %s441_s2 }
  0x51   : > { %s6153_s19 = scalar_lea.sflag [#allocation3], %s429_s22  ;;  %s5839_s9 = scalar_lea.hbm %s6145_s17, 8192 }
  0x52   : > { %p5840_p11 = scmp.ne.s32.totalorder %s6145_s17, %s5839_s9  ;;  %p5841_p3 = pneg %p6149_p2 }
  0x53   : > { %s5844_s23 = scalar_lea.hbm %s8616_s0, 16384  ;;  %p5845_p12 = scmp.lt.s32.totalorder %s6145_s17, %s8616_s0 }
  0x54   : > { %p5842_p5 = pnand %p5841_p3, %p5840_p11  ;;  %p5846_p7 = scmp.lt.s32.totalorder %s5844_s23, %s5839_s9 }
  0x56   : > { %p5843_p10 = pneg %p5842_p5  ;;  %p5847_p1 = por %p5846_p7, %p5845_p12 }
  0x58   : > { %p5848_p13 = pnand %p5847_p1, %p5843_p10 }
  0x5a   : > { %5851 = shalt.err (!%p5848_p13)
}
  0x5b   : > { %s5852_s22 = scalar_lea.vmem %s6147_s2, 8192  ;;  %s5947_s11 = smov [#allocation2]  }
  0x5c   : > { %p5853_p0 = scmp.ne.s32.totalorder %s6147_s2, %s5852_s22  ;;  %s5857_s21 = sshll.u32 %s5947_s11, 4  ;;  %s5858_s21 = int_to_ptr.vmem [resolvable:$false] %s5857_s21 }
  0x5d   : > { %s5859_s30 = scalar_lea.vmem %s5858_s21, 16384  ;;  %p5860_p5 = scmp.lt.s32.totalorder %s6147_s2, %s5858_s21 }
  0x5e   : > { %p5855_p6 = pnand %p5853_p0, %p5841_p3  ;;  %p5861_p9 = scmp.lt.s32.totalorder %s5859_s30, %s5852_s22 }
  0x60   : > { %p5856_p11 = pneg %p5855_p6  ;;  %p5862_p4 = por %p5861_p9, %p5860_p5 }
  0x62   : > { %p5863_p8 = pnand %p5862_p4, %p5856_p11 }
  0x64   : > { %5866 = shalt.err (!%p5863_p8)
}
  0x65   : > { %s8760_s9 = smov 8   ;;  %s8761_s20 = smov 128  }
  0x66   : > { %5533 = dma.hbm_to_vmem [thread:$0]  (!%p6149_p2), %s6145_s17, 8192, %s6147_s2, %s6153_s19, %s8761_s20, %s8761_s20, %s8760_s9  }
  0x67   : > { %p8762_p6 = scmp.ne.s32.totalorder %s8751_s16, 0 }
  0x69   : > { %453 = sbr.rel (%p8762_p6) target bundleno = 1366 (0x556), region = 72 }
  0x6e   : > { %s6180_s11 = sand.u32 1, %s5931_s26   ;;  %p8763_p4 = scmp.ne.s32.totalorder %s8748_s14, 0 }
  0x6f   : > { %s4359_s21 = sshll.u32 %s6180_s11, 9  ;;  %s456_s23 = scalar_lea.sflag [#allocation3], %s6180_s11 }
  0x70   : > { %s6184_s24 = scalar_lea.vmem [#allocation2], %s4359_s21 }
  0x71   : > { %5910 = dma.done.wait (%p8763_p4), %s456_s23, 8192  }
  0x72   : > { %5912 = vsyncadd (%p8763_p4), %s456_s23, 4294959104  ;;  %p8764_p8 = scmp.eq.s32.totalorder %s6043_s29, 0 }
  0x74   : > { %5914 = dma.done.wait (%p8764_p8), [#allocation6], 3072   ;;  %p8765_p9 = pmov %p8764_p8 }
  0x75   : > { %p8766_p2 = pmov %p8764_p8 }
  0x76   : > { %5916 = vsyncadd (%p8765_p9), [#allocation6], 4294964224 }
  0x77   : > { %5918 = dma.done.wait (%p8766_p2), [#allocation9], 4096   ;;  %p8767_p3 = pmov %p8766_p2 }
  0x78   : > { %v8642_v0 = vmov 0.0   ;;  %vm5949_vm0 = vmmov 0   ;;  %v6204_v1 = vld [vmem:[#allocation7 + $0x78] sm:$0xff]  ;;  %v6209_v3 = vld [vmem:[#allocation7 + $0x70] sm:$0xff]  ;;  %v6217_v5 = vld [vmem:[#allocation7 + $0x68] sm:$0xff]  ;;  %vm815_vm1 = vcmask 1041409  }
  0x79   : > { %5920 = vsyncadd (%p8767_p3), [#allocation9], 4294963200  ;;  %4870 = vmatprep.subr.mxu1 %v8642_v0  ;;  %4835 = vmatprep.subr.mxu0 %v8642_v0  ;;  %v798_v2 = vld [vmem:[%s8621_s5 + $0x78] sm:$0xff]  ;;  %v797_v4 = vld [vmem:[%s8621_s5 + $0x70] sm:$0xff]  ;;  %vm818_vm2 = vcmask 1042434   ;;  %vm821_vm3 = vcmask 1043459  }
  0x7a   : > { %4867 = vmatprep.mubr.msk.f32.mxu0 %vm5949_vm0, %v8642_v0  ;;  %4902 = vmatprep.mubr.msk.f32.mxu1 %vm5949_vm0, %v8642_v0  ;;  %v796_v6 = vld [vmem:[%s8621_s5 + $0x68] sm:$0xff]  ;;  %v6225_v7 = vld [vmem:[#allocation7 + $0x60] sm:$0xff]  ;;  %v6233_v9 = vld [vmem:[#allocation7 + $0x58] sm:$0xff]  ;;  %vm824_vm4 = vcmask 1044484   ;;  %vm827_vm5 = vcmask 1045509   ;;  %vm830_vm6 = vcmask 1046534  }
  0x7b   : > { %4871 = vmatpush3.msra.mxu1 %v6204_v1  ;;  %4836 = vmatpush3.msra.mxu0 %v798_v2  ;;  %v795_v8 = vld [vmem:[%s8621_s5 + $0x60] sm:$0xff]  ;;  %v794_v10 = vld [vmem:[%s8621_s5 + $0x58] sm:$0xff]  ;;  %v6241_v11 = vld [vmem:[#allocation7 + $0x50] sm:$0xff]  ;;  %vm833_vm7 = vcmask 1047559   ;;  %vm2490_vm8 = vcmask 31744   ;;  %vm3429_vm9 = vcmask 1043456  }
  0x7c   : > { %4872 = vmatprep.subr.mxu1 %v8642_v0  ;;  %4837 = vmatprep.subr.mxu0 %v8642_v0  ;;  %v793_v12 = vld [vmem:[%s8621_s5 + $0x50] sm:$0xff]  ;;  %v6249_v13 = vld [vmem:[#allocation7 + $0x48] sm:$0xff]  ;;  %v6255_v15 = vld [vmem:[%s6184_s24] sm:$0xff]  ;;  %s4364_s25 = sshll.u32 %s6180_s11, 3  ;;  %s4438_s30 = sshll.u32 %s6043_s29, 7 }
  0x7d   : > { %4873 = vmatpush3.msra.mxu1 %v6209_v3  ;;  %4838 = vmatpush3.msra.mxu0 %v797_v4  ;;  %v792_v14 = vld [vmem:[%s8621_s5 + $0x48] sm:$0xff]  ;;  %8768 = vst [vmem:[#allocation19_spill] sm:$0xff] %v6255_v15  ;;  %v6262_v17 = vld [vmem:[%s6184_s24 + $0x10] sm:$0xff]  ;;  %v6266_v18 = vld [vmem:[#allocation7 + $0x40] sm:$0xff]  ;;  %s517_s9 = scalar_lea.vmem [#allocation11], %s4364_s25  ;;  %s8579_s2 = scalar_lea.hbm %s8629_s13, %s4438_s30 }
  0x7e   : > { %4874 = vmatprep.subr.mxu1 %v8642_v0  ;;  %4839 = vmatprep.subr.mxu0 %v8642_v0  ;;  %v6259_v16 = vld [vmem:[%s6184_s24 + $0x8] sm:$0xff]  ;;  %8770 = vst [vmem:[#allocation21_spill] sm:$0xff] %v6262_v17  ;;  %8771 = vst [vmem:[#allocation22_spill] sm:$0xff] %v6266_v18  ;;  %v791_v19 = vld [vmem:[%s8621_s5 + $0x40] sm:$0xff]  ;;  %s4239_s20 = sshll.u32 %s517_s9, 4  ;;  %s4226_s7 = scalar_lea.sflag [#allocation4], %s6180_s11  ;;  %s4240_s20 = int_to_ptr.vmem [resolvable:$true] %s4239_s20 }
  0x7f   : > { %4875 = vmatpush3.msra.mxu1 %v6217_v5  ;;  %4840 = vmatpush3.msra.mxu0 %v796_v6  ;;  %8769 = vst [vmem:[#allocation20_spill] sm:$0xff] %v6259_v16  ;;  %v6271_v20 = vld [vmem:[#allocation7 + $0x38] sm:$0xff]  ;;  %v583_v21 = vadd.f32 %v6259_v16, %v6255_v15  ;;  %v6280_v23 = vld [vmem:[%s6184_s24 + $0x40] sm:$0xff]  ;;  %v6283_v24 = vld [vmem:[%s6184_s24 + $0x48] sm:$0xff]  ;;  %s5867_s14 = scalar_lea.vmem %s4240_s20, 128  ;;  %p9092_p12 = scmp.ne.s32.totalorder %s8757_s15, 0 }
  0x80   : > { %4876 = vmatprep.subr.mxu1 %v8642_v0  ;;  %4841 = vmatprep.subr.mxu0 %v8642_v0  ;;  %8772 = vst [vmem:[#allocation23_spill] sm:$0xff] %v6271_v20  ;;  %v6277_v22 = vld [vmem:[%s6184_s24 + $0x18] sm:$0xff]  ;;  %8774 = vst [vmem:[#allocation25_spill] sm:$0xff] %v6280_v23  ;;  %v6290_v26 = vld [vmem:[#allocation7 + $0x30] sm:$0xff]  ;;  %v596_v29 = vadd.f32 %v6283_v24, %v6280_v23  ;;  %p5868_p10 = scmp.ne.s32.totalorder %s4240_s20, %s5867_s14  ;;  %s5951_s16 = smov [#allocation11]  }
  0x81   : > { %4877 = vmatpush3.msra.mxu1 %v6225_v7  ;;  %4842 = vmatpush3.msra.mxu0 %v795_v8  ;;  %8773 = vst [vmem:[#allocation24_spill] sm:$0xff] %v6277_v22  ;;  %8775 = vst [vmem:[#allocation26_spill] sm:$0xff] %v6283_v24  ;;  %v790_v25 = vld [vmem:[%s8621_s5 + $0x38] sm:$0xff]  ;;  %v6293_v27 = vld [vmem:[%s6184_s24 + $0x50] sm:$0xff]  ;;  %v584_v28 = vadd.f32 %v583_v21, %v6262_v17  ;;  %s5871_s29 = sshll.u32 %s5951_s16, 4  ;;  %s5872_s29 = int_to_ptr.vmem [resolvable:$false] %s5871_s29 }
  0x82   : > { %4878 = vmatprep.subr.mxu1 %v8642_v0  ;;  %4843 = vmatprep.subr.mxu0 %v8642_v0  ;;  %8776 = vst [vmem:[#allocation27_spill] sm:$0xff] %v6290_v26  ;;  %8777 = vst [vmem:[#allocation28_spill] sm:$0xff] %v6293_v27  ;;  %v789_v30 = vld [vmem:[%s8621_s5 + $0x30] sm:$0xff]  ;;  %v6303_v31 = vld [vmem:[%s6184_s24 + $0x20] sm:$0xff]  ;;  %v597_v38 = vadd.f32 %v596_v29, %v6293_v27  ;;  %p5869_p7 = pnand %p5868_p10, %p9092_p12  ;;  %s5873_s17 = scalar_lea.vmem %s5872_s29, 256 }
  0x83   : > { %4879 = vmatpush3.msra.mxu1 %v6233_v9  ;;  %4844 = vmatpush3.msra.mxu0 %v794_v10  ;;  %8778 = vst [vmem:[#allocation29_spill] sm:$0xff] %v6303_v31  ;;  %v6306_v32 = vld [vmem:[%s6184_s24 + $0x58] sm:$0xff]  ;;  %v6310_v33 = vld [vmem:[#allocation7 + $0x28] sm:$0xff]  ;;  %v6313_v34 = vld [vmem:[%s6184_s24 + $0x80] sm:$0xff]  ;;  %v585_v37 = vadd.f32 %v584_v28, %v6277_v22  ;;  %p5874_p13 = scmp.lt.s32.totalorder %s4240_s20, %s5872_s29  ;;  %p5875_p0 = scmp.lt.s32.totalorder %s5873_s17, %s5867_s14 }
  0x84   : > { %4880 = vmatprep.subr.mxu1 %v8642_v0  ;;  %4845 = vmatprep.subr.mxu0 %v8642_v0  ;;  %8779 = vst [vmem:[#allocation30_spill] sm:$0xff] %v6306_v32  ;;  %8780 = vst [vmem:[#allocation31_spill] sm:$0xff] %v6310_v33  ;;  %v6316_v35 = vld [vmem:[%s6184_s24 + $0x88] sm:$0xff]  ;;  %v6319_v36 = vld [vmem:[%s6184_s24 + $0x90] sm:$0xff]  ;;  %v598_v49 = vadd.f32 %v597_v38, %v6306_v32  ;;  %p5870_p1 = pneg %p5869_p7 }
  0x85   : > { %4881 = vmatpush3.msra.mxu1 %v6241_v11  ;;  %4846 = vmatpush3.msra.mxu0 %v793_v12  ;;  %8781 = vst [vmem:[#allocation32_spill] sm:$0xff] %v6313_v34  ;;  %8782 = vst [vmem:[#allocation33_spill] sm:$0xff] %v6316_v35  ;;  %v788_v39 = vld [vmem:[%s8621_s5 + $0x28] sm:$0xff]  ;;  %v6331_v41 = vld [vmem:[%s6184_s24 + $0x60] sm:$0xff]  ;;  %v609_v42 = vadd.f32 %v6316_v35, %v6313_v34  ;;  %v586_v48 = vadd.f32 %v585_v37, %v6303_v31  ;;  %v8808_v34 = vmov 0.0   ;;  %p5876_p11 = por %p5875_p0, %p5874_p13 }
  0x86   : > { %4882 = vmatprep.subr.mxu1 %v8642_v0  ;;  %4847 = vmatprep.subr.mxu0 %v8642_v0  ;;  %8783 = vst [vmem:[#allocation34_spill] sm:$0xff] %v6319_v36  ;;  %v6328_v40 = vld [vmem:[%s6184_s24 + $0x28] sm:$0xff]  ;;  %8785 = vst [vmem:[#allocation36_spill] sm:$0xff] %v6331_v41  ;;  %v6337_v43 = vld [vmem:[#allocation7 + $0x20] sm:$0xff]  ;;  %v599_v60 = vadd.f32 %v598_v49, %v6331_v41 }
  0x87   : > { %4883 = vmatpush3.msra.mxu1 %v6249_v13  ;;  %4848 = vmatpush3.msra.mxu0 %v792_v14  ;;  %8784 = vst [vmem:[#allocation35_spill] sm:$0xff] %v6328_v40  ;;  %8786 = vst [vmem:[#allocation37_spill] sm:$0xff] %v6337_v43  ;;  %v787_v44 = vld [vmem:[%s8621_s5 + $0x20] sm:$0xff]  ;;  %v6343_v45 = vld [vmem:[%s6184_s24 + $0x30] sm:$0xff]  ;;  %v610_v53 = vadd.f32 %v609_v42, %v6319_v36  ;;  %v587_v59 = vadd.f32 %v586_v48, %v6328_v40  ;;  %p5877_p5 = pnand %p5876_p11, %p5870_p1 }
  0x88   : > { %4884 = vmatprep.subr.mxu1 %v8642_v0  ;;  %4849 = vmatprep.subr.mxu0 %v8642_v0  ;;  %8787 = vst [vmem:[#allocation38_spill] sm:$0xff] %v6343_v45  ;;  %v6346_v46 = vld [vmem:[%s6184_s24 + $0x98] sm:$0xff]  ;;  %v6349_v47 = vld [vmem:[%s6184_s24 + $0xc0] sm:$0xff]  ;;  %v6355_v50 = vld [vmem:[%s6184_s24 + $0x68] sm:$0xff] }
  0x89   : > { %4885 = vmatpush3.msra.mxu1 %v6266_v18  ;;  %4850 = vmatpush3.msra.mxu0 %v791_v19  ;;  %8788 = vst [vmem:[#allocation39_spill] sm:$0xff] %v6346_v46  ;;  %8789 = vst [vmem:[#allocation40_spill] sm:$0xff] %v6349_v47  ;;  %v6358_v51 = vld [vmem:[%s6184_s24 + $0xc8] sm:$0xff]  ;;  %v6361_v52 = vld [vmem:[%s6184_s24 + $0xd0] sm:$0xff]  ;;  %v611_v4 = vadd.f32 %v610_v53, %v6346_v46  ;;  %v588_v19 = vadd.f32 %v587_v59, %v6343_v45 }
  0x8a   : > { %4886 = vmatprep.subr.mxu1 %v8642_v0  ;;  %4851 = vmatprep.subr.mxu0 %v8642_v0  ;;  %8790 = vst [vmem:[#allocation41_spill] sm:$0xff] %v6355_v50  ;;  %8791 = vst [vmem:[#allocation42_spill] sm:$0xff] %v6358_v51  ;;  %v6366_v54 = vld [vmem:[#allocation7 + $0x18] sm:$0xff]  ;;  %v6375_v57 = vld [vmem:[%s6184_s24 + $0x70] sm:$0xff]  ;;  %v622_v61 = vadd.f32 %v6358_v51, %v6349_v47  ;;  %v600_v21 = vadd.f32 %v599_v60, %v6355_v50 }
  0x8b   : > { %4887 = vmatpush3.msra.mxu1 %v6271_v20  ;;  %4852 = vmatpush3.msra.mxu0 %v790_v25  ;;  %8792 = vst [vmem:[#allocation43_spill] sm:$0xff] %v6361_v52  ;;  %8793 = vst [vmem:[#allocation44_spill] sm:$0xff] %v6366_v54  ;;  %v786_v55 = vld [vmem:[%s8621_s5 + $0x18] sm:$0xff]  ;;  %v6378_v58 = vld [vmem:[%s6184_s24 + $0xa0] sm:$0xff] }
  0x8c   : > { %4888 = vmatprep.subr.mxu1 %v8642_v0  ;;  %4853 = vmatprep.subr.mxu0 %v8642_v0  ;;  %v6372_v56 = vld [vmem:[%s6184_s24 + $0x38] sm:$0xff]  ;;  %8795 = vst [vmem:[#allocation46_spill] sm:$0xff] %v6375_v57  ;;  %8796 = vst [vmem:[#allocation47_spill] sm:$0xff] %v6378_v58  ;;  %v6389_v63 = vld [vmem:[%s6184_s24 + $0x100] sm:$0xff]  ;;  %v623_v25 = vadd.f32 %v622_v61, %v6361_v52  ;;  %v612_v37 = vadd.f32 %v611_v4, %v6378_v58 }
  0x8d   : > { %4889 = vmatpush3.msra.mxu1 %v6290_v26  ;;  %4854 = vmatpush3.msra.mxu0 %v789_v30  ;;  %8794 = vst [vmem:[#allocation45_spill] sm:$0xff] %v6372_v56  ;;  %v6386_v62 = vld [vmem:[%s6184_s24 + $0xd8] sm:$0xff]  ;;  %v6392_v2 = vld [vmem:[%s6184_s24 + $0x108] sm:$0xff]  ;;  %v6397_v6 = vld [vmem:[#allocation7 + $0x10] sm:$0xff]  ;;  %v589_v49 = vadd.f32 %v588_v19, %v6372_v56  ;;  %v601_v53 = vadd.f32 %v600_v21, %v6375_v57 }
  0x8e   : > { %4890 = vmatprep.subr.mxu1 %v8642_v0  ;;  %4855 = vmatprep.subr.mxu0 %v8642_v0  ;;  %8797 = vst [vmem:[#allocation48_spill] sm:$0xff] %v6386_v62  ;;  %8798 = vst [vmem:[#allocation49_spill] sm:$0xff] %v6397_v6  ;;  %v785_v8 = vld [vmem:[%s8621_s5 + $0x10] sm:$0xff]  ;;  %v6403_v10 = vld [vmem:[%s6184_s24 + $0x78] sm:$0xff]  ;;  %v635_v38 = vadd.f32 %v6392_v2, %v6389_v63  ;;  %v624_v59 = vadd.f32 %v623_v25, %v6386_v62 }
  0x8f   : > { %4891 = vmatpush3.msra.mxu1 %v6310_v33  ;;  %4856 = vmatpush3.msra.mxu0 %v788_v39  ;;  %8799 = vst [vmem:[#allocation50_spill] sm:$0xff] %v6403_v10  ;;  %v6406_v12 = vld [vmem:[%s6184_s24 + $0xa8] sm:$0xff]  ;;  %v6409_v14 = vld [vmem:[%s6184_s24 + $0x110] sm:$0xff]  ;;  %v6419_v29 = vld [vmem:[%s6184_s24 + $0xe0] sm:$0xff]  ;;  %v590_v51 = vrot.slane %v589_v49, 4  ;;  %v602_v47 = vadd.f32 %v601_v53, %v6403_v10 }
  0x90   : > { %4892 = vmatprep.subr.mxu1 %v8642_v0  ;;  %4857 = vmatprep.subr.mxu0 %v8642_v0  ;;  %8800 = vst [vmem:[#allocation51_spill] sm:$0xff] %v6406_v12  ;;  %v6416_v28 = vld [vmem:[%s6184_s24 + $0xb0] sm:$0xff]  ;;  %8802 = vst [vmem:[#allocation53_spill] sm:$0xff] %v6419_v29  ;;  %v6422_v30 = vld [vmem:[%s6184_s24 + $0x118] sm:$0xff]  ;;  %v613_v19 = vadd.f32 %v612_v37, %v6406_v12  ;;  %v636_v21 = vadd.f32 %v635_v38, %v6409_v14 }
  0x91   : > { %4893 = vmatpush3.msra.mxu1 %v6337_v43  ;;  %4858 = vmatpush3.msra.mxu0 %v787_v44  ;;  %8801 = vst [vmem:[#allocation52_spill] sm:$0xff] %v6416_v28  ;;  %v6429_v39 = vld [vmem:[#allocation7 + $0x8] sm:$0xff]  ;;  %v6432_v42 = vld [vmem:[%s6184_s24 + $0x140] sm:$0xff]  ;;  %v6438_v48 = vld [vmem:[%s6184_s24 + $0x150] sm:$0xff]  ;;  %v591_v10 = vadd.f32 %v590_v51, %v589_v49 }
  0x92   : > { %4894 = vmatprep.subr.mxu1 %v8642_v0  ;;  %4859 = vmatprep.subr.mxu0 %v8642_v0  ;;  %8803 = vst [vmem:[#allocation54_spill] sm:$0xff] %v6429_v39  ;;  %v6435_v44 = vld [vmem:[%s6184_s24 + $0x148] sm:$0xff]  ;;  %v6448_v61 = vld [vmem:[%s6184_s24 + $0xb8] sm:$0xff]  ;;  %v783_v62 = vld [vmem:[%s8621_s5] sm:$0xff]  ;;  %v614_v36 = vadd.f32 %v613_v19, %v6416_v28  ;;  %v637_v35 = vadd.f32 %v636_v21, %v6422_v30  ;;  %v603_v19 = vrot.slane %v602_v47, 4 }
  0x93   : > { %4895 = vmatpush3.msra.mxu1 %v6366_v54  ;;  %4860 = vmatpush3.msra.mxu0 %v786_v55  ;;  %v784_v60 = vld [vmem:[%s8621_s5 + $0x8] sm:$0xff]  ;;  %8804 = vst [vmem:[#allocation55_spill] sm:$0xff] %v6448_v61  ;;  %v648_v25 = vadd.f32 %v6435_v44, %v6432_v42  ;;  %v6459_v55 = vld [vmem:[#allocation7] sm:$0xff]  ;;  %v6468_v37 = vld [vmem:[%s6184_s24 + $0x158] sm:$0xff]  ;;  %v592_v32 = vrot.slane %v591_v10, 2 }
  0x94   : > { %v6451_v4 = vld [vmem:[%s6184_s24 + $0xe8] sm:$0xff]  ;;  %4896 = vmatprep.subr.mxu1 %v8642_v0  ;;  %4861 = vmatprep.subr.mxu0 %v8642_v0  ;;  %8806 = vst [vmem:[#allocation57_spill] sm:$0xff] %v6459_v55  ;;  %v6465_v52 = vld [vmem:[%s6184_s24 + $0x120] sm:$0xff]  ;;  %v625_v0 = vadd.f32 %v624_v59, %v6419_v29  ;;  %v6477_v12 = vld [vmem:[%s6184_s24 + $0xf0] sm:$0xff]  ;;  %v615_v41 = vadd.f32 %v614_v36, %v6448_v61 }
  0x95   : > { %8805 = vst [vmem:[#allocation56_spill] sm:$0xff] %v6451_v4  ;;  %v6471_v38 = vld [vmem:[%s6184_s24 + $0x180] sm:$0xff]  ;;  %4897 = vmatpush3.msra.mxu1 %v6397_v6  ;;  %4862 = vmatpush3.msra.mxu0 %v785_v8  ;;  %8807 = vst [vmem:[#allocation58_spill] sm:$0xff] %v6477_v12  ;;  %v6480_v58 = vld [vmem:[%s6184_s24 + $0x188] sm:$0xff]  ;;  %v649_v53 = vadd.f32 %v648_v25, %v6438_v48  ;;  %v638_v51 = vadd.f32 %v637_v35, %v6465_v52 }
  0x96   : > { %v6483_v46 = vld [vmem:[%s6184_s24 + $0x190] sm:$0xff]  ;;  %4898 = vmatprep.subr.mxu1 %v8808_v34  ;;  %4863 = vmatprep.subr.mxu0 %v8808_v34  ;;  %v6491_v8 = vld [vmem:[%s6184_s24 + $0xf8] sm:$0xff]  ;;  %v6494_v59 = vld [vmem:[%s6184_s24 + $0x128] sm:$0xff]  ;;  %v626_v28 = vadd.f32 %v625_v0, %v6451_v4  ;;  %v661_v21 = vadd.f32 %v6480_v58, %v6471_v38  ;;  %v604_v27 = vadd.f32 %v603_v19, %v602_v47  ;;  %v616_v61 = vrot.slane %v615_v41, 4 }
  0x97   : > { %8809 = vst [vmem:[#allocation59_spill] sm:$0xff] %v6491_v8  ;;  %v6497_v29 = vld [vmem:[%s6184_s24 + $0x160] sm:$0xff]  ;;  %4899 = vmatpush3.msra.mxu1 %v6429_v39  ;;  %4864 = vmatpush3.msra.mxu0 %v784_v60  ;;  %v6504_v25 = vld [vmem:[%s6184_s24 + $0x198] sm:$0xff]  ;;  %v6510_v50 = vld [vmem:[%s6184_s24 + $0x1c8] sm:$0xff]  ;;  %v650_v49 = vadd.f32 %v649_v53, %v6468_v37  ;;  %v639_v24 = vadd.f32 %v638_v51, %v6494_v59 }
  0x98   : > { %v6507_v57 = vld [vmem:[%s6184_s24 + $0x1c0] sm:$0xff]  ;;  %8810 = vst [vmem:[#allocation60_spill] sm:$0xff] %v6510_v50  ;;  %4900 = vmatprep.subr.mxu1 %v8808_v34  ;;  %4865 = vmatprep.subr.mxu0 %v8808_v34  ;;  %v6518_v0 = vld [vmem:[%s6184_s24 + $0x130] sm:$0xff]  ;;  %v6521_v60 = vld [vmem:[%s6184_s24 + $0x168] sm:$0xff]  ;;  %v627_v36 = vadd.f32 %v626_v28, %v6477_v12  ;;  %v662_v35 = vadd.f32 %v661_v21, %v6483_v46  ;;  %v605_v21 = vrot.slane %v604_v27, 2 }
  0x99   : > { %v6524_v4 = vld [vmem:[%s6184_s24 + $0x1d0] sm:$0xff]  ;;  %4901 = vmatpush3.msra.mxu1 %v6459_v55  ;;  %4866 = vmatpush3.msra.mxu0 %v783_v62  ;;  %v6530_v53 = vld [vmem:[%s6184_s24 + $0x1a0] sm:$0xff]  ;;  %v651_v23 = vadd.f32 %v650_v49, %v6497_v29  ;;  %v674_v56 = vadd.f32 %v6510_v50, %v6507_v57  ;;  %v6538_v47 = vld [vmem:[%s6184_s24 + $0x138] sm:$0xff]  ;;  %v593_v62 = vadd.f32 %v592_v32, %v591_v10 }
  0x9a   : > { %8811 = vst [vmem:[#allocation61_spill] sm:$0xff] %v6524_v4  ;;  %4940 = vmatprep.subr.mxu1 %v6204_v1  ;;  %v6541_v28 = vld [vmem:[%s6184_s24 + $0x170] sm:$0xff]  ;;  %v6544_v19 = vld [vmem:[%s6184_s24 + $0x1d8] sm:$0xff]  ;;  %v628_v51 = vadd.f32 %v627_v36, %v6491_v8  ;;  %v663_v49 = vadd.f32 %v662_v35, %v6504_v25  ;;  %4905 = vmatprep.subr.mxu0 %v8808_v34  ;;  %v6550_v12 = vld [vmem:[%s6184_s24 + $0x1a8] sm:$0xff] }
  0x9b   : > { %8812 = vst [vmem:[#allocation62_spill] sm:$0xff] %v6544_v19  ;;  %v617_v45 = vadd.f32 %v616_v61, %v615_v41  ;;  %v640_v40 = vadd.f32 %v639_v24, %v6518_v0  ;;  %v652_v31 = vadd.f32 %v651_v23, %v6521_v60  ;;  %v675_v22 = vadd.f32 %v674_v56, %v6524_v4  ;;  %v6556_v55 = vld [vmem:[%s6184_s24 + $0x178] sm:$0xff]  ;;  %v6559_v32 = vld [vmem:[%s6184_s24 + $0x1e0] sm:$0xff]  ;;  %v6563_v17 = vld [vmem:[%s6184_s24 + $0x1b0] sm:$0xff] }
  0x9c   : > { %8813 = vst [vmem:[#allocation63_spill] sm:$0xff] %v6559_v32  ;;  %v594_v10 = vrot.slane %v593_v62, 1  ;;  %v606_v36 = vadd.f32 %v605_v21, %v604_v27  ;;  %v629_v35 = vrot.slane %v628_v51, 4  ;;  %v664_v8 = vadd.f32 %v663_v49, %v6530_v53  ;;  %v6569_v61 = vld [vmem:[%s6184_s24 + $0x1e8] sm:$0xff]  ;;  %v6573_v21 = vld [vmem:[%s6184_s24 + $0x1b8] sm:$0xff]  ;;  %v6578_v15 = vld [vmem:[%s6184_s24 + $0x1f0] sm:$0xff] }
  0x9d   : > { %v618_v41 = vrot.slane %v617_v45, 2  ;;  %v641_v24 = vadd.f32 %v640_v40, %v6538_v47  ;;  %v653_v23 = vadd.f32 %v652_v31, %v6541_v28  ;;  %v676_v56 = vadd.f32 %v675_v22, %v6544_v19  ;;  %8814 = vst [vmem:[#allocation64_spill] sm:$0xff] %v6569_v61  ;;  %8815 = vst [vmem:[#allocation65_spill] sm:$0xff] %v6578_v15 }
  0x9e   : > { %v595_v16 = vadd.f32 %v594_v10, %v593_v62  ;;  %v607_v39 = vrot.slane %v606_v36, 1  ;;  %v630_v6 = vadd.f32 %v629_v35, %v628_v51  ;;  %v665_v27 = vadd.f32 %v664_v8, %v6550_v12 }
  0x9f   : > { %v619_v49 = vadd.f32 %v618_v41, %v617_v45  ;;  %v642_v54 = vrot.slane %v641_v24, 4  ;;  %v654_v43 = vadd.f32 %v653_v23, %v6556_v55  ;;  %v677_v40 = vadd.f32 %v676_v56, %v6559_v32  ;;  %v4365_v45 = vld [vmem:[%s8617_s1] ss:$0 sm:$0xff]  ;;  %v6586_v41 = vld [vmem:[%s6184_s24 + $0x1f8] sm:$0xff] }
  0xa0   : > { %v608_v31 = vadd.f32 %v607_v39, %v606_v36  ;;  %v631_v22 = vrot.slane %v630_v6, 2  ;;  %v666_v33 = vadd.f32 %v665_v27, %v6563_v17  ;;  %v688_v62 = vmul.f32 0.015625, %v595_v16 }
  0xa1   : > { %v620_v10 = vrot.slane %v619_v49, 1  ;;  %v643_v51 = vadd.f32 %v642_v54, %v641_v24  ;;  %v655_v35 = vrot.slane %v654_v43, 4  ;;  %v678_v8 = vadd.f32 %v677_v40, %v6569_v61 }
  0xa2   : > { %v632_v23 = vadd.f32 %v631_v22, %v630_v6  ;;  %v667_v56 = vadd.f32 %v666_v33, %v6573_v21  ;;  %v689_v32 = vmul.f32 0.015625, %v608_v31  ;;  %v703_v26 = vadd.f32 %v4365_v45, %v688_v62 }
  0xa3   : > { %v621_v39 = vadd.f32 %v620_v10, %v619_v49  ;;  %v644_v36 = vrot.slane %v643_v51, 2  ;;  %v656_v27 = vadd.f32 %v655_v35, %v654_v43  ;;  %v679_v16 = vadd.f32 %v678_v8, %v6578_v15 }
  0xa4   : > { %v633_v54 = vrot.slane %v632_v23, 1  ;;  %v668_v24 = vrot.slane %v667_v56, 4  ;;  %v704_v40 = vadd.f32 %v4365_v45, %v689_v32 }
  0xa5   : > { %v645_v61 = vadd.f32 %v644_v36, %v643_v51  ;;  %v657_v19 = vrot.slane %v656_v27, 2  ;;  %v680_v4 = vadd.f32 %v679_v16, %v6586_v41  ;;  %v690_v20 = vmul.f32 0.015625, %v621_v39 }
  0xa6   : > { %v634_v18 = vadd.f32 %v633_v54, %v632_v23  ;;  %v669_v6 = vadd.f32 %v668_v24, %v667_v56  ;;  %v814_v22 = vrot.slane %v704_v40, 7 }
  0xa7   : > { %v646_v33 = vrot.slane %v645_v61, 1  ;;  %v658_v31 = vadd.f32 %v657_v19, %v656_v27  ;;  %v681_v50 = vrot.slane %v680_v4, 4  ;;  %v705_v49 = vadd.f32 %v4365_v45, %v690_v20 }
  0xa8   : > { %v670_v10 = vrot.slane %v669_v6, 2  ;;  %v691_v43 = vmul.f32 0.015625, %v634_v18  ;;  %v816_v35 = vsel %vm815_vm1, %v814_v22, %v703_v26 }
  0xa9   : > { %v647_v8 = vadd.f32 %v646_v33, %v645_v61  ;;  %v659_v62 = vrot.slane %v658_v31, 1  ;;  %v682_v32 = vadd.f32 %v681_v50, %v680_v4  ;;  %v817_v51 = vrot.slane %v705_v49, 6 }
  0xaa   : > { %v671_v36 = vadd.f32 %v670_v10, %v669_v6  ;;  %v706_v15 = vadd.f32 %v4365_v45, %v691_v43 }
  0xab   : > { %v660_v39 = vadd.f32 %v659_v62, %v658_v31  ;;  %v683_v23 = vrot.slane %v682_v32, 2  ;;  %v692_v56 = vmul.f32 0.015625, %v647_v8  ;;  %v819_v16 = vsel %vm818_vm2, %v817_v51, %v816_v35  ;;  %v6597_v8 = vld [vmem:[#allocation8 + $0x78] sm:$0xff]  ;;  %v6599_v62 = vld [vmem:[#allocation5] sm:$0xff]  ;;  %v6601_v51 = vld [vmem:[#allocation5 + $0x8] sm:$0xff] }
  0xac   : > { %v672_v19 = vrot.slane %v671_v36, 1  ;;  %v820_v27 = vrot.slane %v706_v15, 5 }
  0xad   : > { %v684_v20 = vadd.f32 %v683_v23, %v682_v32  ;;  %v693_v54 = vmul.f32 0.015625, %v660_v39  ;;  %v707_v18 = vadd.f32 %v4365_v45, %v692_v56  ;;  %v6605_v39 = vld [vmem:[#allocation5 + $0x18] sm:$0xff]  ;;  %v6607_v23 = vld [vmem:[#allocation5 + $0x20] sm:$0xff]  ;;  %v6609_v56 = vld [vmem:[#allocation5 + $0x28] sm:$0xff] }
  0xae   : > { %v673_v24 = vadd.f32 %v672_v19, %v671_v36  ;;  %v822_v26 = vsel %vm821_vm3, %v820_v27, %v819_v16  ;;  %v6603_v36 = vld [vmem:[#allocation5 + $0x10] sm:$0xff]  ;;  %v6619_v19 = vadd.f32 %v6601_v51, %v6392_v2  ;;  %v6640_v2 = vadd.f32 %v6609_v56, %v6494_v59 }
  0xaf   : > { %v685_v61 = vrot.slane %v684_v20, 1  ;;  %v708_v50 = vadd.f32 %v4365_v45, %v693_v54  ;;  %v823_v4 = vrot.slane %v707_v18, 4  ;;  %v6611_v16 = vld [vmem:[#allocation5 + $0x30] sm:$0xff]  ;;  %v6623_v27 = vadd.f32 %v6603_v36, %v6409_v14  ;;  %v6632_v18 = vld [vmem:[#allocation5 + $0x38] sm:$0xff] }
  0xb0   : > { %v694_v40 = vmul.f32 0.015625, %v673_v24  ;;  %v6644_v14 = vadd.f32 %v6611_v16, %v6518_v0  ;;  %v6652_v24 = vadd.f32 %v6632_v18, %v6538_v47  ;;  %v6660_v59 = vadd.f32 %v6601_v51, %v6435_v44  ;;  %v6678_v44 = vld [vmem:[#allocation8 + $0x68] sm:$0xff] }
  0xb1   : > { %v686_v6 = vadd.f32 %v685_v61, %v684_v20  ;;  %v825_v22 = vsel %vm824_vm4, %v823_v4, %v822_v26  ;;  %v826_v33 = vrot.slane %v708_v50, 3  ;;  %v6627_v20 = vadd.f32 %v6605_v39, %v6422_v30  ;;  %v6648_v30 = vld [vmem:[#allocation8 + $0x70] sm:$0xff]  ;;  %v6766_v26 = vld [vmem:[#allocation8 + $0x38] sm:$0xff]  ;;  %v8823_v61 = vld [vmem:[#allocation61_spill] sm:$0xff] }
  0xb2   : > { %v709_v31 = vadd.f32 %v4365_v45, %v694_v40  ;;  %v6666_v0 = vadd.f32 %v6603_v36, %v6438_v48  ;;  %v6670_v47 = vadd.f32 %v6605_v39, %v6468_v37  ;;  %v6686_v48 = vadd.f32 %v6611_v16, %v6541_v28  ;;  %v8825_v4 = vld [vmem:[#allocation62_spill] sm:$0xff] }
  0xb3   : > { %v695_v49 = vmul.f32 0.015625, %v686_v6  ;;  %v828_v15 = vsel %vm827_vm5, %v826_v33, %v825_v22  ;;  %v6690_v37 = vadd.f32 %v6632_v18, %v6556_v55  ;;  %v6704_v28 = vadd.f32 %v6603_v36, %v6483_v46  ;;  %v6708_v55 = vld [vmem:[#allocation8 + $0x60] sm:$0xff]  ;;  %v8827_v6 = vld [vmem:[#allocation27_spill] sm:$0xff]  ;;  %v6786_v22 = vld [vmem:[#allocation8 + $0x28] sm:$0xff] }
  0xb4   : > { %v829_v10 = vrot.slane %v709_v31, 2  ;;  %v6722_v46 = vadd.f32 %v6609_v56, %v6550_v12  ;;  %v6736_v12 = vadd.f32 %v6611_v16, %v6563_v17  ;;  %v6756_v17 = vadd.f32 %v6599_v62, %v6507_v57  ;;  %v8822_v57 = vld [vmem:[#allocation23_spill] sm:$0xff]  ;;  %v6792_v31 = vld [vmem:[#allocation8 + $0x20] sm:$0xff] }
  0xb5   : > { %v710_v43 = vadd.f32 %v4365_v45, %v695_v49  ;;  %v6615_v45 = vadd.f32 %v6599_v62, %v6389_v63  ;;  %v6636_v63 = vadd.f32 %v6607_v23, %v6465_v52  ;;  %v6656_v52 = vadd.f32 %v6599_v62, %v6432_v42  ;;  %v8828_v33 = vld [vmem:[#allocation31_spill] sm:$0xff] }
  0xb6   : > { %v831_v35 = vsel %vm830_vm6, %v829_v10, %v828_v15  ;;  %v6674_v42 = vadd.f32 %v6607_v23, %v6497_v29  ;;  %v6696_v29 = vadd.f32 %v6599_v62, %v6471_v38  ;;  %v6716_v38 = vadd.f32 %v6607_v23, %v6530_v53  ;;  %8816 = vst [vmem:[#allocation66_spill] sm:$0xff] %v6736_v12  ;;  %v8819_v53 = vld [vmem:[#allocation60_spill] sm:$0xff]  ;;  %v8829_v49 = vld [vmem:[#allocation19_spill] sm:$0xff] }
  0xb7   : > { %v832_v32 = vrot.slane %v710_v43, 1  ;;  %8818 = vst [vmem:[#allocation68_spill] sm:$0xff] %v6756_v17  ;;  %v6776_v50 = vadd.f32 %v6603_v36, %v8823_v61  ;;  %v6782_v40 = vadd.f32 %v6605_v39, %v8825_v4  ;;  %v719_v15 = vadd.f32 %v6599_v62, %v8829_v49  ;;  %v8830_v10 = vld [vmem:[#allocation63_spill] sm:$0xff]  ;;  %v8836_v61 = vld [vmem:[#allocation65_spill] sm:$0xff] }
  0xb8   : > { %v6798_v43 = vadd.f32 %v6607_v23, %v8830_v10  ;;  %v6815_v4 = vadd.f32 %v6611_v16, %v8836_v61  ;;  %v8839_v49 = vld [vmem:[#allocation49_spill] sm:$0xff]  ;;  %v6829_v10 = vld [vmem:[#allocation8 + $0x8] sm:$0xff] }
  0xb9   : > { %v6630_v54 = vsel %vm833_vm7, %v832_v32, %v831_v35  ;;  %8826 = vst [vmem:[#allocation23_spill] sm:$0xff] %v6782_v40  ;;  %v8832_v35 = vld [vmem:[#allocation64_spill] sm:$0xff] }
  0xba   : > { %4868 = vmatmul.mubr.f32.vlgmr.msra.gmra.mxu0 %v6630_v54  ;;  %4903 = vmatmul.mubr.f32.vlgmr.msra.gmra.mxu1 %v6630_v54  ;;  %8831 = vst [vmem:[#allocation61_spill] sm:$0xff] %v6798_v43  ;;  %v6804_v32 = vadd.f32 %v6609_v56, %v8832_v35  ;;  %8837 = vst [vmem:[#allocation27_spill] sm:$0xff] %v6815_v4  ;;  %v8840_v35 = vld [vmem:[#allocation54_spill] sm:$0xff] }
  0xbb   : > { %4941 = vmatpush3.msra.mxu1 %v6204_v1  ;;  %4906 = vmatpush3.msra.mxu0 %v6597_v8  ;;  %v6682_v1 = vadd.f32 %v6609_v56, %v6521_v60  ;;  %v6700_v60 = vadd.f32 %v6601_v51, %v6480_v58  ;;  %v6726_v58 = vld [vmem:[#allocation8 + $0x58] sm:$0xff] }
  0xbc   : > { %4942 = vmatprep.subr.mxu1 %v6209_v3  ;;  %4907 = vmatprep.subr.mxu0 %v8808_v34  ;;  %8833 = vst [vmem:[#allocation62_spill] sm:$0xff] %v6804_v32 }
  0xbd   : > { %4943 = vmatpush3.msra.mxu1 %v6209_v3  ;;  %4908 = vmatpush3.msra.mxu0 %v6648_v30  ;;  %v6712_v3 = vadd.f32 %v6605_v39, %v6504_v25  ;;  %v6742_v25 = vadd.f32 %v6632_v18, %v6573_v21  ;;  %v6762_v21 = vadd.f32 %v6601_v51, %v8819_v53  ;;  %v8834_v53 = vld [vmem:[#allocation37_spill] sm:$0xff] }
  0xbe   : > { %4944 = vmatprep.subr.mxu1 %v6217_v5  ;;  %4909 = vmatprep.subr.mxu0 %v8808_v34 }
  0xbf   : > { %4945 = vmatpush3.msra.mxu1 %v6217_v5  ;;  %4910 = vmatpush3.msra.mxu0 %v6678_v44  ;;  %v6732_v5 = vld [vmem:[#allocation8 + $0x50] sm:$0xff]  ;;  %8817 = vst [vmem:[#allocation67_spill] sm:$0xff] %v6742_v25  ;;  %8820 = vst [vmem:[#allocation60_spill] sm:$0xff] %v6762_v21 }
  0xc0   : > { %4946 = vmatprep.subr.mxu1 %v6225_v7  ;;  %4911 = vmatprep.subr.mxu0 %v8808_v34 }
  0xc1   : > { %4947 = vmatpush3.msra.mxu1 %v6225_v7  ;;  %4912 = vmatpush3.msra.mxu0 %v6708_v55  ;;  %v6746_v7 = vld [vmem:[#allocation8 + $0x48] sm:$0xff] }
  0xc2   : > { %4948 = vmatprep.subr.mxu1 %v6233_v9  ;;  %4913 = vmatprep.subr.mxu0 %v8808_v34 }
  0xc3   : > { %4949 = vmatpush3.msra.mxu1 %v6233_v9  ;;  %4914 = vmatpush3.msra.mxu0 %v6726_v58  ;;  %v6752_v9 = vld [vmem:[#allocation8 + $0x40] sm:$0xff] }
  0xc4   : > { %4950 = vmatprep.subr.mxu1 %v6241_v11  ;;  %4915 = vmatprep.subr.mxu0 %v8808_v34 }
  0xc5   : > { %4951 = vmatpush3.msra.mxu1 %v6241_v11  ;;  %4916 = vmatpush3.msra.mxu0 %v6732_v5  ;;  %v8821_v11 = vld [vmem:[#allocation22_spill] sm:$0xff] }
  0xc6   : > { %4952 = vmatprep.subr.mxu1 %v6249_v13  ;;  %4917 = vmatprep.subr.mxu0 %v8808_v34  ;;  %8824 = vst [vmem:[#allocation22_spill] sm:$0xff] %v6776_v50 }
  0xc7   : > { %4953 = vmatpush3.msra.mxu1 %v6249_v13  ;;  %4918 = vmatpush3.msra.mxu0 %v6746_v7  ;;  %v6772_v13 = vld [vmem:[#allocation8 + $0x30] sm:$0xff] }
  0xc8   : > { %4954 = vmatprep.subr.mxu1 %v8821_v11  ;;  %4919 = vmatprep.subr.mxu0 %v8808_v34 }
  0xc9   : > { %4955 = vmatpush3.msra.mxu1 %v8821_v11  ;;  %4920 = vmatpush3.msra.mxu0 %v6752_v9  ;;  %v6810_v11 = vld [vmem:[#allocation8 + $0x18] sm:$0xff] }
  0xca   : > { %4956 = vmatprep.subr.mxu1 %v8822_v57  ;;  %4921 = vmatprep.subr.mxu0 %v8808_v34 }
  0xcb   : > { %4957 = vmatpush3.msra.mxu1 %v8822_v57  ;;  %4922 = vmatpush3.msra.mxu0 %v6766_v26  ;;  %v8835_v57 = vld [vmem:[#allocation44_spill] sm:$0xff] }
  0xcc   : > { %4958 = vmatprep.subr.mxu1 %v8827_v6  ;;  %4923 = vmatprep.subr.mxu0 %v8808_v34 }
  0xcd   : > { %4959 = vmatpush3.msra.mxu1 %v8827_v6  ;;  %4924 = vmatpush3.msra.mxu0 %v6772_v13  ;;  %v6819_v6 = vld [vmem:[#allocation8 + $0x10] sm:$0xff] }
  0xce   : > { %4960 = vmatprep.subr.mxu1 %v8828_v33  ;;  %4925 = vmatprep.subr.mxu0 %v8808_v34 }
  0xcf   : > { %4961 = vmatpush3.msra.mxu1 %v8828_v33  ;;  %4926 = vmatpush3.msra.mxu0 %v6786_v22  ;;  %v6823_v33 = vadd.f32 %v6632_v18, %v6586_v41  ;;  %v8842_v41 = vld [vmem:[#allocation21_spill] sm:$0xff] }
  0xd0   : > { %4962 = vmatprep.subr.mxu1 %v8834_v53  ;;  %4927 = vmatprep.subr.mxu0 %v8808_v34  ;;  %v6840_v61 = vadd.f32 %v6603_v36, %v8842_v41  ;;  %v8845_v41 = vld [vmem:[#allocation29_spill] sm:$0xff] }
  0xd1   : > { %4963 = vmatpush3.msra.mxu1 %v8834_v53  ;;  %4928 = vmatpush3.msra.mxu0 %v6792_v31  ;;  %8838 = vst [vmem:[#allocation31_spill] sm:$0xff] %v6823_v33  ;;  %v8841_v53 = vld [vmem:[#allocation20_spill] sm:$0xff]  ;;  %v8843_v33 = vld [vmem:[#allocation57_spill] sm:$0xff]  ;;  %v6858_v4 = vadd.f32 %v6607_v23, %v8845_v41  ;;  %v8847_v41 = vld [vmem:[#allocation38_spill] sm:$0xff] }
  0xd2   : > { %4964 = vmatprep.subr.mxu1 %v8835_v57  ;;  %4972 = vmatprep.mubr.f32.mxu1 %v719_v15  ;;  %v6874_v32 = vadd.f32 %v6611_v16, %v8847_v41  ;;  %v8850_v41 = vld [vmem:[#allocation26_spill] sm:$0xff] }
  0xd3   : > { %4965 = vmatpush3.msra.mxu1 %v8835_v57  ;;  %4929 = vmatprep.subr.mxu0 %v8808_v34  ;;  %v6834_v57 = vadd.f32 %v6601_v51, %v8841_v53  ;;  %v8844_v53 = vld [vmem:[#allocation24_spill] sm:$0xff] }
  0xd4   : > { %4966 = vmatprep.subr.mxu1 %v8839_v49  ;;  %4930 = vmatpush3.msra.mxu0 %v6810_v11 }
  0xd5   : > { %4967 = vmatpush3.msra.mxu1 %v8839_v49  ;;  %4931 = vmatprep.subr.mxu0 %v8808_v34  ;;  %v6843_v49 = vld [vmem:[#allocation8] sm:$0xff] }
  0xd6   : > { %4968 = vmatprep.subr.mxu1 %v8840_v35  ;;  %4932 = vmatpush3.msra.mxu0 %v6819_v6 }
  0xd7   : > { %4969 = vmatpush3.msra.mxu1 %v8840_v35  ;;  %4933 = vmatprep.subr.mxu0 %v8808_v34  ;;  %v6852_v35 = vadd.f32 %v6605_v39, %v8844_v53 }
  0xd8   : > { %4970 = vmatprep.subr.mxu1 %v8843_v33  ;;  %4934 = vmatpush3.msra.mxu0 %v6829_v10 }
  0xd9   : > { %4971 = vmatpush3.msra.mxu1 %v8843_v33  ;;  %4935 = vmatprep.subr.mxu0 %v8808_v34  ;;  %v8846_v33 = vld [vmem:[#allocation35_spill] sm:$0xff] }
  0xda   : > { %4973 = vmatmul.mubr.f32.vlgmr.msra.gmra.mxu1 %v6834_v57  ;;  %4936 = vmatpush3.msra.mxu0 %v6843_v49  ;;  %v6868_v53 = vadd.f32 %v6609_v56, %v8846_v33 }
  0xdb   : > { %4975 = vmatprep.mubr.f32.mxu1 %v6840_v61  ;;  %4937 = vmatprep.mubr.msk.f32.mxu0 %vm5949_vm0, %v8808_v34 }
  0xdc   : > { %5068 = vmatprep.subr.mxu0 %v6597_v8  ;;  %4938 = vmatmul.mubr.f32.vlgmr.msra.gmra.mxu0 %v6630_v54  ;;  %v8848_v54 = vld [vmem:[#allocation45_spill] sm:$0xff] }
  0xdd   : > { %5069 = vmatpush3.msra.mxu0 %v6597_v8  ;;  %5100 = vmatprep.mubr.f32.mxu0 %v719_v15  ;;  %v6880_v8 = vld [vmem:[%s8619_s3 + $0x78] sm:$0xff]  ;;  %v6889_v15 = vadd.f32 %v6632_v18, %v8848_v54  ;;  %v6910_v54 = vadd.f32 %v6601_v51, %v8850_v41  ;;  %v8852_v41 = vld [vmem:[#allocation30_spill] sm:$0xff] }
  0xde   : > { %4976 = vmatmul.mubr.f32.gmra.mxu1 %v6852_v35  ;;  %5070 = vmatprep.subr.mxu0 %v6648_v30 }
  0xdf   : > { %4978 = vmatprep.mubr.f32.mxu1 %v6858_v4  ;;  %5071 = vmatpush3.msra.mxu0 %v6648_v30  ;;  %v8849_v30 = vld [vmem:[#allocation25_spill] sm:$0xff] }
  0xe0   : > { %5072 = vmatprep.subr.mxu0 %v6678_v44  ;;  %5196 = vmatprep.subr.mxu1 %v6880_v8  ;;  %v6895_v33 = vadd.f32 %v6599_v62, %v8849_v30 }
  0xe1   : > { %5073 = vmatpush3.msra.mxu0 %v6678_v44  ;;  %5197 = vmatpush3.msra.mxu1 %v6880_v8  ;;  %v6901_v44 = vld [vmem:[%s8619_s3 + $0x70] sm:$0xff] }
  0xe2   : > { %4979 = vmatmul.mubr.f32.gmra.mxu1 %v6868_v53  ;;  %5074 = vmatprep.subr.mxu0 %v6708_v55 }
  0xe3   : > { %4981 = vmatprep.mubr.f32.mxu1 %v6874_v32  ;;  %5075 = vmatpush3.msra.mxu0 %v6708_v55  ;;  %v8851_v55 = vld [vmem:[#allocation28_spill] sm:$0xff] }
  0xe4   : > { %5076 = vmatprep.subr.mxu0 %v6726_v58  ;;  %5198 = vmatprep.subr.mxu1 %v6901_v44  ;;  %v6916_v30 = vadd.f32 %v6603_v36, %v8851_v55  ;;  %v6931_v55 = vadd.f32 %v6605_v39, %v8852_v41  ;;  %v8854_v41 = vld [vmem:[#allocation41_spill] sm:$0xff] }
  0xe5   : > { %5077 = vmatpush3.msra.mxu0 %v6726_v58  ;;  %5199 = vmatpush3.msra.mxu1 %v6901_v44  ;;  %v6922_v58 = vld [vmem:[%s8619_s3 + $0x68] sm:$0xff] }
  0xe6   : > { %4982 = vmatmul.mubr.f32.gmra.mxu1 %v6889_v15  ;;  %5078 = vmatprep.subr.mxu0 %v6732_v5 }
  0xe7   : > { %4984 = vmatprep.mubr.f32.mxu1 %v6895_v33  ;;  %5079 = vmatpush3.msra.mxu0 %v6732_v5  ;;  %v8853_v5 = vld [vmem:[#allocation36_spill] sm:$0xff] }
  0xe8   : > { %5080 = vmatprep.subr.mxu0 %v6746_v7  ;;  %5200 = vmatprep.subr.mxu1 %v6922_v58  ;;  %v6937_v43 = vadd.f32 %v6607_v23, %v8853_v5  ;;  %v6952_v5 = vadd.f32 %v6609_v56, %v8854_v41  ;;  %v8856_v41 = vld [vmem:[#allocation50_spill] sm:$0xff] }
  0xe9   : > { %5081 = vmatpush3.msra.mxu0 %v6746_v7  ;;  %5201 = vmatpush3.msra.mxu1 %v6922_v58  ;;  %v6943_v7 = vld [vmem:[%s8619_s3 + $0x60] sm:$0xff] }
  0xea   : > { %4985 = vmatmul.mubr.f32.gmra.mxu1 %v6910_v54  ;;  %5082 = vmatprep.subr.mxu0 %v6752_v9 }
  0xeb   : > { %4987 = vmatprep.mubr.f32.mxu1 %v6916_v30  ;;  %5083 = vmatpush3.msra.mxu0 %v6752_v9  ;;  %v8855_v9 = vld [vmem:[#allocation46_spill] sm:$0xff] }
  0xec   : > { %5084 = vmatprep.subr.mxu0 %v6766_v26  ;;  %5202 = vmatprep.subr.mxu1 %v6943_v7  ;;  %v6958_v40 = vadd.f32 %v6611_v16, %v8855_v9  ;;  %v6973_v9 = vadd.f32 %v6632_v18, %v8856_v41  ;;  %v8858_v41 = vld [vmem:[#allocation33_spill] sm:$0xff] }
  0xed   : > { %5085 = vmatpush3.msra.mxu0 %v6766_v26  ;;  %5203 = vmatpush3.msra.mxu1 %v6943_v7  ;;  %v6964_v26 = vld [vmem:[%s8619_s3 + $0x58] sm:$0xff] }
  0xee   : > { %4988 = vmatmul.mubr.f32.gmra.mxu1 %v6931_v55  ;;  %5086 = vmatprep.subr.mxu0 %v6772_v13 }
  0xef   : > { %4990 = vmatprep.mubr.f32.mxu1 %v6937_v43  ;;  %5087 = vmatpush3.msra.mxu0 %v6772_v13  ;;  %v8857_v13 = vld [vmem:[#allocation32_spill] sm:$0xff] }
  0xf0   : > { %5088 = vmatprep.subr.mxu0 %v6786_v22  ;;  %5204 = vmatprep.subr.mxu1 %v6964_v26  ;;  %v6979_v50 = vadd.f32 %v6599_v62, %v8857_v13  ;;  %v6994_v13 = vadd.f32 %v6601_v51, %v8858_v41  ;;  %v8860_v41 = vld [vmem:[#allocation39_spill] sm:$0xff] }
  0xf1   : > { %5089 = vmatpush3.msra.mxu0 %v6786_v22  ;;  %5205 = vmatpush3.msra.mxu1 %v6964_v26  ;;  %v6985_v22 = vld [vmem:[%s8619_s3 + $0x50] sm:$0xff] }
  0xf2   : > { %4991 = vmatmul.mubr.f32.gmra.mxu1 %v6952_v5  ;;  %5090 = vmatprep.subr.mxu0 %v6792_v31 }
  0xf3   : > { %4993 = vmatprep.mubr.f32.mxu1 %v6958_v40  ;;  %5091 = vmatpush3.msra.mxu0 %v6792_v31  ;;  %v8859_v31 = vld [vmem:[#allocation34_spill] sm:$0xff] }
  0xf4   : > { %5092 = vmatprep.subr.mxu0 %v6810_v11  ;;  %5206 = vmatprep.subr.mxu1 %v6985_v22  ;;  %v7000_v21 = vadd.f32 %v6603_v36, %v8859_v31  ;;  %v7015_v31 = vadd.f32 %v6605_v39, %v8860_v41  ;;  %v1870_v41 = vld [vmem:[%s8619_s3 + $0x38] sm:$0xff] }
  0xf5   : > { %5093 = vmatpush3.msra.mxu0 %v6810_v11  ;;  %5207 = vmatpush3.msra.mxu1 %v6985_v22  ;;  %v7006_v11 = vld [vmem:[%s8619_s3 + $0x48] sm:$0xff] }
  0xf6   : > { %4994 = vmatmul.mubr.f32.gmra.mxu1 %v6973_v9  ;;  %5094 = vmatprep.subr.mxu0 %v6819_v6 }
  0xf7   : > { %4996 = vmatprep.mubr.f32.mxu1 %v6979_v50  ;;  %5095 = vmatpush3.msra.mxu0 %v6819_v6  ;;  %v8861_v6 = vld [vmem:[#allocation47_spill] sm:$0xff] }
  0xf8   : > { %5096 = vmatprep.subr.mxu0 %v6829_v10  ;;  %5208 = vmatprep.subr.mxu1 %v7006_v11  ;;  %v7021_v17 = vadd.f32 %v6607_v23, %v8861_v6  ;;  %v8862_v6 = vld [vmem:[#allocation51_spill] sm:$0xff] }
  0xf9   : > { %5097 = vmatpush3.msra.mxu0 %v6829_v10  ;;  %5209 = vmatpush3.msra.mxu1 %v7006_v11  ;;  %v1871_v10 = vld [vmem:[%s8619_s3 + $0x40] sm:$0xff]  ;;  %v7035_v25 = vadd.f32 %v6609_v56, %v8862_v6 }
  0xfa   : > { %4997 = vmatmul.mubr.f32.gmra.mxu1 %v6994_v13  ;;  %5098 = vmatprep.subr.mxu0 %v6843_v49 }
  0xfb   : > { %4999 = vmatprep.mubr.f32.mxu1 %v7000_v21  ;;  %5099 = vmatpush3.msra.mxu0 %v6843_v49  ;;  %v8863_v49 = vld [vmem:[#allocation52_spill] sm:$0xff] }
  0xfc   : > { %5101 = vmatmul.mubr.f32.vlgmr.msra.gmra.mxu0 %v6834_v57  ;;  %5210 = vmatprep.subr.mxu1 %v1871_v10  ;;  %v7040_v57 = vadd.f32 %v6611_v16, %v8863_v49  ;;  %v8865_v49 = vld [vmem:[#allocation40_spill] sm:$0xff] }
  0xfd   : > { %5103 = vmatprep.mubr.f32.mxu0 %v6840_v61  ;;  %5211 = vmatpush3.msra.mxu1 %v1871_v10  ;;  %v8864_v61 = vld [vmem:[#allocation55_spill] sm:$0xff]  ;;  %v7055_v12 = vadd.f32 %v6599_v62, %v8865_v49 }
  0xfe   : > { %5000 = vmatmul.mubr.f32.gmra.mxu1 %v7015_v31  ;;  %5212 = vmatprep.subr.mxu1 %v1870_v41  ;;  %v7049_v6 = vadd.f32 %v6632_v18, %v8864_v61  ;;  %v1869_v62 = vld [vmem:[%s8619_s3 + $0x30] sm:$0xff] }
  0xff   : > { %5002 = vmatprep.mubr.f32.mxu1 %v7021_v17  ;;  %5213 = vmatpush3.msra.mxu1 %v1870_v41 }
 0x100   : > { %5104 = vmatmul.mubr.f32.gmra.mxu0 %v6852_v35  ;;  %5324 = vmatprep.subr.mxu0 %v8808_v34 }
 0x101   : > { %5106 = vmatprep.mubr.f32.mxu0 %v6858_v4  ;;  %5325 = vmatpush3.msra.mxu0 %v6880_v8  ;;  %v8866_v4 = vld [vmem:[#allocation42_spill] sm:$0xff] }
 0x102   : > { %5003 = vmatmul.mubr.f32.gmra.mxu1 %v7035_v25  ;;  %5326 = vmatprep.subr.mxu0 %v8808_v34  ;;  %v7065_v35 = vadd.f32 %v6601_v51, %v8866_v4  ;;  %v8868_v51 = vld [vmem:[#allocation48_spill] sm:$0xff] }
 0x103   : > { %5005 = vmatprep.mubr.f32.mxu1 %v7040_v57  ;;  %5327 = vmatpush3.msra.mxu0 %v6901_v44 }
 0x104   : > { %5107 = vmatmul.mubr.f32.gmra.mxu0 %v6868_v53  ;;  %5328 = vmatprep.subr.mxu0 %v8808_v34  ;;  %v8867_v53 = vld [vmem:[#allocation43_spill] sm:$0xff] }
 0x105   : > { %5109 = vmatprep.mubr.f32.mxu0 %v6874_v32  ;;  %5329 = vmatpush3.msra.mxu0 %v6922_v58  ;;  %v7074_v8 = vadd.f32 %v6603_v36, %v8867_v53  ;;  %v7082_v32 = vadd.f32 %v6605_v39, %v8868_v51  ;;  %v8869_v36 = vld [vmem:[#allocation53_spill] sm:$0xff]  ;;  %v8870_v39 = vld [vmem:[#allocation56_spill] sm:$0xff] }
 0x106   : > { %5006 = vmatmul.mubr.f32.gmra.mxu1 %v7049_v6  ;;  %5330 = vmatprep.subr.mxu0 %v8808_v34  ;;  %v7088_v44 = vadd.f32 %v6607_v23, %v8869_v36  ;;  %v8871_v23 = vld [vmem:[#allocation58_spill] sm:$0xff] }
 0x107   : > { %5008 = vmatprep.mubr.f32.mxu1 %v7055_v12  ;;  %5214 = vmatprep.subr.mxu1 %v1869_v62 }
 0x108   : > { %5110 = vmatmul.mubr.f32.gmra.mxu0 %v6889_v15  ;;  %5215 = vmatpush3.msra.mxu1 %v1869_v62  ;;  %v7098_v15 = vadd.f32 %v6609_v56, %v8870_v39  ;;  %v8872_v56 = vld [vmem:[#allocation59_spill] sm:$0xff] }
 0x109   : > { %5112 = vmatprep.mubr.f32.mxu0 %v6895_v33  ;;  %5331 = vmatpush3.msra.mxu0 %v6943_v7  ;;  %v7104_v33 = vadd.f32 %v6611_v16, %v8871_v23  ;;  %v1867_v16 = vld [vmem:[%s8619_s3 + $0x20] sm:$0xff] }
 0x10a   : > { %5009 = vmatmul.mubr.f32.gmra.mxu1 %v7065_v35  ;;  %5332 = vmatprep.subr.mxu0 %v8808_v34 }
 0x10b   : > { %5011 = vmatprep.mubr.f32.mxu1 %v7074_v8  ;;  %5333 = vmatpush3.msra.mxu0 %v6964_v26 }
 0x10c   : > { %5113 = vmatmul.mubr.f32.gmra.mxu0 %v6910_v54  ;;  %5334 = vmatprep.subr.mxu0 %v8808_v34  ;;  %v1868_v54 = vld [vmem:[%s8619_s3 + $0x28] sm:$0xff] }
 0x10d   : > { %5115 = vmatprep.mubr.f32.mxu0 %v6916_v30  ;;  %5335 = vmatpush3.msra.mxu0 %v6985_v22  ;;  %v7116_v30 = vadd.f32 %v6632_v18, %v8872_v56  ;;  %v1866_v18 = vld [vmem:[%s8619_s3 + $0x18] sm:$0xff] }
 0x10e   : > { %5012 = vmatmul.mubr.f32.gmra.mxu1 %v7082_v32  ;;  %5336 = vmatprep.subr.mxu0 %v8808_v34 }
 0x10f   : > { %5014 = vmatprep.mubr.f32.mxu1 %v7088_v44  ;;  %5337 = vmatpush3.msra.mxu0 %v7006_v11 }
 0x110   : > { %5116 = vmatmul.mubr.f32.gmra.mxu0 %v6931_v55  ;;  %5338 = vmatprep.subr.mxu0 %v8808_v34 }
 0x111   : > { %5118 = vmatprep.mubr.f32.mxu0 %v6937_v43  ;;  %5216 = vmatprep.subr.mxu1 %v1868_v54 }
 0x112   : > { %5015 = vmatmul.mubr.f32.gmra.mxu1 %v7098_v15  ;;  %5339 = vmatpush3.msra.mxu0 %v1871_v10 }
 0x113   : > { %5017 = vmatprep.mubr.f32.mxu1 %v7104_v33  ;;  %5217 = vmatpush3.msra.mxu1 %v1868_v54 }
 0x114   : > { %5119 = vmatmul.mubr.f32.gmra.mxu0 %v6952_v5  ;;  %5340 = vmatprep.subr.mxu0 %v8808_v34 }
 0x115   : > { %5121 = vmatprep.mubr.f32.mxu0 %v6958_v40  ;;  %5341 = vmatpush3.msra.mxu0 %v1870_v41  ;;  %v1863_v40 = vld [vmem:[%s8619_s3] sm:$0xff] }
 0x116   : > { %5018 = vmatmul.mubr.f32.gmra.mxu1 %v7116_v30  ;;  %5342 = vmatprep.subr.mxu0 %v8808_v34 }
 0x117   : > { %5020 = vmatprep.mubr.f32.mxu1 %v6615_v45  ;;  %5343 = vmatpush3.msra.mxu0 %v1869_v62 }
 0x118   : > { %5122 = vmatmul.mubr.f32.gmra.mxu0 %v6973_v9  ;;  %5344 = vmatprep.subr.mxu0 %v8808_v34 }
 0x119   : > { %5124 = vmatprep.mubr.f32.mxu0 %v6979_v50  ;;  %5345 = vmatpush3.msra.mxu0 %v1868_v54  ;;  %v1865_v50 = vld [vmem:[%s8619_s3 + $0x10] sm:$0xff] }
 0x11a   : > { %5021 = vmatmul.mubr.f32.gmra.mxu1 %v6619_v19  ;;  %5346 = vmatprep.subr.mxu0 %v8808_v34 }
 0x11b   : > { %5023 = vmatprep.mubr.f32.mxu1 %v6623_v27  ;;  %5218 = vmatprep.subr.mxu1 %v1867_v16 }
 0x11c   : > { %5125 = vmatmul.mubr.f32.gmra.mxu0 %v6994_v13  ;;  %5219 = vmatpush3.msra.mxu1 %v1867_v16 }
 0x11d   : > { %5127 = vmatprep.mubr.f32.mxu0 %v7000_v21  ;;  %5347 = vmatpush3.msra.mxu0 %v1867_v16  ;;  %v1864_v21 = vld [vmem:[%s8619_s3 + $0x8] sm:$0xff] }
 0x11e   : > { %5024 = vmatmul.mubr.f32.gmra.mxu1 %v6627_v20  ;;  %5348 = vmatprep.subr.mxu0 %v8808_v34 }
 0x11f   : > { %5026 = vmatprep.mubr.f32.mxu1 %v6636_v63  ;;  %5349 = vmatpush3.msra.mxu0 %v1866_v18 }
 0x120   : > { %5128 = vmatmul.mubr.f32.gmra.mxu0 %v7015_v31  ;;  %5350 = vmatprep.subr.mxu0 %v8808_v34 }
 0x121   : > { %5130 = vmatprep.mubr.f32.mxu0 %v7021_v17  ;;  %5351 = vmatpush3.msra.mxu0 %v1865_v50 }
 0x122   : > { %5027 = vmatmul.mubr.f32.gmra.mxu1 %v6640_v2  ;;  %5352 = vmatprep.subr.mxu0 %v8808_v34 }
 0x123   : > { %5029 = vmatprep.mubr.f32.mxu1 %v6644_v14  ;;  %5353 = vmatpush3.msra.mxu0 %v1864_v21 }
 0x124   : > { %5131 = vmatmul.mubr.f32.gmra.mxu0 %v7035_v25  ;;  %5354 = vmatprep.subr.mxu0 %v8808_v34 }
 0x125   : > { %5133 = vmatprep.mubr.f32.mxu0 %v7040_v57  ;;  %5220 = vmatprep.subr.mxu1 %v1866_v18 }
 0x126   : > { %5030 = vmatmul.mubr.f32.gmra.mxu1 %v6652_v24  ;;  %5355 = vmatpush3.msra.mxu0 %v1863_v40 }
 0x127   : > { %5032 = vmatprep.mubr.f32.mxu1 %v6656_v52  ;;  %5221 = vmatpush3.msra.mxu1 %v1866_v18 }
 0x128   : > { %5134 = vmatmul.mubr.f32.gmra.mxu0 %v7049_v6  ;;  %5222 = vmatprep.subr.mxu1 %v1865_v50 }
 0x129   : > { %5136 = vmatprep.mubr.f32.mxu0 %v7055_v12  ;;  %5223 = vmatpush3.msra.mxu1 %v1865_v50  ;;  %v8873_v12 = vld [vmem:[#allocation66_spill] sm:$0xff] }
 0x12a   : > { %5033 = vmatmul.mubr.f32.gmra.mxu1 %v6660_v59  ;;  %5224 = vmatprep.subr.mxu1 %v1864_v21 }
 0x12b   : > { %5035 = vmatprep.mubr.f32.mxu1 %v6666_v0  ;;  %5225 = vmatpush3.msra.mxu1 %v1864_v21 }
 0x12c   : > { %5137 = vmatmul.mubr.f32.gmra.mxu0 %v7065_v35  ;;  %5226 = vmatprep.subr.mxu1 %v1863_v40 }
 0x12d   : > { %5139 = vmatprep.mubr.f32.mxu0 %v7074_v8  ;;  %5227 = vmatpush3.msra.mxu1 %v1863_v40 }
 0x12e   : > { %5036 = vmatmul.mubr.f32.gmra.mxu1 %v6670_v47  ;;  %5457 = vmatprep.subr.mxu1 %v8808_v34 }
 0x12f   : > { %5038 = vmatprep.mubr.f32.mxu1 %v6674_v42 }
 0x130   : > { %5140 = vmatmul.mubr.f32.gmra.mxu0 %v7082_v32 }
 0x131   : > { %5142 = vmatprep.mubr.f32.mxu0 %v7088_v44 }
 0x132   : > { %5039 = vmatmul.mubr.f32.gmra.mxu1 %v6682_v1 }
 0x133   : > { %5041 = vmatprep.mubr.f32.mxu1 %v6686_v48 }
 0x134   : > { %5143 = vmatmul.mubr.f32.gmra.mxu0 %v7098_v15 }
 0x135   : > { %5145 = vmatprep.mubr.f32.mxu0 %v7104_v33 }
 0x136   : > { %5042 = vmatmul.mubr.f32.gmra.mxu1 %v6690_v37 }
 0x137   : > { %5044 = vmatprep.mubr.f32.mxu1 %v6696_v29 }
 0x138   : > { %5146 = vmatmul.mubr.f32.gmra.mxu0 %v7116_v30 }
 0x139   : > { %5148 = vmatprep.mubr.f32.mxu0 %v6615_v45  ;;  %v8874_v45 = vld [vmem:[#allocation67_spill] sm:$0xff] }
 0x13a   : > { %5045 = vmatmul.mubr.f32.gmra.mxu1 %v6700_v60 }
 0x13b   : > { %5047 = vmatprep.mubr.f32.mxu1 %v6704_v28 }
 0x13c   : > { %5149 = vmatmul.mubr.f32.gmra.mxu0 %v6619_v19  ;;  %v8875_v19 = vld [vmem:[#allocation68_spill] sm:$0xff] }
 0x13d   : > { %5151 = vmatprep.mubr.f32.mxu0 %v6623_v27  ;;  %v8876_v27 = vld [vmem:[#allocation60_spill] sm:$0xff] }
 0x13e   : > { %5048 = vmatmul.mubr.f32.gmra.mxu1 %v6712_v3 }
 0x13f   : > { %5050 = vmatprep.mubr.f32.mxu1 %v6716_v38 }
 0x140   : > { %5152 = vmatmul.mubr.f32.gmra.mxu0 %v6627_v20  ;;  %v8877_v20 = vld [vmem:[#allocation22_spill] sm:$0xff] }
 0x141   : > { %5154 = vmatprep.mubr.f32.mxu0 %v6636_v63  ;;  %v8878_v63 = vld [vmem:[#allocation23_spill] sm:$0xff] }
 0x142   : > { %5051 = vmatmul.mubr.f32.gmra.mxu1 %v6722_v46 }
 0x143   : > { %5053 = vmatprep.mubr.f32.mxu1 %v8873_v12 }
 0x144   : > { %5155 = vmatmul.mubr.f32.gmra.mxu0 %v6640_v2  ;;  %v8879_v2 = vld [vmem:[#allocation61_spill] sm:$0xff] }
 0x145   : > { %5157 = vmatprep.mubr.f32.mxu0 %v6644_v14  ;;  %v8880_v14 = vld [vmem:[#allocation62_spill] sm:$0xff] }
 0x146   : > { %5054 = vmatmul.mubr.f32.gmra.mxu1 %v8874_v45 }
 0x147   : > { %5056 = vmatprep.mubr.f32.mxu1 %v8875_v19 }
 0x148   : > { %5158 = vmatmul.mubr.f32.gmra.mxu0 %v6652_v24  ;;  %v8881_v24 = vld [vmem:[#allocation27_spill] sm:$0xff] }
 0x149   : > { %5160 = vmatprep.mubr.f32.mxu0 %v6656_v52  ;;  %v8882_v52 = vld [vmem:[#allocation31_spill] sm:$0xff] }
 0x14a   : > { %5057 = vmatmul.mubr.f32.gmra.mxu1 %v8876_v27 }
 0x14b   : > { %5059 = vmatprep.mubr.f32.mxu1 %v8877_v20 }
 0x14c   : > { %5161 = vmatmul.mubr.f32.gmra.mxu0 %v6660_v59  ;;  %v5950_v59 = vmov 1966171168  }
 0x14d   : > { %5163 = vmatprep.mubr.f32.mxu0 %v6666_v0  ;;  %v1883_v0 = vunpack.c.l.s4 %v5950_v59 }
 0x14e   : > { %5060 = vmatmul.mubr.f32.gmra.mxu1 %v8878_v63 }
 0x14f   : > { %5062 = vmatprep.mubr.f32.mxu1 %v8879_v2 }
 0x150   : > { %5164 = vmatmul.mubr.f32.gmra.mxu0 %v6670_v47  ;;  %v1885_v47 = vlaneseq }
 0x151   : > { %5166 = vmatprep.mubr.f32.mxu0 %v6674_v42  ;;  %v4366_v42 = vld [vmem:[%s8622_s6] ss:$0 sm:$0xff] }
 0x152   : > { %5063 = vmatmul.mubr.f32.gmra.mxu1 %v8880_v14 }
 0x153   : > { %5065 = vmatprep.mubr.f32.mxu1 %v8881_v24 }
 0x154   : > { %5167 = vmatmul.mubr.f32.gmra.mxu0 %v6682_v1 }
 0x155   : > { %5169 = vmatprep.mubr.f32.mxu0 %v6686_v48 }
 0x156   : > { %5066 = vmatmul.mubr.f32.gmra.mxu1 %v8882_v52 }
 0x158   : > { %5170 = vmatmul.mubr.f32.gmra.mxu0 %v6690_v37  ;;  %v7235_v37 = vld [vmem:[%s8624_s8] ss:$0 sm:$0xff] }
 0x159   : > { %5172 = vmatprep.mubr.f32.mxu0 %v6696_v29 }
 0x15c   : > { %5173 = vmatmul.mubr.f32.gmra.mxu0 %v6700_v60  ;;  %v1884_v60 = vunpack.c.0.s8 %v1883_v0 }
 0x15d   : > { %5175 = vmatprep.mubr.f32.mxu0 %v6704_v28  ;;  %v1886_v28 = vshrl.u32 %v1885_v47, 7 }
 0x15f   : > { %v1887_v43 = vsub.s32 %v1884_v60, %v1886_v28  ;;  %v7244_v13 = vsub.s32 0, %v1886_v28 }
 0x160   : > { %5176 = vmatmul.mubr.f32.gmra.mxu0 %v6712_v3 }
 0x161   : > { %5178 = vmatprep.mubr.f32.mxu0 %v6716_v38 }
 0x164   : > { %5179 = vmatmul.mubr.f32.gmra.mxu0 %v6722_v46 }
 0x165   : > { %5181 = vmatprep.mubr.f32.mxu0 %v8873_v12 }
 0x168   : > { %5182 = vmatmul.mubr.f32.gmra.mxu0 %v8874_v45 }
 0x169   : > { %5184 = vmatprep.mubr.f32.mxu0 %v8875_v19 }
 0x16c   : > { %5185 = vmatmul.mubr.f32.gmra.mxu0 %v8876_v27 }
 0x16d   : > { %5187 = vmatprep.mubr.f32.mxu0 %v8877_v20 }
 0x170   : > { %5188 = vmatmul.mubr.f32.gmra.mxu0 %v8878_v63 }
 0x171   : > { %5190 = vmatprep.mubr.f32.mxu0 %v8879_v2 }
 0x174   : > { %5191 = vmatmul.mubr.f32.gmra.mxu0 %v8880_v14 }
 0x175   : > { %5193 = vmatprep.mubr.f32.mxu0 %v8881_v24 }
 0x178   : > { %5194 = vmatmul.mubr.f32.gmra.mxu0 %v8882_v52 }
 0x179   : > { %5356 = vmatprep.mubr.msk.f32.mxu0 %vm5949_vm0, %v8808_v34 }
 0x17a   : > { %v902_v1 = vpop.f32.mrf.mxu0  ;;  %v996_v48 = vpop.f32.mrf.mxu1 }
 0x17b   : > { %v903_v29 = vadd.f32 %v4366_v42, %v902_v1  ;;  %v997_v25 = vadd.f32 %v7235_v37, %v996_v48 }
 0x17c   : > { %v4904_v3 = vpop.f32.mrf.mxu1  ;;  %v4869_v38 = vpop.f32.mrf.mxu0 }
 0x17d   : > { %v906_v46 = vmul.f32 0.17677669, %v903_v29 }
 0x17f   : > { %v1881_v17 = vcombine.high %v906_v46, %v906_v46  ;;  %v2419_v58 = vmul.f32 %v997_v25, %v906_v46  ;;  %v1888_v9 = vrot.slane %v906_v46, %v1887_v43 }
 0x181   : > { %v1895_v55 = vrot.slane %v1881_v17, %v1887_v43  ;;  %5357 = vmatmul.mubr.f32.vlgmr.msra.gmra.mxu0 %v2419_v58  ;;  %v7242_v22 = vrot.slane %v1888_v9, %v1887_v43  ;;  %v1896_v15 = vcombine.high %v1888_v9, %v1888_v9 }
 0x183   : > { %v1897_v7 = vcombine.high %v1895_v55, %v1895_v55  ;;  %v7238_v5 = vrot.slane %v1895_v55, %v1887_v43  ;;  %v1933_v31 = vrot.slane %v7242_v22, %v7244_v13  ;;  %v7257_v18 = vrot.slane %v1896_v15, %v1887_v43 }
 0x184   : > { %v1926_v25 = vcombine.high %v7242_v22, %v7242_v22 }
 0x185   : > { %v7240_v26 = vrot.slane %v1897_v7, %v1887_v43  ;;  %v1937_v27 = vrot.slane %v7257_v18, %v7244_v13 }
 0x19a   : > { %v4974_v11 = vpop.f32.mrf.mxu1 }
 0x19b   : > { %v1165_v10 = vadd.f32 %v4974_v11, %v7235_v37 }
 0x19c   : > { %v1159_v41 = vpop.f32.mrf.mxu1  ;;  %v7249_v57 = vpop.f32.mrf.mxu0 }
 0x19d   : > { %8883 = vst [vmem:[#allocation19_spill] sm:$0xff] %v7249_v57  ;;  %v1160_v61 = vadd.f32 %v7235_v37, %v1159_v41  ;;  %v1971_v35 = vmul.f32 %v1933_v31, %v1165_v10 }
 0x19e   : > { %v4977_v6 = vpop.f32.mrf.mxu1  ;;  %v4939_v49 = vpop.f32.mrf.mxu0 }
 0x19f   : > { %v1970_v4 = vmul.f32 %v1933_v31, %v1160_v61  ;;  %v1175_v62 = vadd.f32 %v4977_v6, %v7235_v37 }
 0x1a0   : > { %v1169_v53 = vpop.f32.mrf.mxu1 }
 0x1a1   : > { %v1170_v8 = vadd.f32 %v7235_v37, %v1169_v53  ;;  %5228 = vmatprep.mubr.f32.mxu1 %v1970_v4  ;;  %v1973_v36 = vmul.f32 %v1933_v31, %v1175_v62 }
 0x1a2   : > { %v4980_v51 = vpop.f32.mrf.mxu1  ;;  %5229 = vmatmul.mubr.f32.vlgmr.msra.gmra.mxu1 %v1971_v35 }
 0x1a3   : > { %v1972_v32 = vmul.f32 %v1933_v31, %v1170_v8  ;;  %v1185_v44 = vadd.f32 %v4980_v51, %v7235_v37 }
 0x1a4   : > { %v1179_v39 = vpop.f32.mrf.mxu1 }
 0x1a5   : > { %v1180_v23 = vadd.f32 %v7235_v37, %v1179_v39  ;;  %5231 = vmatprep.mubr.f32.mxu1 %v1972_v32  ;;  %v1975_v56 = vmul.f32 %v1933_v31, %v1185_v44 }
 0x1a6   : > { %v4983_v33 = vpop.f32.mrf.mxu1  ;;  %5232 = vmatmul.mubr.f32.gmra.mxu1 %v1973_v36 }
 0x1a7   : > { %v1974_v54 = vmul.f32 %v1933_v31, %v1180_v23  ;;  %v1195_v30 = vadd.f32 %v4983_v33, %v7235_v37 }
 0x1a8   : > { %v1189_v16 = vpop.f32.mrf.mxu1 }
 0x1a9   : > { %v1190_v50 = vadd.f32 %v7235_v37, %v1189_v16  ;;  %5234 = vmatprep.mubr.f32.mxu1 %v1974_v54  ;;  %v1977_v12 = vmul.f32 %v1933_v31, %v1195_v30 }
 0x1aa   : > { %v4986_v21 = vpop.f32.mrf.mxu1  ;;  %5235 = vmatmul.mubr.f32.gmra.mxu1 %v1975_v56 }
 0x1ab   : > { %v1976_v40 = vmul.f32 %v1933_v31, %v1190_v50  ;;  %v1205_v45 = vadd.f32 %v4986_v21, %v7235_v37  ;;  %v1941_v31 = vrot.slane %v1926_v25, %v7244_v13  ;;  %v1928_v21 = vcombine.high %v7257_v18, %v7257_v18 }
 0x1ac   : > { %v1199_v19 = vpop.f32.mrf.mxu1 }
 0x1ad   : > { %v1200_v20 = vadd.f32 %v7235_v37, %v1199_v19  ;;  %5237 = vmatprep.mubr.f32.mxu1 %v1976_v40  ;;  %v1979_v14 = vmul.f32 %v1937_v27, %v1205_v45 }
 0x1ae   : > { %v4989_v63 = vpop.f32.mrf.mxu1  ;;  %5238 = vmatmul.mubr.f32.gmra.mxu1 %v1977_v12 }
 0x1af   : > { %v1978_v2 = vmul.f32 %v1937_v27, %v1200_v20  ;;  %v1215_v24 = vadd.f32 %v4989_v63, %v7235_v37 }
 0x1b0   : > { %v1209_v52 = vpop.f32.mrf.mxu1 }
 0x1b1   : > { %v1210_v59 = vadd.f32 %v7235_v37, %v1209_v52  ;;  %5240 = vmatprep.mubr.f32.mxu1 %v1978_v2  ;;  %v1981_v42 = vmul.f32 %v1937_v27, %v1215_v24 }
 0x1b2   : > { %v4992_v0 = vpop.f32.mrf.mxu1  ;;  %5241 = vmatmul.mubr.f32.gmra.mxu1 %v1979_v14  ;;  %v1945_v14 = vrot.slane %v1928_v21, %v7244_v13 }
 0x1b3   : > { %v1980_v47 = vmul.f32 %v1937_v27, %v1210_v59  ;;  %v1225_v1 = vadd.f32 %v4992_v0, %v7235_v37 }
 0x1b4   : > { %v1219_v48 = vpop.f32.mrf.mxu1 }
 0x1b5   : > { %v1220_v29 = vadd.f32 %v7235_v37, %v1219_v48  ;;  %5243 = vmatprep.mubr.f32.mxu1 %v1980_v47  ;;  %v1983_v3 = vmul.f32 %v1937_v27, %v1225_v1 }
 0x1b6   : > { %v4995_v60 = vpop.f32.mrf.mxu1  ;;  %5244 = vmatmul.mubr.f32.gmra.mxu1 %v1981_v42 }
 0x1b7   : > { %v1982_v28 = vmul.f32 %v1937_v27, %v1220_v29  ;;  %v1235_v38 = vadd.f32 %v4995_v60, %v7235_v37 }
 0x1b8   : > { %v1229_v46 = vpop.f32.mrf.mxu1 }
 0x1b9   : > { %v1230_v17 = vadd.f32 %v7235_v37, %v1229_v46  ;;  %5246 = vmatprep.mubr.f32.mxu1 %v1982_v28  ;;  %v1985_v55 = vmul.f32 %v1937_v27, %v1235_v38 }
 0x1ba   : > { %v4998_v43 = vpop.f32.mrf.mxu1  ;;  %5247 = vmatmul.mubr.f32.gmra.mxu1 %v1983_v3 }
 0x1bb   : > { %v1984_v58 = vmul.f32 %v1937_v27, %v1230_v17  ;;  %v1245_v7 = vadd.f32 %v4998_v43, %v7235_v37 }
 0x1bc   : > { %v1239_v9 = vpop.f32.mrf.mxu1  ;;  %v7273_v11 = vpop.f32.mrf.mxu0 }
 0x1bd   : > { %8884 = vst [vmem:[#allocation63_spill] sm:$0xff] %v7273_v11  ;;  %v1240_v10 = vadd.f32 %v7235_v37, %v1239_v9  ;;  %5249 = vmatprep.mubr.f32.mxu1 %v1984_v58  ;;  %v1987_v6 = vmul.f32 %v1941_v31, %v1245_v7 }
 0x1be   : > { %v5001_v41 = vpop.f32.mrf.mxu1  ;;  %5250 = vmatmul.mubr.f32.gmra.mxu1 %v1985_v55  ;;  %v7277_v22 = vpop.f32.mrf.mxu0 }
 0x1bf   : > { %8885 = vst [vmem:[#allocation64_spill] sm:$0xff] %v7277_v22  ;;  %v1986_v61 = vmul.f32 %v1941_v31, %v1240_v10  ;;  %v1255_v49 = vadd.f32 %v5001_v41, %v7235_v37 }
 0x1c0   : > { %v1249_v4 = vpop.f32.mrf.mxu1  ;;  %v7280_v35 = vpop.f32.mrf.mxu0 }
 0x1c1   : > { %8886 = vst [vmem:[#allocation37_spill] sm:$0xff] %v7280_v35  ;;  %v1250_v62 = vadd.f32 %v7235_v37, %v1249_v4  ;;  %5252 = vmatprep.mubr.f32.mxu1 %v1986_v61  ;;  %v1989_v32 = vmul.f32 %v1941_v31, %v1255_v49 }
 0x1c2   : > { %v5004_v53 = vpop.f32.mrf.mxu1  ;;  %5253 = vmatmul.mubr.f32.gmra.mxu1 %v1987_v6  ;;  %v7283_v8 = vpop.f32.mrf.mxu0 }
 0x1c3   : > { %8887 = vst [vmem:[#allocation44_spill] sm:$0xff] %v7283_v8  ;;  %v1988_v51 = vmul.f32 %v1941_v31, %v1250_v62  ;;  %v1265_v36 = vadd.f32 %v5004_v53, %v7235_v37 }
 0x1c4   : > { %v1259_v44 = vpop.f32.mrf.mxu1  ;;  %v7286_v39 = vpop.f32.mrf.mxu0 }
 0x1c5   : > { %8888 = vst [vmem:[#allocation65_spill] sm:$0xff] %v7286_v39  ;;  %v1260_v15 = vadd.f32 %v7235_v37, %v1259_v44  ;;  %5255 = vmatprep.mubr.f32.mxu1 %v1988_v51  ;;  %v1991_v56 = vmul.f32 %v1941_v31, %v1265_v36 }
 0x1c6   : > { %v5007_v23 = vpop.f32.mrf.mxu1  ;;  %5256 = vmatmul.mubr.f32.gmra.mxu1 %v1989_v32  ;;  %v7289_v33 = vpop.f32.mrf.mxu0  ;;  %v1949_v32 = vrot.slane %v7238_v5, %v7244_v13 }
 0x1c7   : > { %8889 = vst [vmem:[#allocation49_spill] sm:$0xff] %v7289_v33  ;;  %v1990_v54 = vmul.f32 %v1941_v31, %v1260_v15  ;;  %v1275_v30 = vadd.f32 %v5007_v23, %v7235_v37 }
 0x1c8   : > { %v1269_v16 = vpop.f32.mrf.mxu1  ;;  %v7292_v50 = vpop.f32.mrf.mxu0 }
 0x1c9   : > { %8890 = vst [vmem:[#allocation54_spill] sm:$0xff] %v7292_v50  ;;  %v1270_v40 = vadd.f32 %v7235_v37, %v1269_v16  ;;  %5258 = vmatprep.mubr.f32.mxu1 %v1990_v54  ;;  %v1993_v27 = vmul.f32 %v1941_v31, %v1275_v30 }
 0x1ca   : > { %v5010_v12 = vpop.f32.mrf.mxu1  ;;  %5259 = vmatmul.mubr.f32.gmra.mxu1 %v1991_v56  ;;  %v7297_v45 = vpop.f32.mrf.mxu0 }
 0x1cb   : > { %8891 = vst [vmem:[#allocation20_spill] sm:$0xff] %v7297_v45  ;;  %v1992_v19 = vmul.f32 %v1941_v31, %v1270_v40  ;;  %v1285_v20 = vadd.f32 %v5010_v12, %v7235_v37 }
 0x1cc   : > { %v1279_v63 = vpop.f32.mrf.mxu1  ;;  %v7300_v2 = vpop.f32.mrf.mxu0 }
 0x1cd   : > { %8892 = vst [vmem:[#allocation21_spill] sm:$0xff] %v7300_v2  ;;  %v1280_v24 = vadd.f32 %v7235_v37, %v1279_v63  ;;  %5261 = vmatprep.mubr.f32.mxu1 %v1992_v19  ;;  %v1995_v0 = vmul.f32 %v1945_v14, %v1285_v20 }
 0x1ce   : > { %v5013_v18 = vpop.f32.mrf.mxu1  ;;  %5262 = vmatmul.mubr.f32.gmra.mxu1 %v1993_v27  ;;  %v7304_v52 = vpop.f32.mrf.mxu0 }
 0x1cf   : > { %8893 = vst [vmem:[#allocation57_spill] sm:$0xff] %v7304_v52  ;;  %v1994_v59 = vmul.f32 %v1945_v14, %v1280_v24  ;;  %v1295_v47 = vadd.f32 %v5013_v18, %v7235_v37 }
 0x1d0   : > { %v1289_v42 = vpop.f32.mrf.mxu1  ;;  %v7307_v1 = vpop.f32.mrf.mxu0 }
 0x1d1   : > { %8894 = vst [vmem:[#allocation24_spill] sm:$0xff] %v7307_v1  ;;  %v1290_v48 = vadd.f32 %v7235_v37, %v1289_v42  ;;  %5264 = vmatprep.mubr.f32.mxu1 %v1994_v59  ;;  %v1997_v3 = vmul.f32 %v1945_v14, %v1295_v47 }
 0x1d2   : > { %v5016_v29 = vpop.f32.mrf.mxu1  ;;  %5265 = vmatmul.mubr.f32.gmra.mxu1 %v1995_v0  ;;  %v7310_v60 = vpop.f32.mrf.mxu0 }
 0x1d3   : > { %8895 = vst [vmem:[#allocation29_spill] sm:$0xff] %v7310_v60  ;;  %v1996_v28 = vmul.f32 %v1945_v14, %v1290_v48  ;;  %v1305_v38 = vadd.f32 %v5016_v29, %v7235_v37 }
 0x1d4   : > { %v1299_v46 = vpop.f32.mrf.mxu1  ;;  %v7313_v25 = vpop.f32.mrf.mxu0 }
 0x1d5   : > { %8896 = vst [vmem:[#allocation35_spill] sm:$0xff] %v7313_v25  ;;  %v1300_v17 = vadd.f32 %v7235_v37, %v1299_v46  ;;  %5267 = vmatprep.mubr.f32.mxu1 %v1996_v28  ;;  %v1999_v7 = vmul.f32 %v1945_v14, %v1305_v38 }
 0x1d6   : > { %v5019_v43 = vpop.f32.mrf.mxu1  ;;  %5268 = vmatmul.mubr.f32.gmra.mxu1 %v1997_v3  ;;  %v7316_v58 = vpop.f32.mrf.mxu0 }
 0x1d7   : > { %8897 = vst [vmem:[#allocation38_spill] sm:$0xff] %v7316_v58  ;;  %v1998_v55 = vmul.f32 %v1945_v14, %v1300_v17  ;;  %v1315_v9 = vadd.f32 %v5019_v43, %v7235_v37 }
 0x1d8   : > { %v1309_v31 = vpop.f32.mrf.mxu1  ;;  %v7319_v10 = vpop.f32.mrf.mxu0 }
 0x1d9   : > { %8898 = vst [vmem:[#allocation45_spill] sm:$0xff] %v7319_v10  ;;  %v1310_v41 = vadd.f32 %v7235_v37, %v1309_v31  ;;  %5270 = vmatprep.mubr.f32.mxu1 %v1998_v55  ;;  %v2001_v4 = vmul.f32 %v1945_v14, %v1315_v9  ;;  %v1953_v9 = vrot.slane %v7240_v26, %v7244_v13 }
 0x1da   : > { %v5022_v61 = vpop.f32.mrf.mxu1  ;;  %5271 = vmatmul.mubr.f32.gmra.mxu1 %v1999_v7  ;;  %v7322_v6 = vpop.f32.mrf.mxu0 }
 0x1db   : > { %8899 = vst [vmem:[#allocation25_spill] sm:$0xff] %v7322_v6  ;;  %v2000_v49 = vmul.f32 %v1945_v14, %v1310_v41  ;;  %v1325_v62 = vadd.f32 %v5022_v61, %v7235_v37 }
 0x1dc   : > { %v1319_v53 = vpop.f32.mrf.mxu1  ;;  %v7325_v51 = vpop.f32.mrf.mxu0 }
 0x1dd   : > { %8900 = vst [vmem:[#allocation26_spill] sm:$0xff] %v7325_v51  ;;  %v1320_v36 = vadd.f32 %v7235_v37, %v1319_v53  ;;  %5273 = vmatprep.mubr.f32.mxu1 %v2000_v49  ;;  %v2003_v54 = vmul.f32 %v1949_v32, %v1325_v62 }
 0x1de   : > { %v5025_v44 = vpop.f32.mrf.mxu1  ;;  %5274 = vmatmul.mubr.f32.gmra.mxu1 %v2001_v4  ;;  %v7330_v15 = vpop.f32.mrf.mxu0 }
 0x1df   : > { %8901 = vst [vmem:[#allocation28_spill] sm:$0xff] %v7330_v15  ;;  %v2002_v23 = vmul.f32 %v1949_v32, %v1320_v36  ;;  %v1335_v56 = vadd.f32 %v5025_v44, %v7235_v37 }
 0x1e0   : > { %v1329_v30 = vpop.f32.mrf.mxu1  ;;  %v7333_v16 = vpop.f32.mrf.mxu0 }
 0x1e1   : > { %8902 = vst [vmem:[#allocation30_spill] sm:$0xff] %v7333_v16  ;;  %v1330_v21 = vadd.f32 %v7235_v37, %v1329_v30  ;;  %5276 = vmatprep.mubr.f32.mxu1 %v2002_v23  ;;  %v2005_v27 = vmul.f32 %v1949_v32, %v1335_v56 }
 0x1e2   : > { %v5028_v40 = vpop.f32.mrf.mxu1  ;;  %5277 = vmatmul.mubr.f32.gmra.mxu1 %v2003_v54  ;;  %v7336_v12 = vpop.f32.mrf.mxu0 }
 0x1e3   : > { %8903 = vst [vmem:[#allocation36_spill] sm:$0xff] %v7336_v12  ;;  %v2004_v19 = vmul.f32 %v1949_v32, %v1330_v21  ;;  %v1345_v20 = vadd.f32 %v5028_v40, %v7235_v37 }
 0x1e4   : > { %v1339_v63 = vpop.f32.mrf.mxu1  ;;  %v7339_v14 = vpop.f32.mrf.mxu0 }
 0x1e5   : > { %8904 = vst [vmem:[#allocation41_spill] sm:$0xff] %v7339_v14  ;;  %v1340_v24 = vadd.f32 %v7235_v37, %v1339_v63  ;;  %5279 = vmatprep.mubr.f32.mxu1 %v2004_v19  ;;  %v2007_v47 = vmul.f32 %v1949_v32, %v1345_v20 }
 0x1e6   : > { %v5031_v18 = vpop.f32.mrf.mxu1  ;;  %5280 = vmatmul.mubr.f32.gmra.mxu1 %v2005_v27  ;;  %v7342_v59 = vpop.f32.mrf.mxu0 }
 0x1e7   : > { %8905 = vst [vmem:[#allocation46_spill] sm:$0xff] %v7342_v59  ;;  %v2006_v0 = vmul.f32 %v1949_v32, %v1340_v24  ;;  %v1355_v42 = vadd.f32 %v5031_v18, %v7235_v37 }
 0x1e8   : > { %v1349_v48 = vpop.f32.mrf.mxu1  ;;  %v7345_v29 = vpop.f32.mrf.mxu0 }
 0x1e9   : > { %8906 = vst [vmem:[#allocation50_spill] sm:$0xff] %v7345_v29  ;;  %v1350_v28 = vadd.f32 %v7235_v37, %v1349_v48  ;;  %5282 = vmatprep.mubr.f32.mxu1 %v2006_v0  ;;  %v2009_v17 = vmul.f32 %v1949_v32, %v1355_v42  ;;  %v1927_v42 = vcombine.high %v7238_v5, %v7238_v5 }
 0x1ea   : > { %v5034_v3 = vpop.f32.mrf.mxu1  ;;  %5283 = vmatmul.mubr.f32.gmra.mxu1 %v2007_v47  ;;  %v7348_v38 = vpop.f32.mrf.mxu0 }
 0x1eb   : > { %8907 = vst [vmem:[#allocation32_spill] sm:$0xff] %v7348_v38  ;;  %v2008_v46 = vmul.f32 %v1949_v32, %v1350_v28  ;;  %v1365_v43 = vadd.f32 %v5034_v3, %v7235_v37 }
 0x1ec   : > { %v1359_v55 = vpop.f32.mrf.mxu1  ;;  %v7351_v7 = vpop.f32.mrf.mxu0 }
 0x1ed   : > { %8908 = vst [vmem:[#allocation33_spill] sm:$0xff] %v7351_v7  ;;  %v1360_v31 = vadd.f32 %v7235_v37, %v1359_v55  ;;  %5285 = vmatprep.mubr.f32.mxu1 %v2008_v46  ;;  %v2011_v4 = vmul.f32 %v1953_v9, %v1365_v43 }
 0x1ee   : > { %v5037_v41 = vpop.f32.mrf.mxu1  ;;  %5286 = vmatmul.mubr.f32.gmra.mxu1 %v2009_v17  ;;  %v7356_v61 = vpop.f32.mrf.mxu0 }
 0x1ef   : > { %8909 = vst [vmem:[#allocation34_spill] sm:$0xff] %v7356_v61  ;;  %v2010_v49 = vmul.f32 %v1953_v9, %v1360_v31  ;;  %v1375_v62 = vadd.f32 %v5037_v41, %v7235_v37  ;;  %v1957_v41 = vrot.slane %v1927_v42, %v7244_v13 }
 0x1f0   : > { %v1369_v53 = vpop.f32.mrf.mxu1  ;;  %v7359_v32 = vpop.f32.mrf.mxu0 }
 0x1f1   : > { %8910 = vst [vmem:[#allocation39_spill] sm:$0xff] %v7359_v32  ;;  %v1370_v36 = vadd.f32 %v7235_v37, %v1369_v53  ;;  %5288 = vmatprep.mubr.f32.mxu1 %v2010_v49  ;;  %v2013_v56 = vmul.f32 %v1953_v9, %v1375_v62 }
 0x1f2   : > { %v5040_v44 = vpop.f32.mrf.mxu1  ;;  %5289 = vmatmul.mubr.f32.gmra.mxu1 %v2011_v4  ;;  %v7362_v23 = vpop.f32.mrf.mxu0 }
 0x1f3   : > { %8911 = vst [vmem:[#allocation47_spill] sm:$0xff] %v7362_v23  ;;  %v2012_v54 = vmul.f32 %v1953_v9, %v1370_v36  ;;  %v1385_v30 = vadd.f32 %v5040_v44, %v7235_v37 }
 0x1f4   : > { %v1379_v21 = vpop.f32.mrf.mxu1  ;;  %v7365_v40 = vpop.f32.mrf.mxu0 }
 0x1f5   : > { %8912 = vst [vmem:[#allocation51_spill] sm:$0xff] %v7365_v40  ;;  %v1380_v19 = vadd.f32 %v7235_v37, %v1379_v21  ;;  %5291 = vmatprep.mubr.f32.mxu1 %v2012_v54  ;;  %v2015_v24 = vmul.f32 %v1953_v9, %v1385_v30 }
 0x1f6   : > { %v5043_v27 = vpop.f32.mrf.mxu1  ;;  %5292 = vmatmul.mubr.f32.gmra.mxu1 %v2013_v56  ;;  %v7368_v20 = vpop.f32.mrf.mxu0 }
 0x1f7   : > { %8913 = vst [vmem:[#allocation52_spill] sm:$0xff] %v7368_v20  ;;  %v2014_v63 = vmul.f32 %v1953_v9, %v1380_v19  ;;  %v1395_v18 = vadd.f32 %v5043_v27, %v7235_v37 }
 0x1f8   : > { %v1389_v0 = vpop.f32.mrf.mxu1  ;;  %v7371_v47 = vpop.f32.mrf.mxu0 }
 0x1f9   : > { %8914 = vst [vmem:[#allocation55_spill] sm:$0xff] %v7371_v47  ;;  %v1390_v48 = vadd.f32 %v7235_v37, %v1389_v0  ;;  %5294 = vmatprep.mubr.f32.mxu1 %v2014_v63  ;;  %v2017_v17 = vmul.f32 %v1953_v9, %v1395_v18 }
 0x1fa   : > { %v5046_v28 = vpop.f32.mrf.mxu1  ;;  %5295 = vmatmul.mubr.f32.gmra.mxu1 %v2015_v24  ;;  %v7376_v3 = vpop.f32.mrf.mxu0 }
 0x1fb   : > { %8915 = vst [vmem:[#allocation40_spill] sm:$0xff] %v7376_v3  ;;  %v2016_v46 = vmul.f32 %v1953_v9, %v1390_v48  ;;  %v1405_v43 = vadd.f32 %v5046_v28, %v7235_v37 }
 0x1fc   : > { %v1399_v55 = vpop.f32.mrf.mxu1  ;;  %v7379_v31 = vpop.f32.mrf.mxu0 }
 0x1fd   : > { %8916 = vst [vmem:[#allocation42_spill] sm:$0xff] %v7379_v31  ;;  %v1400_v49 = vadd.f32 %v7235_v37, %v1399_v55  ;;  %5297 = vmatprep.mubr.f32.mxu1 %v2016_v46  ;;  %v2019_v53 = vmul.f32 %v1957_v41, %v1405_v43  ;;  %v1929_v55 = vcombine.high %v7240_v26, %v7240_v26 }
 0x1fe   : > { %v5049_v5 = vpop.f32.mrf.mxu1  ;;  %5298 = vmatmul.mubr.f32.gmra.mxu1 %v2017_v17  ;;  %v7383_v4 = vpop.f32.mrf.mxu0 }
 0x1ff   : > { %8917 = vst [vmem:[#allocation43_spill] sm:$0xff] %v7383_v4  ;;  %v2018_v62 = vmul.f32 %v1957_v41, %v1400_v49  ;;  %v1415_v36 = vadd.f32 %v5049_v5, %v7235_v37 }
 0x200   : > { %v1409_v44 = vpop.f32.mrf.mxu1  ;;  %v7386_v9 = vpop.f32.mrf.mxu0 }
 0x201   : > { %8918 = vst [vmem:[#allocation48_spill] sm:$0xff] %v7386_v9  ;;  %v1410_v54 = vadd.f32 %v7235_v37, %v1409_v44  ;;  %5300 = vmatprep.mubr.f32.mxu1 %v2018_v62  ;;  %v2021_v19 = vmul.f32 %v1957_v41, %v1415_v36 }
 0x202   : > { %v5052_v56 = vpop.f32.mrf.mxu1  ;;  %5301 = vmatmul.mubr.f32.gmra.mxu1 %v2019_v53  ;;  %v7389_v30 = vpop.f32.mrf.mxu0 }
 0x203   : > { %8919 = vst [vmem:[#allocation53_spill] sm:$0xff] %v7389_v30  ;;  %v2020_v21 = vmul.f32 %v1957_v41, %v1410_v54  ;;  %v1425_v27 = vadd.f32 %v5052_v56, %v7235_v37 }
 0x204   : > { %v1419_v63 = vpop.f32.mrf.mxu1  ;;  %v7392_v24 = vpop.f32.mrf.mxu0 }
 0x205   : > { %8920 = vst [vmem:[#allocation56_spill] sm:$0xff] %v7392_v24  ;;  %v1420_v18 = vadd.f32 %v7235_v37, %v1419_v63  ;;  %5303 = vmatprep.mubr.f32.mxu1 %v2020_v21  ;;  %v2023_v28 = vmul.f32 %v1957_v41, %v1425_v27  ;;  %v1961_v21 = vrot.slane %v1929_v55, %v7244_v13 }
 0x206   : > { %v5055_v0 = vpop.f32.mrf.mxu1  ;;  %5304 = vmatmul.mubr.f32.gmra.mxu1 %v2021_v19  ;;  %v7395_v42 = vpop.f32.mrf.mxu0 }
 0x207   : > { %8921 = vst [vmem:[#allocation58_spill] sm:$0xff] %v7395_v42  ;;  %v2022_v48 = vmul.f32 %v1957_v41, %v1420_v18  ;;  %v1435_v46 = vadd.f32 %v5055_v0, %v7235_v37 }
 0x208   : > { %v1429_v17 = vpop.f32.mrf.mxu1  ;;  %v7398_v43 = vpop.f32.mrf.mxu0 }
 0x209   : > { %8922 = vst [vmem:[#allocation59_spill] sm:$0xff] %v7398_v43  ;;  %v1430_v49 = vadd.f32 %v7235_v37, %v1429_v17  ;;  %5306 = vmatprep.mubr.f32.mxu1 %v2022_v48  ;;  %v2025_v36 = vmul.f32 %v1957_v41, %v1435_v46 }
 0x20a   : > { %v5058_v5 = vpop.f32.mrf.mxu1  ;;  %5307 = vmatmul.mubr.f32.gmra.mxu1 %v2023_v28  ;;  %v7403_v62 = vpop.f32.mrf.mxu0 }
 0x20b   : > { %8923 = vst [vmem:[#allocation66_spill] sm:$0xff] %v7403_v62  ;;  %v2024_v53 = vmul.f32 %v1957_v41, %v1430_v49  ;;  %v1445_v44 = vadd.f32 %v5058_v5, %v7235_v37 }
 0x20c   : > { %v1439_v54 = vpop.f32.mrf.mxu1  ;;  %v7406_v56 = vpop.f32.mrf.mxu0 }
 0x20d   : > { %8924 = vst [vmem:[#allocation67_spill] sm:$0xff] %v7406_v56  ;;  %v1440_v19 = vadd.f32 %v7235_v37, %v1439_v54  ;;  %5309 = vmatprep.mubr.f32.mxu1 %v2024_v53  ;;  %v2027_v18 = vmul.f32 %v1961_v21, %v1445_v44 }
 0x20e   : > { %v5061_v26 = vpop.f32.mrf.mxu1  ;;  %5310 = vmatmul.mubr.f32.gmra.mxu1 %v2025_v36  ;;  %v7410_v27 = vpop.f32.mrf.mxu0 }
 0x20f   : > { %8925 = vst [vmem:[#allocation68_spill] sm:$0xff] %v7410_v27  ;;  %v2026_v63 = vmul.f32 %v1961_v21, %v1440_v19  ;;  %v1455_v0 = vadd.f32 %v5061_v26, %v7235_v37 }
 0x210   : > { %v1449_v48 = vpop.f32.mrf.mxu1  ;;  %v7413_v41 = vpop.f32.mrf.mxu0 }
 0x211   : > { %8926 = vst [vmem:[#allocation60_spill] sm:$0xff] %v7413_v41  ;;  %v1450_v28 = vadd.f32 %v7235_v37, %v1449_v48  ;;  %5312 = vmatprep.mubr.f32.mxu1 %v2026_v63  ;;  %v2029_v49 = vmul.f32 %v1961_v21, %v1455_v0 }
 0x212   : > { %v5064_v46 = vpop.f32.mrf.mxu1  ;;  %5313 = vmatmul.mubr.f32.gmra.mxu1 %v2027_v18  ;;  %v7416_v17 = vpop.f32.mrf.mxu0 }
 0x213   : > { %8927 = vst [vmem:[#allocation22_spill] sm:$0xff] %v7416_v17  ;;  %v2028_v55 = vmul.f32 %v1961_v21, %v1450_v28  ;;  %v1465_v5 = vadd.f32 %v5064_v46, %v7235_v37 }
 0x214   : > { %v1459_v53 = vpop.f32.mrf.mxu1  ;;  %v7419_v36 = vpop.f32.mrf.mxu0 }
 0x215   : > { %8928 = vst [vmem:[#allocation23_spill] sm:$0xff] %v7419_v36  ;;  %v1460_v44 = vadd.f32 %v7235_v37, %v1459_v53  ;;  %5315 = vmatprep.mubr.f32.mxu1 %v2028_v55  ;;  %v2031_v63 = vmul.f32 %v1961_v21, %v1465_v5 }
 0x216   : > { %v5067_v54 = vpop.f32.mrf.mxu1  ;;  %5316 = vmatmul.mubr.f32.gmra.mxu1 %v2029_v49  ;;  %v7422_v19 = vpop.f32.mrf.mxu0 }
 0x217   : > { %8929 = vst [vmem:[#allocation61_spill] sm:$0xff] %v7422_v19  ;;  %v2030_v26 = vmul.f32 %v1961_v21, %v1460_v44  ;;  %v1475_v18 = vadd.f32 %v5067_v54, %v7235_v37 }
 0x218   : > { %v1469_v48 = vpop.f32.mrf.mxu1  ;;  %v7425_v41 = vpop.f32.mrf.mxu0 }
 0x219   : > { %8930 = vst [vmem:[#allocation62_spill] sm:$0xff] %v7425_v41  ;;  %v1470_v0 = vadd.f32 %v7235_v37, %v1469_v48  ;;  %5318 = vmatprep.mubr.f32.mxu1 %v2030_v26  ;;  %v2033_v53 = vmul.f32 %v1961_v21, %v1475_v18 }
 0x21a   : > { %5319 = vmatmul.mubr.f32.gmra.mxu1 %v2031_v63  ;;  %v7428_v28 = vpop.f32.mrf.mxu0 }
 0x21b   : > { %8931 = vst [vmem:[#allocation27_spill] sm:$0xff] %v7428_v28  ;;  %v2032_v46 = vmul.f32 %v1961_v21, %v1470_v0 }
 0x21c   : > { %v7430_v55 = vpop.f32.mrf.mxu0 }
 0x21d   : > { %8932 = vst [vmem:[#allocation31_spill] sm:$0xff] %v7430_v55  ;;  %5321 = vmatprep.mubr.f32.mxu1 %v2032_v46 }
 0x21e   : > { %5322 = vmatmul.mubr.f32.gmra.mxu1 %v2033_v53  ;;  %v7432_v49 = vpop.f32.mrf.mxu0 }
 0x21f   : > { %8933 = vst [vmem:[#allocation69_spill] sm:$0xff] %v7432_v49  ;;  %5459 = vmatprep.mubr.msk.f32.mxu1 %vm5949_vm0, %v8808_v34 }
 0x220   : > { %v7436_v5 = vpop.f32.mrf.mxu0 }
 0x221   : > { %8934 = vst [vmem:[#allocation70_spill] sm:$0xff] %v7436_v5 }
 0x222   : > { %v7438_v44 = vpop.f32.mrf.mxu0 }
 0x223   : > { %8935 = vst [vmem:[#allocation71_spill] sm:$0xff] %v7438_v44 }
 0x224   : > { %v7440_v37 = vpop.f32.mrf.mxu0 }
 0x225   : > { %8936 = vst [vmem:[#allocation72_spill] sm:$0xff] %v7440_v37 }
 0x226   : > { %v7442_v54 = vpop.f32.mrf.mxu0 }
 0x227   : > { %8937 = vst [vmem:[#allocation73_spill] sm:$0xff] %v7442_v54 }
 0x228   : > { %v7444_v26 = vpop.f32.mrf.mxu0 }
 0x229   : > { %8938 = vst [vmem:[#allocation74_spill] sm:$0xff] %v7444_v26 }
 0x22a   : > { %v7446_v21 = vpop.f32.mrf.mxu0 }
 0x22b   : > { %8939 = vst [vmem:[#allocation75_spill] sm:$0xff] %v7446_v21 }
 0x22c   : > { %v7448_v63 = vpop.f32.mrf.mxu0 }
 0x22d   : > { %8940 = vst [vmem:[#allocation76_spill] sm:$0xff] %v7448_v63 }
 0x22e   : > { %v7450_v18 = vpop.f32.mrf.mxu0 }
 0x22f   : > { %8941 = vst [vmem:[#allocation77_spill] sm:$0xff] %v7450_v18 }
 0x230   : > { %v7452_v48 = vpop.f32.mrf.mxu0 }
 0x231   : > { %8942 = vst [vmem:[#allocation78_spill] sm:$0xff] %v7452_v48 }
 0x232   : > { %v7454_v0 = vpop.f32.mrf.mxu0 }
 0x233   : > { %8943 = vst [vmem:[#allocation79_spill] sm:$0xff] %v7454_v0 }
 0x234   : > { %v7456_v46 = vpop.f32.mrf.mxu0 }
 0x235   : > { %8944 = vst [vmem:[#allocation80_spill] sm:$0xff] %v7456_v46 }
 0x236   : > { %v7458_v53 = vpop.f32.mrf.mxu0 }
 0x237   : > { %8945 = vst [vmem:[#allocation81_spill] sm:$0xff] %v7458_v53 }
 0x238   : > { %v7460_v5 = vpop.f32.mrf.mxu0 }
 0x239   : > { %8946 = vst [vmem:[#allocation82_spill] sm:$0xff] %v7460_v5 }
 0x23a   : > { %v7462_v37 = vpop.f32.mrf.mxu0 }
 0x23b   : > { %8947 = vst [vmem:[#allocation83_spill] sm:$0xff] %v7462_v37 }
 0x241   : > { %v7464_v54 = vpop.f32.mrf.mxu0 }
 0x243   : > { %v5358_v26 = vpop.f32.mrf.mxu0 }
 0x262   : > { %v7466_v21 = vpop.f32.mrf.mxu1 }
 0x263   : > { %v2492_v48 = vsel %vm2490_vm8, %v7466_v21, -inf }
 0x264   : > { %v7468_v63 = vpop.f32.mrf.mxu1 }
 0x265   : > { %v2491_v46 = vsel %vm2490_vm8, %v7468_v63, -inf }
 0x266   : > { %v2493_v0 = vmax.f32 %v2491_v46, %v2492_v48  ;;  %v7474_v53 = vpop.f32.mrf.mxu1 }
 0x267   : > { %v2496_v44 = vsel %vm2490_vm8, %v7474_v53, -inf }
 0x268   : > { %v7476_v5 = vpop.f32.mrf.mxu1 }
 0x269   : > { %v2494_v37 = vsel %vm2490_vm8, %v7476_v5, -inf }
 0x26a   : > { %v2495_v26 = vmax.f32 %v2493_v0, %v2494_v37  ;;  %v7480_v18 = vpop.f32.mrf.mxu1 }
 0x26b   : > { %v2500_v28 = vsel %vm2490_vm8, %v7480_v18, -inf }
 0x26c   : > { %v7484_v49 = vpop.f32.mrf.mxu1  ;;  %v2497_v55 = vmax.f32 %v2495_v26, %v2496_v44 }
 0x26d   : > { %v2498_v41 = vsel %vm2490_vm8, %v7484_v49, -inf }
 0x26e   : > { %v2499_v48 = vmax.f32 %v2497_v55, %v2498_v41  ;;  %v7488_v46 = vpop.f32.mrf.mxu1 }
 0x26f   : > { %v2504_v44 = vsel %vm2490_vm8, %v7488_v46, -inf }
 0x270   : > { %v7492_v36 = vpop.f32.mrf.mxu1  ;;  %v2501_v37 = vmax.f32 %v2499_v48, %v2500_v28 }
 0x271   : > { %v2502_v0 = vsel %vm2490_vm8, %v7492_v36, -inf }
 0x272   : > { %v2503_v19 = vmax.f32 %v2501_v37, %v2502_v0  ;;  %v7496_v17 = vpop.f32.mrf.mxu1 }
 0x273   : > { %v2513_v41 = vsel %vm2490_vm8, %v7496_v17, -inf }
 0x274   : > { %v2505_v26 = vmax.f32 %v2503_v19, %v2504_v44  ;;  %v7500_v27 = vpop.f32.mrf.mxu1 }
 0x275   : > { %v2512_v55 = vsel %vm2490_vm8, %v7500_v27, -inf }
 0x276   : > { %v2506_v56 = vrot.slane %v2505_v26, 4  ;;  %v2514_v28 = vmax.f32 %v2512_v55, %v2513_v41  ;;  %v7506_v48 = vpop.f32.mrf.mxu1 }
 0x277   : > { %v2517_v24 = vsel %vm2490_vm8, %v7506_v48, -inf }
 0x278   : > { %v2507_v43 = vmax.f32 %v2505_v26, %v2506_v56  ;;  %v7508_v37 = vpop.f32.mrf.mxu1 }
 0x279   : > { %v2515_v0 = vsel %vm2490_vm8, %v7508_v37, -inf }
 0x27a   : > { %v2508_v62 = vrot.slane %v2507_v43, 2  ;;  %v2516_v19 = vmax.f32 %v2514_v28, %v2515_v0  ;;  %v7512_v44 = vpop.f32.mrf.mxu1 }
 0x27b   : > { %v2521_v4 = vsel %vm2490_vm8, %v7512_v44, -inf }
 0x27c   : > { %v2509_v42 = vmax.f32 %v2507_v43, %v2508_v62  ;;  %v7516_v9 = vpop.f32.mrf.mxu1  ;;  %v2518_v30 = vmax.f32 %v2516_v19, %v2517_v24 }
 0x27d   : > { %v2519_v41 = vsel %vm2490_vm8, %v7516_v9, -inf }
 0x27e   : > { %v2510_v56 = vrot.slane %v2509_v42, 1  ;;  %v2520_v26 = vmax.f32 %v2518_v30, %v2519_v41  ;;  %v7520_v55 = vpop.f32.mrf.mxu1 }
 0x27f   : > { %v2525_v30 = vsel %vm2490_vm8, %v7520_v55, -inf }
 0x280   : > { %v2511_v28 = vmax.f32 %v2509_v42, %v2510_v56  ;;  %v7524_v0 = vpop.f32.mrf.mxu1  ;;  %v2522_v31 = vmax.f32 %v2520_v26, %v2521_v4 }
 0x281   : > { %v2523_v43 = vsel %vm2490_vm8, %v7524_v0, -inf }
 0x282   : > { %v7529_v62 = vmax.f32 %v2511_v28, %v7464_v54  ;;  %v2524_v24 = vmax.f32 %v2522_v31, %v2523_v43  ;;  %v7531_v19 = vpop.f32.mrf.mxu1 }
 0x283   : > { %v2534_v4 = vsel %vm2490_vm8, %v7531_v19, -inf }
 0x284   : > { %v2686_v41 = vrot.slane %v7529_v62, %v7244_v13  ;;  %v2526_v3 = vmax.f32 %v2524_v24, %v2525_v30  ;;  %v7537_v42 = vpop.f32.mrf.mxu1 }
 0x285   : > { %v2533_v56 = vsel %vm2490_vm8, %v7537_v42, -inf }
 0x286   : > { %v2715_v26 = vsub.f32 %v7468_v63, %v2686_v41  ;;  %v2716_v31 = vsub.f32 %v7466_v21, %v2686_v41  ;;  %v2717_v28 = vsub.f32 %v7476_v5, %v2686_v41  ;;  %v2718_v43 = vsub.f32 %v7474_v53, %v2686_v41  ;;  %v7547_v47 = vpop.f32.mrf.mxu1 }
 0x287   : > { %v2719_v24 = vsub.f32 %v7484_v49, %v2686_v41  ;;  %v2720_v30 = vsub.f32 %v7480_v18, %v2686_v41  ;;  %v2721_v20 = vsub.f32 %v7492_v36, %v2686_v41  ;;  %v2722_v40 = vsub.f32 %v7488_v46, %v2686_v41 }
 0x288   : > { %v2779_v23 = vmul.f32 1.442695, %v2715_v26  ;;  %v2781_v32 = vmul.f32 1.442695, %v2716_v31  ;;  %v2783_v61 = vmul.f32 1.442695, %v2717_v28  ;;  %v2535_v63 = vmax.f32 %v2533_v56, %v2534_v4  ;;  %v7553_v7 = vpop.f32.mrf.mxu1 }
 0x289   : > { %v2785_v21 = vmul.f32 1.442695, %v2718_v43  ;;  %v2787_v5 = vmul.f32 1.442695, %v2719_v24  ;;  %v2527_v53 = vrot.slane %v2526_v3, 4  ;;  %v2536_v18 = vsel %vm2490_vm8, %v7553_v7, -inf }
 0x28a   : > { %5589 = vpow2.f32 %v2779_v23  ;;  %v7555_v38 = vpop.f32.mrf.mxu1  ;;  %v2789_v49 = vmul.f32 1.442695, %v2720_v30  ;;  %v2537_v46 = vmax.f32 %v2535_v63, %v2536_v18  ;;  %v2538_v4 = vsel %vm2490_vm8, %v7547_v47, -inf }
 0x28b   : > { %5591 = vpow2.f32 %v2781_v32  ;;  %v2528_v36 = vmax.f32 %v2526_v3, %v2527_v53  ;;  %v2791_v31 = vmul.f32 1.442695, %v2721_v20  ;;  %v2793_v43 = vmul.f32 1.442695, %v2722_v40 }
 0x28c   : > { %5593 = vpow2.f32 %v2783_v61  ;;  %v7559_v41 = vpop.f32.mrf.mxu1  ;;  %v2539_v26 = vmax.f32 %v2537_v46, %v2538_v4  ;;  %v2542_v24 = vsel %vm2490_vm8, %v7555_v38, -inf }
 0x28d   : > { %5595 = vpow2.f32 %v2785_v21  ;;  %v2540_v23 = vsel %vm2490_vm8, %v7559_v41, -inf  ;;  %v2529_v56 = vrot.slane %v2528_v36, 2 }
 0x28e   : > { %5597 = vpow2.f32 %v2787_v5  ;;  %v7565_v32 = vpop.f32.mrf.mxu1  ;;  %v2541_v61 = vmax.f32 %v2539_v26, %v2540_v23 }
 0x28f   : > { %5599 = vpow2.f32 %v2789_v49  ;;  %v2530_v28 = vmax.f32 %v2528_v36, %v2529_v56  ;;  %v2660_v49 = vrot.slane %v7464_v54, 1  ;;  %v2546_v40 = vsel %vm2490_vm8, %v7565_v32, -inf }
 0x290   : > { %v7567_v3 = vpop.f32.mrf.mxu1  ;;  %v2543_v21 = vmax.f32 %v2541_v61, %v2542_v24  ;;  %5601 = vpow2.f32 %v2791_v31 }
 0x291   : > { %v2544_v30 = vsel %vm2490_vm8, %v7567_v3, -inf  ;;  %v2531_v63 = vrot.slane %v2530_v28, 1  ;;  %5603 = vpow2.f32 %v2793_v43 }
 0x292   : > { %v7573_v5 = vpop.f32.mrf.mxu1  ;;  %v2545_v20 = vmax.f32 %v2543_v21, %v2544_v30 }
 0x293   : > { %v2532_v53 = vmax.f32 %v2530_v28, %v2531_v63  ;;  %v2555_v61 = vsel %vm2490_vm8, %v7573_v5, -inf }
 0x294   : > { %v7576_v18 = vpop.f32.mrf.mxu1  ;;  %v2547_v46 = vmax.f32 %v2545_v20, %v2546_v40 }
 0x295   : > { %v2676_v36 = vmax.f32 %v2532_v53, %v2660_v49  ;;  %v2554_v4 = vsel %vm2490_vm8, %v7576_v18, -inf }
 0x296   : > { %v7582_v23 = vpop.f32.mrf.mxu1  ;;  %v2556_v63 = vmax.f32 %v2554_v4, %v2555_v61 }
 0x297   : > { %v7584_v56 = vpop.eup %5589  ;;  %v2690_v28 = vrot.slane %v2676_v36, %v7244_v13  ;;  %v2915_v40 = vrot.slane %v2676_v36, 7  ;;  %v2548_v36 = vrot.slane %v2547_v46, 4 }
 0x298   : > { %v7586_v26 = vpop.eup %5591  ;;  %v2933_v31 = vsel %vm2490_vm8, %v7584_v56, 0.0  ;;  %v7593_v43 = vpop.f32.mrf.mxu1 }
 0x299   : > { %v7595_v24 = vpop.eup %5593  ;;  %v2934_v30 = vsel %vm2490_vm8, %v7586_v26, 0.0  ;;  %v2723_v49 = vsub.f32 %v7500_v27, %v2690_v28  ;;  %v2724_v20 = vsub.f32 %v7496_v17, %v2690_v28  ;;  %v2725_v12 = vsub.f32 %v7508_v37, %v2690_v28 }
 0x29a   : > { %v7599_v21 = vpop.eup %5595  ;;  %v2935_v53 = vadd.f32 %v2934_v30, %v2933_v31  ;;  %v7603_v29 = vpop.f32.mrf.mxu1  ;;  %v2936_v14 = vsel %vm2490_vm8, %v7595_v24, 0.0  ;;  %v2726_v16 = vsub.f32 %v7506_v48, %v2690_v28  ;;  %v2727_v4 = vsub.f32 %v7516_v9, %v2690_v28 }
 0x29b   : > { %v7605_v59 = vpop.eup %5597  ;;  %v2728_v27 = vsub.f32 %v7512_v44, %v2690_v28  ;;  %v2729_v17 = vsub.f32 %v7524_v0, %v2690_v28  ;;  %v2938_v15 = vsel %vm2490_vm8, %v7599_v21, 0.0  ;;  %v2730_v51 = vsub.f32 %v7520_v55, %v2690_v28 }
 0x29c   : > { %v7612_v61 = vpop.eup %5599  ;;  %v2937_v31 = vadd.f32 %v2936_v14, %v2935_v53  ;;  %v7616_v30 = vpop.f32.mrf.mxu1  ;;  %v2795_v37 = vmul.f32 1.442695, %v2723_v49  ;;  %v2797_v6 = vmul.f32 1.442695, %v2724_v20  ;;  %v2799_v10 = vmul.f32 1.442695, %v2725_v12 }
 0x29d   : > { %8948 = vst [vmem:[#allocation84_spill] sm:$0xff] %v7612_v61  ;;  %v2801_v9 = vmul.f32 1.442695, %v2726_v16  ;;  %v2557_v14 = vsel %vm2490_vm8, %v7593_v43, -inf  ;;  %v2940_v44 = vsel %vm2490_vm8, %v7605_v59, 0.0  ;;  %v2942_v0 = vsel %vm2490_vm8, %v7612_v61, 0.0  ;;  %v7631_v28 = vpop.eup %5601 }
 0x29e   : > { %v2939_v48 = vadd.f32 %v2938_v15, %v2937_v31  ;;  %v7623_v53 = vpop.f32.mrf.mxu1  ;;  %5605 = vpow2.f32 %v2795_v37  ;;  %v2559_v55 = vsel %vm2490_vm8, %v7582_v23, -inf  ;;  %8949 = vst [vmem:[#allocation85_spill] sm:$0xff] %v7631_v28  ;;  %v2803_v16 = vmul.f32 1.442695, %v2727_v4  ;;  %v7639_v25 = vpop.eup %5603 }
 0x29f   : > { %5607 = vpow2.f32 %v2797_v6  ;;  %v2805_v12 = vmul.f32 1.442695, %v2728_v27  ;;  %v7637_v20 = vsel %vm815_vm1, %v2915_v40, %v7529_v62  ;;  %v2549_v31 = vmax.f32 %v2547_v46, %v2548_v36  ;;  %8950 = vst [vmem:[#allocation86_spill] sm:$0xff] %v7639_v25 }
 0x2a0   : > { %v2941_v15 = vadd.f32 %v2940_v44, %v2939_v48  ;;  %v7633_v49 = vpop.f32.mrf.mxu1  ;;  %5609 = vpow2.f32 %v2799_v10  ;;  %v2558_v58 = vmax.f32 %v2556_v63, %v2557_v14  ;;  %v2807_v60 = vmul.f32 1.442695, %v2729_v17 }
 0x2a1   : > { %5611 = vpow2.f32 %v2801_v9  ;;  %v2561_v48 = vsel %vm2490_vm8, %v7616_v30, -inf  ;;  %v2944_v4 = vsel %vm2490_vm8, %v7631_v28, 0.0  ;;  %v2809_v10 = vmul.f32 1.442695, %v2730_v51 }
 0x2a2   : > { %v2943_v37 = vadd.f32 %v2942_v0, %v2941_v15  ;;  %v7643_v6 = vpop.f32.mrf.mxu1  ;;  %v2550_v27 = vrot.slane %v2549_v31, 2  ;;  %v2560_v44 = vmax.f32 %v2558_v58, %v2559_v55  ;;  %5613 = vpow2.f32 %v2803_v16 }
 0x2a3   : > { %v2946_v63 = vsel %vm2490_vm8, %v7639_v25, 0.0  ;;  %5615 = vpow2.f32 %v2805_v12  ;;  %v2563_v9 = vsel %vm2490_vm8, %v7603_v29, -inf  ;;  %v2565_v51 = vsel %vm2490_vm8, %v7633_v49, -inf }
 0x2a4   : > { %v2945_v62 = vadd.f32 %v2944_v4, %v2943_v37  ;;  %v7647_v46 = vpop.f32.mrf.mxu1  ;;  %v2551_v40 = vmax.f32 %v2549_v31, %v2550_v27  ;;  %v2562_v17 = vmax.f32 %v2560_v44, %v2561_v48  ;;  %5617 = vpow2.f32 %v2807_v60 }
 0x2a5   : > { %5619 = vpow2.f32 %v2809_v10  ;;  %v2575_v55 = vsel %vm2490_vm8, %v7647_v46, -inf  ;;  %v2661_v12 = vrot.slane %v7464_v54, 2  ;;  %v2567_v31 = vsel %vm2490_vm8, %v7623_v53, -inf }
 0x2a6   : > { %v7651_v36 = vadd.f32 %v2946_v63, %v2945_v62  ;;  %v7657_v58 = vpop.f32.mrf.mxu1  ;;  %v2552_v14 = vrot.slane %v2551_v40, 1  ;;  %v2564_v0 = vmax.f32 %v2562_v17, %v2563_v9  ;;  %v2576_v37 = vsel %vm2490_vm8, %v7643_v6, -inf }
 0x2a7   : > { %v2577_v44 = vmax.f32 %v2575_v55, %v2576_v37  ;;  %v2580_v37 = vsel %vm2490_vm8, %v7657_v58, -inf }
 0x2a8   : > { %v7661_v15 = vpop.f32.mrf.mxu1  ;;  %v2553_v16 = vmax.f32 %v2551_v40, %v2552_v14  ;;  %v2566_v60 = vmax.f32 %v2564_v0, %v2565_v51 }
 0x2a9   : > { %v2578_v48 = vsel %vm2490_vm8, %v7661_v15, -inf }
 0x2aa   : > { %v7670_v4 = vpop.f32.mrf.mxu1  ;;  %v2677_v10 = vmax.f32 %v2553_v16, %v2661_v12  ;;  %v2568_v27 = vmax.f32 %v2566_v60, %v2567_v31  ;;  %v2579_v51 = vmax.f32 %v2577_v44, %v2578_v48 }
 0x2ab   : > { %v7672_v62 = vpop.eup %5605 }
 0x2ac   : > { %8951 = vst [vmem:[#allocation87_spill] sm:$0xff] %v7672_v62  ;;  %v7674_v63 = vpop.f32.mrf.mxu1  ;;  %v7676_v40 = vpop.eup %5607  ;;  %v2954_v17 = vsel %vm2490_vm8, %v7672_v62, 0.0  ;;  %v7681_v9 = vrot.slane %v2677_v10, %v7244_v13  ;;  %v2917_v57 = vrot.slane %v2677_v10, 6  ;;  %v2581_v2 = vmax.f32 %v2579_v51, %v2580_v37 }
 0x2ad   : > { %8952 = vst [vmem:[#allocation88_spill] sm:$0xff] %v7676_v40  ;;  %v7683_v14 = vpop.eup %5609  ;;  %v2955_v0 = vsel %vm2490_vm8, %v7676_v40, 0.0  ;;  %v2569_v50 = vrot.slane %v2568_v27, 4  ;;  %v2582_v51 = vsel %vm2490_vm8, %v7674_v63, -inf }
 0x2ae   : > { %8953 = vst [vmem:[#allocation89_spill] sm:$0xff] %v7683_v14  ;;  %v7687_v16 = vpop.f32.mrf.mxu1  ;;  %v7689_v55 = vpop.eup %5611  ;;  %v2956_v12 = vadd.f32 %v2955_v0, %v2954_v17  ;;  %v2731_v60 = vsub.f32 %v7537_v42, %v7681_v9  ;;  %v2732_v31 = vsub.f32 %v7531_v19, %v7681_v9  ;;  %v2957_v48 = vsel %vm2490_vm8, %v7683_v14, 0.0 }
 0x2af   : > { %8954 = vst [vmem:[#allocation90_spill] sm:$0xff] %v7689_v55  ;;  %v2733_v44 = vsub.f32 %v7553_v7, %v7681_v9  ;;  %v2734_v1 = vsub.f32 %v7547_v47, %v7681_v9  ;;  %v7705_v0 = vpop.eup %5613  ;;  %v2735_v19 = vsub.f32 %v7559_v41, %v7681_v9  ;;  %v2736_v52 = vsub.f32 %v7555_v38, %v7681_v9 }
 0x2b0   : > { %v7703_v17 = vpop.f32.mrf.mxu1  ;;  %8955 = vst [vmem:[#allocation91_spill] sm:$0xff] %v7705_v0  ;;  %v2958_v42 = vadd.f32 %v2957_v48, %v2956_v12  ;;  %v7711_v45 = vpop.eup %5615  ;;  %v2959_v7 = vsel %vm2490_vm8, %v7689_v55, 0.0  ;;  %v2737_v47 = vsub.f32 %v7567_v3, %v7681_v9  ;;  %v2738_v10 = vsub.f32 %v7565_v32, %v7681_v9 }
 0x2b1   : > { %8956 = vst [vmem:[#allocation92_spill] sm:$0xff] %v7711_v45  ;;  %v7721_v48 = vpop.eup %5617  ;;  %v2811_v33 = vmul.f32 1.442695, %v2731_v60  ;;  %v2813_v38 = vmul.f32 1.442695, %v2732_v31  ;;  %v2961_v39 = vsel %vm2490_vm8, %v7705_v0, 0.0  ;;  %v7731_v32 = vsel %vm818_vm2, %v2917_v57, %v7637_v20 }
 0x2b2   : > { %v7719_v12 = vpop.f32.mrf.mxu1  ;;  %8957 = vst [vmem:[#allocation93_spill] sm:$0xff] %v7721_v48  ;;  %v2960_v41 = vadd.f32 %v2959_v7, %v2958_v42  ;;  %v7725_v37 = vpop.eup %5619  ;;  %v2815_v3 = vmul.f32 1.442695, %v2733_v44  ;;  %v2817_v8 = vmul.f32 1.442695, %v2734_v1  ;;  %v2963_v60 = vsel %vm2490_vm8, %v7711_v45, 0.0 }
 0x2b3   : > { %8958 = vst [vmem:[#allocation94_spill] sm:$0xff] %v7725_v37  ;;  %5621 = vpow2.f32 %v2811_v33  ;;  %v2584_v31 = vsel %vm2490_vm8, %v7670_v4, -inf  ;;  %v2965_v42 = vsel %vm2490_vm8, %v7721_v48, 0.0  ;;  %v2819_v44 = vmul.f32 1.442695, %v2735_v19 }
 0x2b4   : > { %v7733_v9 = vpop.f32.mrf.mxu1  ;;  %v2962_v35 = vadd.f32 %v2961_v39, %v2960_v41  ;;  %5623 = vpow2.f32 %v2813_v38  ;;  %v2570_v1 = vmax.f32 %v2568_v27, %v2569_v50  ;;  %v2967_v20 = vsel %vm2490_vm8, %v7725_v37, 0.0 }
 0x2b5   : > { %5625 = vpow2.f32 %v2815_v3  ;;  %v2583_v39 = vmax.f32 %v2581_v2, %v2582_v51  ;;  %v2821_v41 = vmul.f32 1.442695, %v2736_v52  ;;  %v2586_v22 = vsel %vm2490_vm8, %v7703_v17, -inf }
 0x2b6   : > { %v7741_v7 = vpop.f32.mrf.mxu1  ;;  %v2964_v57 = vadd.f32 %v2963_v60, %v2962_v35  ;;  %5627 = vpow2.f32 %v2817_v8  ;;  %v2571_v33 = vrot.slane %v2570_v1, 2  ;;  %v2597_v50 = vsel %vm2490_vm8, %v7719_v12, -inf }
 0x2b7   : > { %v2585_v38 = vmax.f32 %v2583_v39, %v2584_v31  ;;  %v2596_v35 = vsel %vm2490_vm8, %v7733_v9, -inf  ;;  %5629 = vpow2.f32 %v2819_v44  ;;  %v2823_v27 = vmul.f32 1.442695, %v2737_v47  ;;  %v1879_v47 = vld [vmem:[%s8620_s4] sm:$0xf] }
 0x2b8   : > { %v7747_v11 = vpop.f32.mrf.mxu1  ;;  %v2966_v48 = vadd.f32 %v2965_v42, %v2964_v57  ;;  %v2572_v19 = vmax.f32 %v2570_v1, %v2571_v33  ;;  %v2598_v2 = vmax.f32 %v2596_v35, %v2597_v50  ;;  %v2825_v51 = vmul.f32 1.442695, %v2738_v10  ;;  %5359 = vmatprep.subr.msk.mxu0 %vm3429_vm9, %v1879_v47  ;;  %5458 = vmatpush3.msk.msra.mxu1 %vm3429_vm9, %v1879_v47 }
 0x2b9   : > { %v2587_v3 = vmax.f32 %v2585_v38, %v2586_v22  ;;  %v2599_v60 = vsel %vm2490_vm8, %v7747_v11, -inf  ;;  %5631 = vpow2.f32 %v2821_v41  ;;  %v2588_v42 = vsel %vm2490_vm8, %v7687_v16, -inf  ;;  %5360 = vmatpush3.msk.msra.mxu0 %vm3429_vm9, %v1879_v47  ;;  %5462 = vmatprep.subr.mxu1 %v8808_v34 }
 0x2ba   : > { %v7753_v8 = vpop.f32.mrf.mxu1  ;;  %v7755_v52 = vadd.f32 %v2967_v20, %v2966_v48  ;;  %v2573_v31 = vrot.slane %v2572_v19, 1  ;;  %v2600_v57 = vmax.f32 %v2598_v2, %v2599_v60  ;;  %5633 = vpow2.f32 %v2823_v27 }
 0x2bb   : > { %v2589_v44 = vmax.f32 %v2587_v3, %v2588_v42  ;;  %v2662_v22 = vrot.slane %v7464_v54, 3  ;;  %v2601_v48 = vsel %vm2490_vm8, %v7741_v7, -inf  ;;  %5635 = vpow2.f32 %v2825_v51 }
 0x2bc   : > { %v7761_v39 = vpop.f32.mrf.mxu1  ;;  %v2574_v10 = vmax.f32 %v2572_v19, %v2573_v31  ;;  %v2602_v41 = vmax.f32 %v2600_v57, %v2601_v48 }
 0x2bd   : > { %v2590_v20 = vrot.slane %v2589_v44, 4  ;;  %v2603_v38 = vsel %vm2490_vm8, %v7761_v39, -inf }
 0x2be   : > { %v7769_v1 = vpop.f32.mrf.mxu1  ;;  %v2678_v33 = vmax.f32 %v2574_v10, %v2662_v22  ;;  %v2604_v31 = vmax.f32 %v2602_v41, %v2603_v38 }
 0x2bf   : > { %v2591_v51 = vmax.f32 %v2589_v44, %v2590_v20  ;;  %v2605_v20 = vsel %vm2490_vm8, %v7753_v8, -inf  ;;  %v2609_v14 = vsel %vm2490_vm8, %v7769_v1, -inf }
 0x2c0   : > { %v7774_v50 = vpop.f32.mrf.mxu1  ;;  %v7776_v35 = vpop.eup %5621  ;;  %v7779_v27 = vrot.slane %v2678_v33, %v7244_v13  ;;  %v2919_v60 = vrot.slane %v2678_v33, 5  ;;  %v2606_v33 = vmax.f32 %v2604_v31, %v2605_v20 }
 0x2c1   : > { %8959 = vst [vmem:[#allocation95_spill] sm:$0xff] %v7776_v35  ;;  %v7783_v2 = vpop.eup %5623  ;;  %v2975_v3 = vsel %vm2490_vm8, %v7776_v35, 0.0 }
 0x2c2   : > { %v7781_v19 = vpop.f32.mrf.mxu1  ;;  %8960 = vst [vmem:[#allocation96_spill] sm:$0xff] %v7783_v2  ;;  %v7787_v42 = vpop.eup %5625  ;;  %v2976_v57 = vsel %vm2490_vm8, %v7783_v2, 0.0  ;;  %v2739_v47 = vsub.f32 %v7576_v18, %v7779_v27  ;;  %v2740_v10 = vsub.f32 %v7573_v5, %v7779_v27  ;;  %v7823_v5 = vsel %vm821_vm3, %v2919_v60, %v7731_v32 }
 0x2c3   : > { %8961 = vst [vmem:[#allocation97_spill] sm:$0xff] %v7787_v42  ;;  %v7799_v34 = vpop.eup %5627  ;;  %v2977_v44 = vadd.f32 %v2976_v57, %v2975_v3  ;;  %v2978_v41 = vsel %vm2490_vm8, %v7787_v42, 0.0  ;;  %v2592_v42 = vrot.slane %v2591_v51, 2  ;;  %v2618_v32 = vsel %vm2490_vm8, %v7781_v19, -inf }
 0x2c4   : > { %v7797_v48 = vpop.f32.mrf.mxu1  ;;  %8962 = vst [vmem:[#allocation98_spill] sm:$0xff] %v7799_v34  ;;  %v7813_v22 = vpop.eup %5629  ;;  %v2980_v18 = vsel %vm2490_vm8, %v7799_v34, 0.0 }
 0x2c5   : > { %8963 = vst [vmem:[#allocation99_spill] sm:$0xff] %v7813_v22  ;;  %v2979_v3 = vadd.f32 %v2978_v41, %v2977_v44  ;;  %v2607_v41 = vsel %vm2490_vm8, %v7774_v50, -inf  ;;  %v2982_v57 = vsel %vm2490_vm8, %v7813_v22, 0.0  ;;  %v2593_v31 = vmax.f32 %v2591_v51, %v2592_v42 }
 0x2c6   : > { %v7811_v38 = vpop.f32.mrf.mxu1  ;;  %v7827_v35 = vpop.eup %5631  ;;  %v2608_v20 = vmax.f32 %v2606_v33, %v2607_v41 }
 0x2c7   : > { %8964 = vst [vmem:[#allocation100_spill] sm:$0xff] %v7827_v35  ;;  %v2981_v44 = vadd.f32 %v2980_v18, %v2979_v3  ;;  %v7835_v34 = vpop.eup %5633  ;;  %v2984_v60 = vsel %vm2490_vm8, %v7827_v35, 0.0  ;;  %v2617_v18 = vsel %vm2490_vm8, %v7797_v48, -inf  ;;  %v2622_v62 = vsel %vm2490_vm8, %v7811_v38, -inf }
 0x2c8   : > { %v7825_v2 = vpop.f32.mrf.mxu1  ;;  %8965 = vst [vmem:[#allocation101_spill] sm:$0xff] %v7835_v34  ;;  %v7845_v0 = vpop.eup %5635  ;;  %v2619_v55 = vmax.f32 %v2617_v18, %v2618_v32  ;;  %v2610_v41 = vmax.f32 %v2608_v20, %v2609_v14  ;;  %v2663_v32 = vrot.slane %v7464_v54, 4 }
 0x2c9   : > { %v2983_v45 = vadd.f32 %v2982_v57, %v2981_v44  ;;  %8966 = vst [vmem:[#allocation102_spill] sm:$0xff] %v7845_v0  ;;  %v2986_v57 = vsel %vm2490_vm8, %v7835_v34, 0.0  ;;  %v2594_v44 = vrot.slane %v2593_v31, 1  ;;  %v2620_v51 = vsel %vm2490_vm8, %v7825_v2, -inf }
 0x2ca   : > { %v7833_v37 = vpop.f32.mrf.mxu1  ;;  %v2621_v35 = vmax.f32 %v2619_v55, %v2620_v51  ;;  %v2988_v40 = vsel %vm2490_vm8, %v7845_v0, 0.0 }
 0x2cb   : > { %v2985_v22 = vadd.f32 %v2984_v60, %v2983_v45  ;;  %v2595_v45 = vmax.f32 %v2593_v31, %v2594_v44  ;;  %v2827_v31 = vmul.f32 1.442695, %v2739_v47 }
 0x2cc   : > { %v7843_v3 = vpop.f32.mrf.mxu1  ;;  %v2623_v14 = vmax.f32 %v2621_v35, %v2622_v62  ;;  %v2626_v62 = vsel %vm2490_vm8, %v7833_v37, -inf }
 0x2cd   : > { %v2987_v33 = vadd.f32 %v2986_v57, %v2985_v22  ;;  %v7862_v34 = vmax.f32 %v2595_v45, %v2663_v32  ;;  %v2611_v22 = vrot.slane %v2610_v41, 4  ;;  %v2624_v55 = vsel %vm2490_vm8, %v7843_v3, -inf }
 0x2ce   : > { %v7853_v42 = vpop.f32.mrf.mxu1  ;;  %v2625_v51 = vmax.f32 %v2623_v14, %v2624_v55  ;;  %5637 = vpow2.f32 %v2827_v31 }
 0x2cf   : > { %v7860_v18 = vadd.f32 %v2988_v40, %v2987_v33  ;;  %v7874_v57 = vrot.slane %v7862_v34, %v7244_v13  ;;  %v2829_v40 = vmul.f32 1.442695, %v2740_v10  ;;  %v2612_v44 = vmax.f32 %v2610_v41, %v2611_v22 }
 0x2d0   : > { %v7858_v60 = vpop.f32.mrf.mxu1  ;;  %v2627_v32 = vmax.f32 %v2625_v51, %v2626_v62  ;;  %v8967_v10 = vsub.f32 %v7593_v43, %v7779_v27  ;;  %v2630_v43 = vsel %vm2490_vm8, %v7853_v42, -inf }
 0x2d1   : > { %v2747_v45 = vsub.f32 %v7647_v46, %v7874_v57  ;;  %5639 = vpow2.f32 %v2829_v40  ;;  %v2748_v35 = vsub.f32 %v7643_v6, %v7874_v57  ;;  %v2613_v47 = vrot.slane %v2612_v44, 2 }
 0x2d2   : > { %v7866_v25 = vpop.f32.mrf.mxu1  ;;  %v2831_v41 = vmul.f32 1.442695, %v8967_v10  ;;  %v2628_v22 = vsel %vm2490_vm8, %v7858_v60, -inf  ;;  %v2749_v10 = vsub.f32 %v7661_v15, %v7874_v57  ;;  %v2750_v15 = vsub.f32 %v7657_v58, %v7874_v57 }
 0x2d3   : > { %v2843_v55 = vmul.f32 1.442695, %v2747_v45  ;;  %v2845_v31 = vmul.f32 1.442695, %v2748_v35  ;;  %v2614_v40 = vmax.f32 %v2612_v44, %v2613_v47  ;;  %v2629_v0 = vmax.f32 %v2627_v32, %v2628_v22 }
 0x2d4   : > { %v7870_v20 = vpop.f32.mrf.mxu1  ;;  %v2639_v6 = vsel %vm2490_vm8, %v7866_v25, -inf  ;;  %5641 = vpow2.f32 %v2831_v41  ;;  %v8968_v35 = vsub.f32 %v7582_v23, %v7779_v27  ;;  %v2664_v41 = vrot.slane %v7464_v54, 5 }
 0x2d5   : > { %v2638_v46 = vsel %vm2490_vm8, %v7870_v20, -inf  ;;  %v2615_v28 = vrot.slane %v2614_v40, 1  ;;  %v2631_v61 = vmax.f32 %v2629_v0, %v2630_v43  ;;  %5643 = vpow2.f32 %v2843_v55 }
 0x2d6   : > { %v7876_v33 = vpop.f32.mrf.mxu1  ;;  %v2640_v51 = vmax.f32 %v2638_v46, %v2639_v6  ;;  %v2833_v47 = vmul.f32 1.442695, %v8968_v35  ;;  %5645 = vpow2.f32 %v2845_v31  ;;  %v8969_v22 = vsub.f32 %v7616_v30, %v7779_v27 }
 0x2d7   : > { %v2616_v32 = vmax.f32 %v2614_v40, %v2615_v28  ;;  %v2847_v6 = vmul.f32 1.442695, %v2749_v10  ;;  %v2632_v43 = vrot.slane %v2631_v61, 4  ;;  %v2643_v23 = vsel %vm2490_vm8, %v7876_v33, -inf }
 0x2d8   : > { %v7889_v14 = vpop.f32.mrf.mxu1  ;;  %v2835_v46 = vmul.f32 1.442695, %v8969_v22  ;;  %v8970_v28 = vsub.f32 %v7603_v29, %v7779_v27  ;;  %v2751_v30 = vsub.f32 %v7674_v63, %v7874_v57  ;;  %5647 = vpow2.f32 %v2833_v47 }
 0x2d9   : > { %v2641_v45 = vsel %vm2490_vm8, %v7889_v14, -inf  ;;  %v7914_v55 = vmax.f32 %v2616_v32, %v2664_v41  ;;  %v8971_v58 = vsub.f32 %v7633_v49, %v7779_v27  ;;  %v2849_v32 = vmul.f32 1.442695, %v2750_v15 }
 0x2da   : > { %v7897_v62 = vpop.f32.mrf.mxu1  ;;  %v2642_v44 = vmax.f32 %v2640_v51, %v2641_v45  ;;  %v2837_v31 = vmul.f32 1.442695, %v8970_v28  ;;  %5649 = vpow2.f32 %v2835_v46  ;;  %v2633_v47 = vmax.f32 %v2631_v61, %v2632_v43 }
 0x2db   : > { %v7923_v51 = vpop.eup %5637  ;;  %v2839_v10 = vmul.f32 1.442695, %v8971_v58  ;;  %v7930_v45 = vrot.slane %v7914_v55, %v7244_v13  ;;  %5651 = vpow2.f32 %v2847_v6  ;;  %v2851_v41 = vmul.f32 1.442695, %v2751_v30 }
 0x2dc   : > { %v7912_v0 = vpop.f32.mrf.mxu1  ;;  %v2644_v40 = vmax.f32 %v2642_v44, %v2643_v23  ;;  %5653 = vpow2.f32 %v2837_v31  ;;  %v2996_v46 = vsel %vm2490_vm8, %v7923_v51, 0.0  ;;  %v2634_v31 = vrot.slane %v2633_v47, 2 }
 0x2dd   : > { %v2645_v35 = vsel %vm2490_vm8, %v7912_v0, -inf  ;;  %v2755_v44 = vsub.f32 %v7733_v9, %v7930_v45  ;;  %v2756_v49 = vsub.f32 %v7719_v12, %v7930_v45  ;;  %v2757_v22 = vsub.f32 %v7747_v11, %v7930_v45 }
 0x2de   : > { %v7934_v29 = vpop.eup %5639  ;;  %v7936_v63 = vpop.f32.mrf.mxu1  ;;  %v2646_v23 = vmax.f32 %v2644_v40, %v2645_v35  ;;  %5655 = vpow2.f32 %v2839_v10  ;;  %v2758_v9 = vsub.f32 %v7741_v7, %v7930_v45  ;;  %v2752_v12 = vsub.f32 %v7670_v4, %v7874_v57 }
 0x2df   : > { %v2997_v15 = vsel %vm2490_vm8, %v7934_v29, 0.0  ;;  %5657 = vpow2.f32 %v2849_v32  ;;  %v2759_v61 = vsub.f32 %v7761_v39, %v7930_v45  ;;  %v2859_v43 = vmul.f32 1.442695, %v2755_v44 }
 0x2e0   : > { %v7954_v6 = vpop.f32.mrf.mxu1  ;;  %v2861_v28 = vmul.f32 1.442695, %v2756_v49  ;;  %v2647_v30 = vsel %vm2490_vm8, %v7897_v62, -inf  ;;  %v2998_v40 = vadd.f32 %v2997_v15, %v2996_v46  ;;  %5659 = vpow2.f32 %v2851_v41 }
 0x2e1   : > { %v7956_v11 = vpop.eup %5641  ;;  %v2863_v7 = vmul.f32 1.442695, %v2757_v22  ;;  %v2648_v58 = vmax.f32 %v2646_v23, %v2647_v30  ;;  %v8973_v4 = vsub.f32 %v7623_v53, %v7779_v27  ;;  %5661 = vpow2.f32 %v2859_v43 }
 0x2e2   : > { %v7960_v10 = vpop.eup %5643  ;;  %v2865_v35 = vmul.f32 1.442695, %v2758_v9  ;;  %v2649_v32 = vsel %vm2490_vm8, %v7954_v6, -inf  ;;  %v2753_v49 = vsub.f32 %v7703_v17, %v7874_v57  ;;  %v2760_v41 = vsub.f32 %v7753_v8, %v7930_v45 }
 0x2e3   : > { %8972 = vst [vmem:[#allocation103_spill] sm:$0xff] %v7960_v10  ;;  %v2841_v39 = vmul.f32 1.442695, %v8973_v4  ;;  %v7967_v44 = vpop.eup %5645  ;;  %5663 = vpow2.f32 %v2861_v28  ;;  %v2867_v22 = vmul.f32 1.442695, %v2759_v61  ;;  %v2999_v23 = vsel %vm2490_vm8, %v7956_v11, 0.0 }
 0x2e4   : > { %8974 = vst [vmem:[#allocation104_spill] sm:$0xff] %v7967_v44  ;;  %v2754_v53 = vsub.f32 %v7687_v16, %v7874_v57  ;;  %5665 = vpow2.f32 %v2863_v7  ;;  %v2635_v27 = vmax.f32 %v2633_v47, %v2634_v31  ;;  %v3000_v46 = vadd.f32 %v2999_v23, %v2998_v40 }
 0x2e5   : > { %v2853_v15 = vmul.f32 1.442695, %v2752_v12  ;;  %5667 = vpow2.f32 %v2865_v35  ;;  %v2650_v9 = vmax.f32 %v2648_v58, %v2649_v32  ;;  %v3017_v17 = vsel %vm2490_vm8, %v7960_v10, 0.0  ;;  %v7983_v28 = vpop.eup %5647  ;;  %v9006_v10 = vld [vmem:[#allocation100_spill] sm:$0xff] }
 0x2e6   : > { %v3018_v8 = vsel %vm2490_vm8, %v7967_v44, 0.0  ;;  %v2636_v43 = vrot.slane %v2635_v27, 1  ;;  %v2651_v61 = vsel %vm2490_vm8, %v7936_v63, -inf  ;;  %v2761_v16 = vsub.f32 %v7774_v50, %v7930_v45 }
 0x2e7   : > { %5669 = vpow2.f32 %v2867_v22  ;;  %v2869_v57 = vmul.f32 1.442695, %v2760_v41  ;;  %v2652_v47 = vmax.f32 %v2650_v9, %v2651_v61  ;;  %v7987_v12 = vpop.eup %5649  ;;  %v2855_v31 = vmul.f32 1.442695, %v2753_v49 }
 0x2e8   : > { %v2762_v30 = vsub.f32 %v7769_v1, %v7930_v45  ;;  %v2637_v40 = vmax.f32 %v2635_v27, %v2636_v43  ;;  %v2665_v7 = vrot.slane %v7464_v54, 6  ;;  %v7992_v58 = vpop.eup %5651  ;;  %5671 = vpow2.f32 %v2841_v39 }
 0x2e9   : > { %8975 = vst [vmem:[#allocation105_spill] sm:$0xff] %v7992_v58  ;;  %v2857_v4 = vmul.f32 1.442695, %v2754_v53  ;;  %v3019_v35 = vadd.f32 %v3018_v8, %v3017_v17  ;;  %v2653_v32 = vrot.slane %v2652_v47, 4  ;;  %v7994_v23 = vpop.eup %5653  ;;  %v3001_v50 = vsel %vm2490_vm8, %v7983_v28, 0.0 }
 0x2ea   : > { %5673 = vpow2.f32 %v2853_v15  ;;  %v7998_v41 = vmax.f32 %v2637_v40, %v2665_v7  ;;  %v3002_v1 = vadd.f32 %v3001_v50, %v3000_v46  ;;  %v3003_v45 = vsel %vm2490_vm8, %v7987_v12, 0.0 }
 0x2eb   : > { %v8000_v49 = vpop.eup %5655  ;;  %5675 = vpow2.f32 %v2869_v57  ;;  %v2871_v22 = vmul.f32 1.442695, %v2761_v16  ;;  %v3020_v53 = vsel %vm2490_vm8, %v7992_v58, 0.0  ;;  %v2873_v27 = vmul.f32 1.442695, %v2762_v30 }
 0x2ec   : > { %v8004_v39 = vpop.eup %5657  ;;  %5677 = vpow2.f32 %v2855_v31  ;;  %v2710_v15 = vrot.slane %v7998_v41, %v7244_v13  ;;  %v3005_v9 = vsel %vm2490_vm8, %v7994_v23, 0.0  ;;  %v3021_v46 = vadd.f32 %v3020_v53, %v3019_v35 }
 0x2ed   : > { %8976 = vst [vmem:[#allocation106_spill] sm:$0xff] %v8004_v39  ;;  %5679 = vpow2.f32 %v2857_v4  ;;  %v2654_v17 = vmax.f32 %v2652_v47, %v2653_v32  ;;  %v8012_v8 = vpop.eup %5659  ;;  %v3004_v30 = vadd.f32 %v3003_v45, %v3002_v1  ;;  %v3022_v40 = vsel %vm2490_vm8, %v8004_v39, 0.0 }
 0x2ee   : > { %8977 = vst [vmem:[#allocation107_spill] sm:$0xff] %v8012_v8  ;;  %v2763_v43 = vsub.f32 %v7797_v48, %v2710_v15  ;;  %v2764_v61 = vsub.f32 %v7781_v19, %v2710_v15  ;;  %v2765_v16 = vsub.f32 %v7825_v2, %v2710_v15  ;;  %v2766_v57 = vsub.f32 %v7811_v38, %v2710_v15  ;;  %v8018_v31 = vpop.eup %5661 }
 0x2ef   : > { %8978 = vst [vmem:[#allocation108_spill] sm:$0xff] %v8018_v31  ;;  %5681 = vpow2.f32 %v2871_v22  ;;  %v2767_v7 = vsub.f32 %v7843_v3, %v2710_v15  ;;  %v3038_v48 = vsel %vm2490_vm8, %v8018_v31, 0.0  ;;  %v2768_v35 = vsub.f32 %v7833_v37, %v2710_v15 }
 0x2f0   : > { %v8023_v47 = vpop.eup %5663  ;;  %5683 = vpow2.f32 %v2873_v27  ;;  %v2875_v19 = vmul.f32 1.442695, %v2763_v43  ;;  %v2877_v4 = vmul.f32 1.442695, %v2764_v61  ;;  %v2879_v32 = vmul.f32 1.442695, %v2765_v16 }
 0x2f1   : > { %8979 = vst [vmem:[#allocation109_spill] sm:$0xff] %v8023_v47  ;;  %v8027_v2 = vpop.eup %5665  ;;  %v3039_v38 = vsel %vm2490_vm8, %v8023_v47, 0.0  ;;  %v2881_v50 = vmul.f32 1.442695, %v2766_v57  ;;  %v3023_v3 = vadd.f32 %v3022_v40, %v3021_v46  ;;  %v2655_v22 = vrot.slane %v2654_v17, 2 }
 0x2f2   : > { %8980 = vst [vmem:[#allocation110_spill] sm:$0xff] %v8027_v2  ;;  %v8032_v1 = vpop.eup %5667  ;;  %v3040_v45 = vadd.f32 %v3039_v38, %v3038_v48  ;;  %5685 = vpow2.f32 %v2875_v19  ;;  %v3041_v53 = vsel %vm2490_vm8, %v8027_v2, 0.0  ;;  %v2769_v27 = vsub.f32 %v7858_v60, %v2710_v15 }
 0x2f3   : > { %8981 = vst [vmem:[#allocation111_spill] sm:$0xff] %v8032_v1  ;;  %5687 = vpow2.f32 %v2877_v4  ;;  %v2883_v43 = vmul.f32 1.442695, %v2767_v7  ;;  %v3006_v47 = vadd.f32 %v3005_v9, %v3004_v30  ;;  %v3024_v37 = vsel %vm2490_vm8, %v8012_v8, 0.0 }
 0x2f4   : > { %v8037_v61 = vpop.eup %5669  ;;  %v3042_v16 = vadd.f32 %v3041_v53, %v3040_v45  ;;  %5689 = vpow2.f32 %v2879_v32  ;;  %v3043_v46 = vsel %vm2490_vm8, %v8032_v1, 0.0  ;;  %v2770_v57 = vsub.f32 %v7853_v42, %v2710_v15 }
 0x2f5   : > { %8982 = vst [vmem:[#allocation112_spill] sm:$0xff] %v8037_v61  ;;  %5691 = vpow2.f32 %v2881_v50  ;;  %v2885_v40 = vmul.f32 1.442695, %v2768_v35  ;;  %v8044_v48 = vpop.eup %5671  ;;  %v3007_v60 = vsel %vm2490_vm8, %v8000_v49, 0.0  ;;  %v3025_v7 = vadd.f32 %v3024_v37, %v3023_v3 }
 0x2f6   : > { %v3044_v19 = vadd.f32 %v3043_v46, %v3042_v16  ;;  %v3045_v30 = vsel %vm2490_vm8, %v8037_v61, 0.0  ;;  %5693 = vpow2.f32 %v2883_v43  ;;  %v2887_v4 = vmul.f32 1.442695, %v2769_v27 }
 0x2f7   : > { %v8048_v9 = vpop.eup %5673  ;;  %v2656_v38 = vmax.f32 %v2654_v17, %v2655_v22  ;;  %v3008_v42 = vadd.f32 %v3007_v60, %v3006_v47  ;;  %v2666_v35 = vrot.slane %v7464_v54, 7  ;;  %v2948_v45 = vrot.slane %v7651_v36, 4 }
 0x2f8   : > { %8983 = vst [vmem:[#allocation113_spill] sm:$0xff] %v8048_v9  ;;  %v8052_v32 = vpop.eup %5675  ;;  %v3046_v15 = vadd.f32 %v3045_v30, %v3044_v19  ;;  %5695 = vpow2.f32 %v2885_v40  ;;  %v2889_v3 = vmul.f32 1.442695, %v2770_v57  ;;  %v2969_v16 = vrot.slane %v7755_v52, 4 }
 0x2f9   : > { %8984 = vst [vmem:[#allocation114_spill] sm:$0xff] %v8052_v32  ;;  %v8055_v50 = vpop.eup %5677  ;;  %v2657_v53 = vrot.slane %v2656_v38, 1  ;;  %v3009_v17 = vsel %vm2490_vm8, %v8044_v48, 0.0  ;;  %v2921_v22 = vrot.slane %v7862_v34, 4  ;;  %v3026_v47 = vsel %vm2490_vm8, %v8048_v9, 0.0 }
 0x2fa   : > { %8985 = vst [vmem:[#allocation115_spill] sm:$0xff] %v8055_v50  ;;  %v8058_v37 = vpop.eup %5679  ;;  %v3027_v27 = vadd.f32 %v3026_v47, %v3025_v7  ;;  %v3047_v43 = vsel %vm2490_vm8, %v8052_v32, 0.0  ;;  %5697 = vpow2.f32 %v2887_v4  ;;  %v8070_v40 = vadd.f32 %v3009_v17, %v3008_v42 }
 0x2fb   : > { %8986 = vst [vmem:[#allocation116_spill] sm:$0xff] %v8058_v37  ;;  %v2658_v46 = vmax.f32 %v2656_v38, %v2657_v53  ;;  %v3048_v60 = vadd.f32 %v3047_v43, %v3046_v15  ;;  %v2923_v30 = vrot.slane %v7914_v55, 3  ;;  %5699 = vpow2.f32 %v2889_v3 }
 0x2fc   : > { %v8068_v57 = vpop.eup %5681  ;;  %v8076_v61 = vadd.f32 %v2948_v45, %v7651_v36  ;;  %v8079_v7 = vadd.f32 %v2969_v16, %v7755_v52  ;;  %v2990_v4 = vrot.slane %v7860_v18, 4  ;;  %v3028_v38 = vsel %vm2490_vm8, %v8055_v50, 0.0  ;;  %v8999_v50 = vld [vmem:[#allocation93_spill] sm:$0xff] }
 0x2fd   : > { %8987 = vst [vmem:[#allocation117_spill] sm:$0xff] %v8068_v57  ;;  %v8072_v19 = vpop.eup %5683  ;;  %v2682_v34 = vmax.f32 %v2658_v46, %v2666_v35  ;;  %v2922_v15 = vsel %vm824_vm4, %v2921_v22, %v7823_v5  ;;  %v3029_v53 = vadd.f32 %v3028_v38, %v3027_v27  ;;  %v3049_v55 = vsel %vm2490_vm8, %v8068_v57, 0.0 }
 0x2fe   : > { %8988 = vst [vmem:[#allocation118_spill] sm:$0xff] %v8072_v19  ;;  %v3011_v52 = vrot.slane %v8070_v40, 4  ;;  %v3050_v45 = vadd.f32 %v3049_v55, %v3048_v60  ;;  %v2925_v3 = vrot.slane %v7998_v41, 2  ;;  %v2924_v5 = vsel %vm827_vm5, %v2923_v30, %v2922_v15 }
 0x2ff   : > { %v8084_v42 = vpop.eup %5685  ;;  %v8091_v36 = vrot.slane %v2682_v34, %v7244_v13  ;;  %v3030_v41 = vsel %vm2490_vm8, %v8058_v37, 0.0  ;;  %v2927_v38 = vrot.slane %v2682_v34, 1  ;;  %v3051_v15 = vsel %vm2490_vm8, %v8072_v19, 0.0 }
 0x300   : > { %v8093_v35 = vpop.eup %5687  ;;  %v3059_v16 = vsel %vm2490_vm8, %v8084_v42, 0.0  ;;  %v3031_v30 = vadd.f32 %v3030_v41, %v3029_v53  ;;  %v3052_v57 = vadd.f32 %v3051_v15, %v3050_v45  ;;  %v2926_v32 = vsel %vm830_vm6, %v2925_v3, %v2924_v5 }
 0x301   : > { %v8099_v17 = vpop.eup %5689  ;;  %v3060_v22 = vsel %vm2490_vm8, %v8093_v35, 0.0  ;;  %v2771_v47 = vsub.f32 %v7870_v20, %v8091_v36  ;;  %v2772_v27 = vsub.f32 %v7866_v25, %v8091_v36  ;;  %v2773_v60 = vsub.f32 %v7889_v14, %v8091_v36 }
 0x302   : > { %v8108_v43 = vpop.eup %5691  ;;  %v3061_v46 = vadd.f32 %v3060_v22, %v3059_v16  ;;  %v3062_v20 = vsel %vm2490_vm8, %v8099_v17, 0.0  ;;  %v2774_v25 = vsub.f32 %v7876_v33, %v8091_v36  ;;  %v2775_v14 = vsub.f32 %v7912_v0, %v8091_v36 }
 0x303   : > { %v8120_v55 = vpop.eup %5693  ;;  %v3064_v34 = vsel %vm2490_vm8, %v8108_v43, 0.0  ;;  %v2776_v53 = vsub.f32 %v7897_v62, %v8091_v36  ;;  %v2891_v22 = vmul.f32 1.442695, %v2771_v47  ;;  %v2893_v41 = vmul.f32 1.442695, %v2772_v27 }
 0x304   : > { %v3063_v16 = vadd.f32 %v3062_v20, %v3061_v46  ;;  %v2777_v45 = vsub.f32 %v7954_v6, %v8091_v36  ;;  %v2895_v15 = vmul.f32 1.442695, %v2773_v60  ;;  %v2928_v3 = vsel %vm833_vm7, %v2927_v38, %v2926_v32 }
 0x305   : > { %v8129_v19 = vpop.eup %5695  ;;  %v3032_v5 = vrot.slane %v3031_v30, 4  ;;  %v3066_v0 = vsel %vm2490_vm8, %v8120_v55, 0.0  ;;  %5701 = vpow2.f32 %v2891_v22  ;;  %v2897_v46 = vmul.f32 1.442695, %v2774_v25 }
 0x306   : > { %v3065_v33 = vadd.f32 %v3064_v34, %v3063_v16  ;;  %v3053_v62 = vrot.slane %v3052_v57, 4  ;;  %5703 = vpow2.f32 %v2893_v41  ;;  %v2899_v27 = vmul.f32 1.442695, %v2775_v14 }
 0x307   : > { %v8136_v20 = vpop.eup %5697  ;;  %v3068_v16 = vsel %vm2490_vm8, %v8129_v19, 0.0  ;;  %5705 = vpow2.f32 %v2895_v15  ;;  %v2901_v6 = vmul.f32 1.442695, %v2776_v53  ;;  %v2930_v60 = vsub.f32 %v7464_v54, %v2928_v3 }
 0x308   : > { %v3067_v47 = vadd.f32 %v3066_v0, %v3065_v33  ;;  %v8141_v32 = vpop.eup %5699  ;;  %v2778_v34 = vsub.f32 %v7936_v63, %v8091_v36  ;;  %5707 = vpow2.f32 %v2897_v46  ;;  %v2903_v25 = vmul.f32 1.442695, %v2777_v45 }
 0x309   : > { %v2991_v22 = vadd.f32 %v2990_v4, %v7860_v18  ;;  %v3012_v41 = vadd.f32 %v3011_v52, %v8070_v40  ;;  %v3070_v14 = vsel %vm2490_vm8, %v8136_v20, 0.0  ;;  %v2931_v33 = vmul.f32 1.442695, %v2930_v60 }
 0x30a   : > { %v3069_v38 = vadd.f32 %v3068_v16, %v3067_v47  ;;  %v3033_v15 = vadd.f32 %v3032_v5, %v3031_v30  ;;  %v3054_v53 = vadd.f32 %v3053_v62, %v3052_v57  ;;  %5709 = vpow2.f32 %v2899_v27 }
 0x30b   : > { %v3072_v54 = vsel %vm2490_vm8, %v8141_v32, 0.0  ;;  %5711 = vpow2.f32 %v2901_v6  ;;  %v2950_v63 = vrot.slane %v8076_v61, 2  ;;  %v2905_v45 = vmul.f32 1.442695, %v2778_v34 }
 0x30c   : > { %v3071_v0 = vadd.f32 %v3070_v14, %v3069_v38  ;;  %5713 = vpow2.f32 %v2903_v25  ;;  %v2971_v18 = vrot.slane %v8079_v7, 2  ;;  %v2992_v40 = vrot.slane %v2991_v22, 2 }
 0x30d   : > { %v3013_v4 = vrot.slane %v3012_v41, 2  ;;  %5715 = vpow2.f32 %v2931_v33  ;;  %v3034_v52 = vrot.slane %v3033_v15, 2  ;;  %v3055_v3 = vrot.slane %v3054_v53, 2 }
 0x30e   : > { %v3073_v36 = vadd.f32 %v3072_v54, %v3071_v0  ;;  %v2951_v57 = vadd.f32 %v2950_v63, %v8076_v61  ;;  %5717 = vpow2.f32 %v2905_v45  ;;  %v2972_v46 = vadd.f32 %v2971_v18, %v8079_v7 }
 0x30f   : > { %v2993_v62 = vadd.f32 %v2992_v40, %v2991_v22  ;;  %v3014_v47 = vadd.f32 %v3013_v4, %v3012_v41  ;;  %v3035_v16 = vadd.f32 %v3034_v52, %v3033_v15  ;;  %v3056_v6 = vadd.f32 %v3055_v3, %v3054_v53 }
 0x310   : > { %v3074_v30 = vrot.slane %v3073_v36, 4  ;;  %v2952_v14 = vrot.slane %v2951_v57, 1  ;;  %v2973_v22 = vrot.slane %v2972_v46, 1 }
 0x311   : > { %v2994_v41 = vrot.slane %v2993_v62, 1  ;;  %v3015_v0 = vrot.slane %v3014_v47, 1  ;;  %v3036_v53 = vrot.slane %v3035_v16, 1  ;;  %v3057_v54 = vrot.slane %v3056_v6, 1 }
 0x312   : > { %v3075_v5 = vadd.f32 %v3074_v30, %v3073_v36  ;;  %v8155_v27 = vpop.eup %5701  ;;  %v2953_v4 = vadd.f32 %v2952_v14, %v2951_v57  ;;  %v2974_v30 = vadd.f32 %v2973_v22, %v2972_v46 }
 0x313   : > { %v8157_v38 = vpop.eup %5703  ;;  %v3080_v34 = vsel %vm2490_vm8, %v8155_v27, 0.0  ;;  %v3037_v1 = vadd.f32 %v3036_v53, %v3035_v16  ;;  %v3058_v2 = vadd.f32 %v3057_v54, %v3056_v6 }
 0x314   : > { %v3076_v60 = vrot.slane %v3075_v5, 2  ;;  %v8161_v25 = vpop.eup %5705  ;;  %v3081_v33 = vsel %vm2490_vm8, %v8157_v38, 0.0 }
 0x315   : > { %v8165_v7 = vpop.eup %5707  ;;  %v3082_v15 = vadd.f32 %v3081_v33, %v3080_v34  ;;  %v3083_v36 = vsel %vm2490_vm8, %v8161_v25, 0.0 }
 0x316   : > { %v3077_v61 = vadd.f32 %v3076_v60, %v3075_v5  ;;  %v3085_v52 = vsel %vm2490_vm8, %v8165_v7, 0.0  ;;  %v2995_v5 = vadd.f32 %v2994_v41, %v2993_v62  ;;  %v3016_v60 = vadd.f32 %v3015_v0, %v3014_v47 }
 0x317   : > { %v8169_v45 = vpop.eup %5709  ;;  %v3084_v18 = vadd.f32 %v3083_v36, %v3082_v15 }
 0x318   : > { %v3078_v63 = vrot.slane %v3077_v61, 1  ;;  %v8171_v40 = vpop.eup %5711  ;;  %v3087_v15 = vsel %vm2490_vm8, %v8169_v45, 0.0 }
 0x319   : > { %v8175_v3 = vpop.eup %5713  ;;  %v3086_v34 = vadd.f32 %v3085_v52, %v3084_v18  ;;  %v3089_v57 = vsel %vm2490_vm8, %v8171_v40, 0.0 }
 0x31a   : > { %v8177_v33 = vpop.eup %5715  ;;  %v3079_v31 = vadd.f32 %v3078_v63, %v3077_v61  ;;  %v3091_v22 = vsel %vm2490_vm8, %v8175_v3, 0.0 }
 0x31b   : > { %v3088_v36 = vadd.f32 %v3087_v15, %v3086_v34  ;;  %v3117_v14 = vadd.f32 %v8177_v33, %v2953_v4  ;;  %v3102_v37 = vrot.slane %v8177_v33, 1  ;;  %v3103_v46 = vrot.slane %v8177_v33, 2  ;;  %v8189_v6 = vpop.eup %5717 }
 0x31c   : > { %v3104_v62 = vrot.slane %v8177_v33, 3  ;;  %v3105_v47 = vrot.slane %v8177_v33, 4  ;;  %v3106_v16 = vrot.slane %v8177_v33, 5  ;;  %v3107_v0 = vrot.slane %v8177_v33, 6 }
 0x31d   : > { %v3090_v61 = vadd.f32 %v3089_v57, %v3088_v36  ;;  %5719 = vrcp.f32 %v3117_v14  ;;  %v3118_v41 = vadd.f32 %v3102_v37, %v2974_v30  ;;  %v3119_v53 = vadd.f32 %v3103_v46, %v2995_v5 }
 0x31e   : > { %v3120_v54 = vadd.f32 %v3104_v62, %v3016_v60  ;;  %v3121_v63 = vadd.f32 %v3105_v47, %v3037_v1  ;;  %v3122_v4 = vadd.f32 %v3106_v16, %v3058_v2  ;;  %v3093_v52 = vsel %vm2490_vm8, %v8189_v6, 0.0 }
 0x31f   : > { %v3092_v18 = vadd.f32 %v3091_v22, %v3090_v61  ;;  %5721 = vrcp.f32 %v3118_v41  ;;  %v3123_v34 = vadd.f32 %v3107_v0, %v3079_v31  ;;  %v3108_v2 = vrot.slane %v8177_v33, 7  ;;  %v8989_v0 = vld [vmem:[#allocation84_spill] sm:$0xff] }
 0x320   : > { %5723 = vrcp.f32 %v3119_v53 }
 0x321   : > { %v3094_v15 = vadd.f32 %v3093_v52, %v3092_v18  ;;  %5725 = vrcp.f32 %v3120_v54  ;;  %v8990_v54 = vld [vmem:[#allocation85_spill] sm:$0xff] }
 0x322   : > { %5727 = vrcp.f32 %v3121_v63 }
 0x323   : > { %v3095_v36 = vrot.slane %v3094_v15, 4  ;;  %5729 = vrcp.f32 %v3122_v4 }
 0x324   : > { %5731 = vrcp.f32 %v3123_v34 }
 0x325   : > { %v3096_v37 = vadd.f32 %v3095_v36, %v3094_v15 }
 0x327   : > { %v3097_v30 = vrot.slane %v3096_v37, 2 }
 0x329   : > { %v3098_v57 = vadd.f32 %v3097_v30, %v3096_v37  ;;  %v8993_v30 = vld [vmem:[#allocation87_spill] sm:$0xff] }
 0x32a   : > { %v5720_v5 = vpop.eup %5719 }
 0x32b   : > { %v3099_v60 = vrot.slane %v3098_v57, 1  ;;  %v3144_v1 = vrot.slane %v5720_v5, %v7244_v13 }
 0x32c   : > { %v5722_v14 = vpop.eup %5721 }
 0x32d   : > { %v5724_v46 = vpop.eup %5723  ;;  %v3100_v62 = vadd.f32 %v3099_v60, %v3098_v57  ;;  %v3173_v31 = vmul.f32 %v7584_v56, %v3144_v1  ;;  %v3174_v47 = vmul.f32 %v7586_v26, %v3144_v1  ;;  %v3175_v16 = vmul.f32 %v7595_v24, %v3144_v1  ;;  %v8991_v56 = vld [vmem:[#allocation86_spill] sm:$0xff]  ;;  %v8994_v60 = vld [vmem:[#allocation88_spill] sm:$0xff] }
 0x32e   : > { %v8201_v61 = vpop.eup %5725  ;;  %v3176_v22 = vmul.f32 %v7599_v21, %v3144_v1  ;;  %v3177_v41 = vmul.f32 %v7605_v59, %v3144_v1  ;;  %v3178_v53 = vmul.f32 %v8989_v0, %v3144_v1  ;;  %v3179_v63 = vmul.f32 %v8990_v54, %v3144_v1  ;;  %v8998_v54 = vld [vmem:[#allocation92_spill] sm:$0xff] }
 0x32f   : > { %v8207_v18 = vpop.eup %5727  ;;  %v3124_v4 = vadd.f32 %v3108_v2, %v3100_v62  ;;  %5361 = vmatprep.mubr.msk.f32.mxu0 %vm2490_vm8, %v3173_v31  ;;  %v3180_v52 = vmul.f32 %v8991_v56, %v3144_v1  ;;  %v3148_v26 = vrot.slane %v5722_v14, %v7244_v13  ;;  %v3826_v24 = vrot.slane %v5722_v14, 7  ;;  %v8995_v14 = vld [vmem:[#allocation89_spill] sm:$0xff]  ;;  %v8996_v62 = vld [vmem:[#allocation90_spill] sm:$0xff] }
 0x330   : > { %v8212_v34 = vpop.eup %5729  ;;  %5362 = vmatmul.mubr.msk.f32.vlgmr.msra.gmra.mxu0 %vm2490_vm8, %v3174_v47  ;;  %v3828_v21 = vrot.slane %v5724_v46, 6  ;;  %v3830_v59 = vrot.slane %v8201_v61, 5  ;;  %v3832_v15 = vrot.slane %v8207_v18, 4  ;;  %v3152_v36 = vrot.slane %v5724_v46, %v7244_v13  ;;  %v8997_v47 = vld [vmem:[#allocation91_spill] sm:$0xff] }
 0x331   : > { %8992 = vst [vmem:[#allocation84_spill] sm:$0xff] %v8212_v34  ;;  %v5732_v37 = vpop.eup %5731  ;;  %5733 = vrcp.f32 %v3124_v4  ;;  %5364 = vmatprep.mubr.msk.f32.mxu0 %vm2490_vm8, %v3175_v16  ;;  %v3181_v57 = vmul.f32 %v8993_v30, %v3148_v26  ;;  %v3182_v1 = vmul.f32 %v8994_v60, %v3148_v26  ;;  %v3183_v2 = vmul.f32 %v8995_v14, %v3148_v26  ;;  %v9000_v16 = vld [vmem:[#allocation94_spill] sm:$0xff]  ;;  %v9001_v60 = vld [vmem:[#allocation95_spill] sm:$0xff] }
 0x332   : > { %v3184_v31 = vmul.f32 %v8996_v62, %v3148_v26  ;;  %v3185_v0 = vmul.f32 %v8997_v47, %v3148_v26  ;;  %v3186_v56 = vmul.f32 %v8998_v54, %v3148_v26  ;;  %v3187_v9 = vmul.f32 %v8999_v50, %v3148_v26  ;;  %v9002_v62 = vld [vmem:[#allocation96_spill] sm:$0xff]  ;;  %v9003_v47 = vld [vmem:[#allocation97_spill] sm:$0xff]  ;;  %v9005_v54 = vld [vmem:[#allocation99_spill] sm:$0xff] }
 0x333   : > { %v3827_v46 = vsel %vm815_vm1, %v3826_v24, %v5720_v5  ;;  %v3834_v4 = vrot.slane %v8212_v34, 3  ;;  %v3836_v8 = vrot.slane %v5732_v37, 2  ;;  %v3188_v39 = vmul.f32 %v9000_v16, %v3148_v26  ;;  %v9004_v5 = vld [vmem:[#allocation98_spill] sm:$0xff]  ;;  %v9007_v16 = vld [vmem:[#allocation101_spill] sm:$0xff] }
 0x334   : > { %5365 = vmatmul.mubr.msk.f32.gmra.mxu0 %vm2490_vm8, %v3176_v22  ;;  %v3829_v30 = vsel %vm818_vm2, %v3828_v21, %v3827_v46  ;;  %v3189_v14 = vmul.f32 %v9001_v60, %v3152_v36  ;;  %v3190_v58 = vmul.f32 %v9002_v62, %v3152_v36  ;;  %v3191_v44 = vmul.f32 %v9003_v47, %v3152_v36  ;;  %v9008_v46 = vld [vmem:[#allocation102_spill] sm:$0xff] }
 0x335   : > { %5367 = vmatprep.mubr.msk.f32.mxu0 %vm2490_vm8, %v3177_v41  ;;  %v3831_v50 = vsel %vm821_vm3, %v3830_v59, %v3829_v30  ;;  %v3192_v24 = vmul.f32 %v9004_v5, %v3152_v36  ;;  %v3193_v34 = vmul.f32 %v9005_v54, %v3152_v36  ;;  %v3194_v26 = vmul.f32 %v9006_v10, %v3152_v36 }
 0x336   : > { %v3833_v22 = vsel %vm824_vm4, %v3832_v15, %v3831_v50  ;;  %v3195_v21 = vmul.f32 %v9007_v16, %v3152_v36  ;;  %v3196_v60 = vmul.f32 %v9008_v46, %v3152_v36  ;;  %v3168_v59 = vrot.slane %v5732_v37, %v7244_v13  ;;  %v9019_v50 = vld [vmem:[#allocation108_spill] sm:$0xff] }
 0x337   : > { %v3835_v62 = vsel %vm827_vm5, %v3834_v4, %v3833_v22 }
 0x338   : > { %5368 = vmatmul.mubr.msk.f32.gmra.mxu0 %vm2490_vm8, %v3178_v53  ;;  %v3837_v41 = vsel %vm830_vm6, %v3836_v8, %v3835_v62  ;;  %v8250_v15 = vmul.f32 %v8084_v42, %v3168_v59  ;;  %v8253_v36 = vmul.f32 %v8093_v35, %v3168_v59  ;;  %v8256_v4 = vmul.f32 %v8099_v17, %v3168_v59 }
 0x339   : > { %5370 = vmatprep.mubr.msk.f32.mxu0 %vm2490_vm8, %v3179_v63  ;;  %v8259_v8 = vmul.f32 %v8108_v43, %v3168_v59  ;;  %v8262_v63 = vmul.f32 %v8120_v55, %v3168_v59  ;;  %v8269_v42 = vmul.f32 %v8136_v20, %v3168_v59  ;;  %v8272_v35 = vmul.f32 %v8141_v32, %v3168_v59 }
 0x33c   : > { %5371 = vmatmul.mubr.msk.f32.gmra.mxu0 %vm2490_vm8, %v3180_v52  ;;  %v8265_v52 = vmul.f32 %v8129_v19, %v3168_v59 }
 0x33d   : > { %5373 = vmatprep.mubr.msk.f32.mxu0 %vm2490_vm8, %v3181_v57 }
 0x33e   : > { %v5734_v10 = vpop.eup %5733 }
 0x33f   : > { %v3838_v53 = vrot.slane %v5734_v10, 1  ;;  %v3172_v17 = vrot.slane %v5734_v10, %v7244_v13  ;;  %v9026_v10 = vld [vmem:[#allocation118_spill] sm:$0xff] }
 0x340   : > { %5374 = vmatmul.mubr.msk.f32.gmra.mxu0 %vm2490_vm8, %v3182_v1 }
 0x341   : > { %5376 = vmatprep.mubr.msk.f32.mxu0 %vm2490_vm8, %v3183_v2  ;;  %v3839_v43 = vsel %vm833_vm7, %v3838_v53, %v3837_v41  ;;  %v8279_v37 = vmul.f32 %v8155_v27, %v3172_v17  ;;  %v8282_v19 = vmul.f32 %v8157_v38, %v3172_v17  ;;  %v8285_v20 = vmul.f32 %v8161_v25, %v3172_v17  ;;  %v9025_v41 = vld [vmem:[#allocation117_spill] sm:$0xff] }
 0x342   : > { %v3841_v55 = vmul.f32 %v8177_v33, %v3839_v43  ;;  %v8288_v32 = vmul.f32 %v8165_v7, %v3172_v17  ;;  %v8291_v57 = vmul.f32 %v8169_v45, %v3172_v17  ;;  %v8294_v1 = vmul.f32 %v8171_v40, %v3172_v17 }
 0x343   : > { %v8297_v33 = vmul.f32 %v8175_v3, %v3172_v17  ;;  %v8302_v27 = vmul.f32 %v8189_v6, %v3172_v17  ;;  %v9009_v38 = vmov 0.0   ;;  %v3156_v25 = vrot.slane %v8201_v61, %v7244_v13  ;;  %v4122_v17 = vld [vmem:[#allocation10 + $0x70] sm:$0xff] }
 0x344   : > { %5377 = vmatmul.mubr.msk.f32.gmra.mxu0 %vm2490_vm8, %v3184_v31  ;;  %5460 = vmatmul.mubr.msk.f32.vlgmr.msra.gmra.mxu1 %vm2490_vm8, %v3841_v55  ;;  %v9016_v31 = vld [vmem:[#allocation115_spill] sm:$0xff]  ;;  %v9029_v55 = vld [vmem:[#allocation37_spill] sm:$0xff] }
 0x345   : > { %5379 = vmatprep.mubr.msk.f32.mxu0 %vm2490_vm8, %v3185_v0  ;;  %5494 = vmatprep.mubr.msk.f32.mxu1 %vm5949_vm0, %v9009_v38  ;;  %v3201_v7 = vmul.f32 %v7987_v12, %v3156_v25  ;;  %v3203_v45 = vmul.f32 %v8000_v49, %v3156_v25  ;;  %v9011_v12 = vld [vmem:[#allocation104_spill] sm:$0xff]  ;;  %v9013_v49 = vld [vmem:[#allocation106_spill] sm:$0xff] }
 0x348   : > { %5380 = vmatmul.mubr.msk.f32.gmra.mxu0 %vm2490_vm8, %v3186_v56  ;;  %v9017_v56 = vld [vmem:[#allocation84_spill] sm:$0xff] }
 0x349   : > { %5382 = vmatprep.mubr.msk.f32.mxu0 %vm2490_vm8, %v3187_v9  ;;  %v3197_v9 = vmul.f32 %v7923_v51, %v3156_v25  ;;  %v3202_v51 = vmul.f32 %v7994_v23, %v3156_v25  ;;  %v9012_v23 = vld [vmem:[#allocation105_spill] sm:$0xff]  ;;  %v3164_v30 = vrot.slane %v9017_v56, %v7244_v13 }
 0x34b   : > { %v3213_v5 = vmul.f32 %v9019_v50, %v3164_v30  ;;  %v3219_v59 = vmul.f32 %v9025_v41, %v3164_v30  ;;  %v3220_v53 = vmul.f32 %v9026_v10, %v3164_v30  ;;  %v9039_v10 = vld [vmem:[#allocation29_spill] sm:$0xff] }
 0x34c   : > { %5383 = vmatmul.mubr.msk.f32.gmra.mxu0 %vm2490_vm8, %v3188_v39  ;;  %v3200_v39 = vmul.f32 %v7983_v28, %v3156_v25  ;;  %v9010_v28 = vld [vmem:[#allocation103_spill] sm:$0xff] }
 0x34d   : > { %5385 = vmatprep.mubr.msk.f32.mxu0 %vm2490_vm8, %v3189_v14  ;;  %v9018_v14 = vld [vmem:[#allocation116_spill] sm:$0xff] }
 0x350   : > { %5386 = vmatmul.mubr.msk.f32.gmra.mxu0 %vm2490_vm8, %v3190_v58  ;;  %v3198_v58 = vmul.f32 %v7934_v29, %v3156_v25  ;;  %v3160_v29 = vrot.slane %v8207_v18, %v7244_v13  ;;  %v9014_v18 = vld [vmem:[#allocation107_spill] sm:$0xff] }
 0x351   : > { %5388 = vmatprep.mubr.msk.f32.mxu0 %vm2490_vm8, %v3191_v44  ;;  %v3199_v44 = vmul.f32 %v7956_v11, %v3156_v25  ;;  %v3204_v11 = vmul.f32 %v8044_v48, %v3156_v25  ;;  %v9015_v48 = vld [vmem:[#allocation113_spill] sm:$0xff]  ;;  %v9022_v13 = vld [vmem:[#allocation111_spill] sm:$0xff] }
 0x352   : > { %v3205_v40 = vmul.f32 %v9010_v28, %v3160_v29  ;;  %v3206_v3 = vmul.f32 %v9011_v12, %v3160_v29  ;;  %v3207_v6 = vmul.f32 %v9012_v23, %v3160_v29  ;;  %v3208_v61 = vmul.f32 %v9013_v49, %v3160_v29  ;;  %v4120_v25 = vld [vmem:[#allocation10 + $0x60] sm:$0xff]  ;;  %v9034_v49 = vld [vmem:[#allocation20_spill] sm:$0xff] }
 0x353   : > { %v3210_v2 = vmul.f32 %v9015_v48, %v3160_v29  ;;  %v3211_v0 = vmul.f32 %v9016_v31, %v3160_v29  ;;  %v3212_v47 = vmul.f32 %v9018_v14, %v3160_v29  ;;  %v3216_v16 = vmul.f32 %v9022_v13, %v3164_v30  ;;  %v4119_v48 = vld [vmem:[#allocation10 + $0x58] sm:$0xff]  ;;  %v9035_v31 = vld [vmem:[#allocation21_spill] sm:$0xff]  ;;  %v4118_v14 = vld [vmem:[#allocation10 + $0x50] sm:$0xff] }
 0x354   : > { %5389 = vmatmul.mubr.msk.f32.gmra.mxu0 %vm2490_vm8, %v3192_v24  ;;  %v9020_v24 = vld [vmem:[#allocation109_spill] sm:$0xff] }
 0x355   : > { %5391 = vmatprep.mubr.msk.f32.mxu0 %vm2490_vm8, %v3193_v34  ;;  %v3209_v34 = vmul.f32 %v9014_v18, %v3160_v29  ;;  %v3214_v54 = vmul.f32 %v9020_v24, %v3164_v30 }
 0x358   : > { %5392 = vmatmul.mubr.msk.f32.gmra.mxu0 %vm2490_vm8, %v3194_v26  ;;  %v9021_v26 = vld [vmem:[#allocation110_spill] sm:$0xff] }
 0x359   : > { %5394 = vmatprep.mubr.msk.f32.mxu0 %vm2490_vm8, %v3195_v21  ;;  %v3215_v22 = vmul.f32 %v9021_v26, %v3164_v30  ;;  %v9023_v21 = vld [vmem:[#allocation112_spill] sm:$0xff] }
 0x35a   : > { %v3217_v46 = vmul.f32 %v9023_v21, %v3164_v30 }
 0x35c   : > { %5395 = vmatmul.mubr.msk.f32.gmra.mxu0 %vm2490_vm8, %v3196_v60  ;;  %v9024_v60 = vld [vmem:[#allocation114_spill] sm:$0xff] }
 0x35d   : > { %5397 = vmatprep.mubr.msk.f32.mxu0 %vm2490_vm8, %v3197_v9  ;;  %v3218_v62 = vmul.f32 %v9024_v60, %v3164_v30 }
 0x360   : > { %5398 = vmatmul.mubr.msk.f32.gmra.mxu0 %vm2490_vm8, %v3198_v58  ;;  %v9031_v58 = vld [vmem:[#allocation65_spill] sm:$0xff] }
 0x361   : > { %5400 = vmatprep.mubr.msk.f32.mxu0 %vm2490_vm8, %v3199_v44 }
 0x364   : > { %5401 = vmatmul.mubr.msk.f32.gmra.mxu0 %vm2490_vm8, %v3200_v39 }
 0x365   : > { %5403 = vmatprep.mubr.msk.f32.mxu0 %vm2490_vm8, %v3201_v7 }
 0x368   : > { %5404 = vmatmul.mubr.msk.f32.gmra.mxu0 %vm2490_vm8, %v3202_v51  ;;  %v9032_v51 = vld [vmem:[#allocation49_spill] sm:$0xff] }
 0x369   : > { %5406 = vmatprep.mubr.msk.f32.mxu0 %vm2490_vm8, %v3203_v45 }
 0x36c   : > { %5407 = vmatmul.mubr.msk.f32.gmra.mxu0 %vm2490_vm8, %v3204_v11 }
 0x36d   : > { %5409 = vmatprep.mubr.msk.f32.mxu0 %vm2490_vm8, %v3205_v40  ;;  %v9033_v40 = vld [vmem:[#allocation54_spill] sm:$0xff] }
 0x370   : > { %5410 = vmatmul.mubr.msk.f32.gmra.mxu0 %vm2490_vm8, %v3206_v3 }
 0x371   : > { %5412 = vmatprep.mubr.msk.f32.mxu0 %vm2490_vm8, %v3207_v6 }
 0x374   : > { %5413 = vmatmul.mubr.msk.f32.gmra.mxu0 %vm2490_vm8, %v3208_v61 }
 0x375   : > { %5415 = vmatprep.mubr.msk.f32.mxu0 %vm2490_vm8, %v3209_v34 }
 0x378   : > { %5416 = vmatmul.mubr.msk.f32.gmra.mxu0 %vm2490_vm8, %v3210_v2 }
 0x379   : > { %5418 = vmatprep.mubr.msk.f32.mxu0 %vm2490_vm8, %v3211_v0 }
 0x37c   : > { %5419 = vmatmul.mubr.msk.f32.gmra.mxu0 %vm2490_vm8, %v3212_v47  ;;  %v4117_v47 = vld [vmem:[#allocation10 + $0x48] sm:$0xff] }
 0x37d   : > { %5421 = vmatprep.mubr.msk.f32.mxu0 %vm2490_vm8, %v3213_v5  ;;  %v9036_v5 = vld [vmem:[#allocation57_spill] sm:$0xff] }
 0x380   : > { %5422 = vmatmul.mubr.msk.f32.gmra.mxu0 %vm2490_vm8, %v3214_v54 }
 0x381   : > { %5424 = vmatprep.mubr.msk.f32.mxu0 %vm2490_vm8, %v3215_v22  ;;  %v4116_v22 = vld [vmem:[#allocation10 + $0x40] sm:$0xff] }
 0x384   : > { %5425 = vmatmul.mubr.msk.f32.gmra.mxu0 %vm2490_vm8, %v3216_v16  ;;  %v9037_v16 = vld [vmem:[#allocation19_spill] sm:$0xff] }
 0x385   : > { %5427 = vmatprep.mubr.msk.f32.mxu0 %vm2490_vm8, %v3217_v46  ;;  %v9038_v46 = vld [vmem:[#allocation24_spill] sm:$0xff] }
 0x388   : > { %5428 = vmatmul.mubr.msk.f32.gmra.mxu0 %vm2490_vm8, %v3218_v62 }
 0x389   : > { %5430 = vmatprep.mubr.msk.f32.mxu0 %vm2490_vm8, %v3219_v59  ;;  %v4115_v59 = vld [vmem:[#allocation10 + $0x38] sm:$0xff] }
 0x38c   : > { %5431 = vmatmul.mubr.msk.f32.gmra.mxu0 %vm2490_vm8, %v3220_v53 }
 0x38d   : > { %5433 = vmatprep.mubr.msk.f32.mxu0 %vm2490_vm8, %v8250_v15  ;;  %v8407_v15 = vld [vmem:[%s8626_s10] ss:$0 sm:$0xff] }
 0x38e   : > { %v1570_v44 = vadd.f32 %v9031_v58, %v8407_v15  ;;  %v1565_v45 = vadd.f32 %v8407_v15, %v9032_v51  ;;  %v1580_v12 = vadd.f32 %v9033_v40, %v8407_v15  ;;  %v1575_v61 = vadd.f32 %v8407_v15, %v9034_v49  ;;  %v4112_v58 = vld [vmem:[#allocation10 + $0x20] sm:$0xff]  ;;  %v4110_v49 = vld [vmem:[#allocation10 + $0x10] sm:$0xff] }
 0x38f   : > { %v1590_v0 = vadd.f32 %v9035_v31, %v8407_v15  ;;  %v1585_v24 = vadd.f32 %v8407_v15, %v9036_v5  ;;  %v1090_v21 = vadd.f32 %v8407_v15, %v9037_v16  ;;  %v1600_v60 = vadd.f32 %v9038_v46, %v8407_v15  ;;  %v9043_v40 = vld [vmem:[#allocation25_spill] sm:$0xff]  ;;  %v9047_v46 = vld [vmem:[#allocation36_spill] sm:$0xff] }
 0x390   : > { %5434 = vmatmul.mubr.msk.f32.gmra.mxu0 %vm2490_vm8, %v8253_v36  ;;  %v9027_v36 = vld [vmem:[#allocation63_spill] sm:$0xff]  ;;  %v1595_v53 = vadd.f32 %v8407_v15, %v9039_v10 }
 0x391   : > { %5436 = vmatprep.mubr.msk.f32.mxu0 %vm2490_vm8, %v8256_v4  ;;  %v1550_v4 = vadd.f32 %v9027_v36, %v8407_v15 }
 0x394   : > { %5437 = vmatmul.mubr.msk.f32.gmra.mxu0 %vm2490_vm8, %v8259_v8 }
 0x395   : > { %5439 = vmatprep.mubr.msk.f32.mxu0 %vm2490_vm8, %v8262_v63  ;;  %v9028_v63 = vld [vmem:[#allocation64_spill] sm:$0xff] }
 0x398   : > { %5440 = vmatmul.mubr.msk.f32.gmra.mxu0 %vm2490_vm8, %v8265_v52  ;;  %v1545_v52 = vadd.f32 %v8407_v15, %v9028_v63 }
 0x399   : > { %5442 = vmatprep.mubr.msk.f32.mxu0 %vm2490_vm8, %v8269_v42 }
 0x39c   : > { %5443 = vmatmul.mubr.msk.f32.gmra.mxu0 %vm2490_vm8, %v8272_v35  ;;  %v4123_v35 = vld [vmem:[#allocation10 + $0x78] sm:$0xff] }
 0x39d   : > { %5445 = vmatprep.mubr.msk.f32.mxu0 %vm2490_vm8, %v8279_v37  ;;  %5463 = vmatpush3.msra.mxu1 %v4123_v35  ;;  %v1560_v37 = vadd.f32 %v9029_v55, %v8407_v15  ;;  %v4114_v35 = vld [vmem:[#allocation10 + $0x30] sm:$0xff] }
 0x39e   : > { %5464 = vmatprep.subr.mxu1 %v9009_v38  ;;  %v9040_v55 = vld [vmem:[#allocation35_spill] sm:$0xff] }
 0x39f   : > { %5465 = vmatpush3.msra.mxu1 %v4122_v17 }
 0x3a0   : > { %5446 = vmatmul.mubr.msk.f32.gmra.mxu0 %vm2490_vm8, %v8282_v19  ;;  %5466 = vmatprep.subr.mxu1 %v9009_v38 }
 0x3a1   : > { %5448 = vmatprep.mubr.msk.f32.mxu0 %vm2490_vm8, %v8285_v20  ;;  %v4121_v20 = vld [vmem:[#allocation10 + $0x68] sm:$0xff] }
 0x3a2   : > { %5467 = vmatpush3.msra.mxu1 %v4121_v20 }
 0x3a3   : > { %5468 = vmatprep.subr.mxu1 %v9009_v38 }
 0x3a4   : > { %5449 = vmatmul.mubr.msk.f32.gmra.mxu0 %vm2490_vm8, %v8288_v32  ;;  %5469 = vmatpush3.msra.mxu1 %v4120_v25 }
 0x3a5   : > { %5451 = vmatprep.mubr.msk.f32.mxu0 %vm2490_vm8, %v8291_v57  ;;  %v9030_v57 = vld [vmem:[#allocation44_spill] sm:$0xff]  ;;  %5470 = vmatprep.subr.mxu1 %v9009_v38 }
 0x3a6   : > { %5471 = vmatpush3.msra.mxu1 %v4119_v48 }
 0x3a7   : > { %5472 = vmatprep.subr.mxu1 %v9009_v38 }
 0x3a8   : > { %5452 = vmatmul.mubr.msk.f32.gmra.mxu0 %vm2490_vm8, %v8294_v1  ;;  %v1555_v1 = vadd.f32 %v8407_v15, %v9030_v57  ;;  %5473 = vmatpush3.msra.mxu1 %v4118_v14 }
 0x3a9   : > { %5454 = vmatprep.mubr.msk.f32.mxu0 %vm2490_vm8, %v8297_v33  ;;  %5474 = vmatprep.subr.mxu1 %v9009_v38 }
 0x3aa   : > { %5475 = vmatpush3.msra.mxu1 %v4117_v47 }
 0x3ab   : > { %5476 = vmatprep.subr.mxu1 %v9009_v38 }
 0x3ac   : > { %5455 = vmatmul.mubr.msk.f32.gmra.mxu0 %vm2490_vm8, %v8302_v27  ;;  %5477 = vmatpush3.msra.mxu1 %v4116_v22 }
 0x3ad   : > { %5478 = vmatprep.subr.mxu1 %v9009_v38 }
 0x3ae   : > { %5479 = vmatpush3.msra.mxu1 %v4115_v59 }
 0x3af   : > { %5480 = vmatprep.subr.mxu1 %v9009_v38 }
 0x3b0   : > { %5481 = vmatpush3.msra.mxu1 %v4114_v35 }
 0x3b1   : > { %5482 = vmatprep.subr.mxu1 %v9009_v38 }
 0x3f0   : > { %v5363_v8 = vpop.f32.mrf.mxu0 }
 0x3f1   : > { %v3916_v42 = vmul.f32 %v5363_v8, %v1550_v4 }
 0x3f2   : > { %v3499_v43 = vpop.f32.mrf.mxu0 }
 0x3f3   : > { %v3915_v19 = vmul.f32 %v3499_v43, %v1545_v52 }
 0x3f4   : > { %v5366_v32 = vpop.f32.mrf.mxu0 }
 0x3f5   : > { %v3979_v33 = vadd.f32 %v3916_v42, %v3915_v19  ;;  %v3918_v27 = vmul.f32 %v5366_v32, %v1560_v37  ;;  %v1610_v37 = vadd.f32 %v9040_v55, %v8407_v15  ;;  %v4113_v32 = vld [vmem:[#allocation10 + $0x28] sm:$0xff] }
 0x3f6   : > { %v3509_v9 = vpop.f32.mrf.mxu0  ;;  %5483 = vmatpush3.msra.mxu1 %v4113_v32 }
 0x3f7   : > { %v3917_v39 = vmul.f32 %v3509_v9, %v1555_v1  ;;  %v9041_v1 = vld [vmem:[#allocation38_spill] sm:$0xff]  ;;  %5484 = vmatprep.subr.mxu1 %v9009_v38 }
 0x3f8   : > { %v5369_v7 = vpop.f32.mrf.mxu0  ;;  %5485 = vmatpush3.msra.mxu1 %v4112_v58 }
 0x3f9   : > { %v3980_v29 = vadd.f32 %v3979_v33, %v3917_v39  ;;  %v3920_v11 = vmul.f32 %v5369_v7, %v1570_v44  ;;  %v1605_v33 = vadd.f32 %v8407_v15, %v9041_v1  ;;  %v9042_v39 = vld [vmem:[#allocation45_spill] sm:$0xff]  ;;  %5486 = vmatprep.subr.mxu1 %v9009_v38 }
 0x3fa   : > { %v3519_v28 = vpop.f32.mrf.mxu0  ;;  %v1620_v7 = vadd.f32 %v9042_v39, %v8407_v15 }
 0x3fb   : > { %v3919_v3 = vmul.f32 %v3519_v28, %v1565_v45  ;;  %v3981_v23 = vadd.f32 %v3980_v29, %v3918_v27 }
 0x3fc   : > { %v5372_v6 = vpop.f32.mrf.mxu0 }
 0x3fd   : > { %v3982_v18 = vadd.f32 %v3981_v23, %v3919_v3  ;;  %v3922_v34 = vmul.f32 %v5372_v6, %v1580_v12  ;;  %v1615_v12 = vadd.f32 %v8407_v15, %v9043_v40  ;;  %v9053_v40 = vld [vmem:[#allocation34_spill] sm:$0xff] }
 0x3fe   : > { %v3529_v2 = vpop.f32.mrf.mxu0 }
 0x3ff   : > { %v3921_v56 = vmul.f32 %v3529_v2, %v1575_v61  ;;  %v3983_v30 = vadd.f32 %v3982_v18, %v3920_v11  ;;  %v4111_v11 = vld [vmem:[#allocation10 + $0x18] sm:$0xff]  ;;  %v9044_v18 = vld [vmem:[#allocation26_spill] sm:$0xff] }
 0x400   : > { %v5375_v50 = vpop.f32.mrf.mxu0  ;;  %5487 = vmatpush3.msra.mxu1 %v4111_v11 }
 0x401   : > { %v3984_v54 = vadd.f32 %v3983_v30, %v3921_v56  ;;  %v3924_v26 = vmul.f32 %v5375_v50, %v1590_v0  ;;  %5488 = vmatprep.subr.mxu1 %v9009_v38  ;;  %v4109_v0 = vld [vmem:[#allocation10 + $0x8] sm:$0xff]  ;;  %v9045_v30 = vld [vmem:[#allocation28_spill] sm:$0xff] }
 0x402   : > { %v3539_v13 = vpop.f32.mrf.mxu0  ;;  %5489 = vmatpush3.msra.mxu1 %v4110_v49  ;;  %v1625_v14 = vadd.f32 %v8407_v15, %v9045_v30 }
 0x403   : > { %v3985_v62 = vadd.f32 %v3984_v54, %v3922_v34  ;;  %v3923_v41 = vmul.f32 %v3539_v13, %v1585_v24  ;;  %v1630_v34 = vadd.f32 %v9044_v18, %v8407_v15  ;;  %5490 = vmatprep.subr.mxu1 %v9009_v38  ;;  %v4108_v24 = vld [vmem:[#allocation10] sm:$0xff] }
 0x404   : > { %v5378_v36 = vpop.f32.mrf.mxu0  ;;  %v3911_v4 = vpop.f32.mrf.mxu1  ;;  %5491 = vmatpush3.msra.mxu1 %v4109_v0 }
 0x405   : > { %v3986_v8 = vrot.slane %v3985_v62, 4  ;;  %v3992_v63 = vadd.f32 %v3924_v26, %v3923_v41  ;;  %v3926_v52 = vmul.f32 %v5378_v36, %v1600_v60  ;;  %v8442_v42 = vmul.f32 %v3911_v4, %v1090_v21  ;;  %v9046_v26 = vld [vmem:[#allocation30_spill] sm:$0xff]  ;;  %5492 = vmatprep.subr.mxu1 %v9009_v38 }
 0x406   : > { %v3549_v17 = vpop.f32.mrf.mxu0  ;;  %v5461_v43 = vpop.f32.mrf.mxu1  ;;  %v1640_v22 = vadd.f32 %v9046_v26, %v8407_v15  ;;  %5493 = vmatpush3.msra.mxu1 %v4108_v24  ;;  %v1635_v60 = vadd.f32 %v8407_v15, %v9047_v46 }
 0x407   : > { %v3987_v19 = vadd.f32 %v3986_v8, %v3985_v62  ;;  %v3925_v20 = vmul.f32 %v3549_v17, %v1595_v53  ;;  %v9048_v53 = vld [vmem:[#allocation41_spill] sm:$0xff] }
 0x408   : > { %v5381_v57 = vpop.f32.mrf.mxu0  ;;  %v1650_v36 = vadd.f32 %v9048_v53, %v8407_v15 }
 0x409   : > { %v3988_v27 = vrot.slane %v3987_v19, 2  ;;  %v3993_v25 = vadd.f32 %v3992_v63, %v3925_v20  ;;  %v3928_v9 = vmul.f32 %v5381_v57, %v1610_v37  ;;  %v9050_v37 = vld [vmem:[#allocation50_spill] sm:$0xff] }
 0x40a   : > { %v3559_v44 = vpop.f32.mrf.mxu0 }
 0x40b   : > { %v3989_v51 = vadd.f32 %v3988_v27, %v3987_v19  ;;  %v3927_v45 = vmul.f32 %v3559_v44, %v1605_v33  ;;  %v3994_v29 = vadd.f32 %v3993_v25, %v3926_v52  ;;  %v9049_v52 = vld [vmem:[#allocation46_spill] sm:$0xff]  ;;  %v1660_v19 = vadd.f32 %v9050_v37, %v8407_v15  ;;  %v9051_v33 = vld [vmem:[#allocation32_spill] sm:$0xff]  ;;  %v9052_v44 = vld [vmem:[#allocation33_spill] sm:$0xff] }
 0x40c   : > { %v5384_v28 = vpop.f32.mrf.mxu0  ;;  %v1645_v35 = vadd.f32 %v8407_v15, %v9049_v52  ;;  %v1655_v27 = vadd.f32 %v8407_v15, %v9051_v33  ;;  %v1670_v39 = vadd.f32 %v9052_v44, %v8407_v15  ;;  %v4086_v37 = vrot.slane %v8442_v42, 2  ;;  %v9061_v33 = vld [vmem:[#allocation43_spill] sm:$0xff] }
 0x40d   : > { %v3990_v3 = vrot.slane %v3989_v51, 1  ;;  %v3995_v23 = vadd.f32 %v3994_v29, %v3927_v45  ;;  %v3930_v6 = vmul.f32 %v5384_v28, %v1620_v7  ;;  %v4085_v45 = vrot.slane %v8442_v42, 1 }
 0x40e   : > { %v3569_v61 = vpop.f32.mrf.mxu0 }
 0x40f   : > { %v3991_v48 = vadd.f32 %v3990_v3, %v3989_v51  ;;  %v3929_v2 = vmul.f32 %v3569_v61, %v1615_v12  ;;  %v3996_v31 = vadd.f32 %v3995_v23, %v3928_v9  ;;  %v1665_v12 = vadd.f32 %v8407_v15, %v9053_v40  ;;  %v9054_v61 = vld [vmem:[#allocation39_spill] sm:$0xff] }
 0x410   : > { %v5387_v56 = vpop.f32.mrf.mxu0  ;;  %v1680_v18 = vadd.f32 %v9054_v61, %v8407_v15 }
 0x411   : > { %v3997_v47 = vadd.f32 %v3996_v31, %v3929_v2  ;;  %v4100_v50 = vadd.f32 %v8442_v42, %v3991_v48  ;;  %v3932_v5 = vmul.f32 %v5387_v56, %v1630_v34  ;;  %v9055_v31 = vld [vmem:[#allocation47_spill] sm:$0xff] }
 0x412   : > { %v3579_v54 = vpop.f32.mrf.mxu0  ;;  %v1675_v0 = vadd.f32 %v8407_v15, %v9055_v31 }
 0x413   : > { %v3998_v13 = vadd.f32 %v3997_v47, %v3930_v6  ;;  %v3931_v16 = vmul.f32 %v3579_v54, %v1625_v14  ;;  %v9056_v54 = vld [vmem:[#allocation51_spill] sm:$0xff] }
 0x414   : > { %v5390_v21 = vpop.f32.mrf.mxu0  ;;  %v1690_v26 = vadd.f32 %v9056_v54, %v8407_v15 }
 0x415   : > { %v3999_v62 = vrot.slane %v3998_v13, 4  ;;  %v4005_v41 = vadd.f32 %v3932_v5, %v3931_v16  ;;  %v3934_v59 = vmul.f32 %v5390_v21, %v1640_v22  ;;  %v9057_v21 = vld [vmem:[#allocation52_spill] sm:$0xff] }
 0x416   : > { %v3589_v10 = vpop.f32.mrf.mxu0  ;;  %v1685_v46 = vadd.f32 %v8407_v15, %v9057_v21 }
 0x417   : > { %v4000_v4 = vadd.f32 %v3999_v62, %v3998_v13  ;;  %v3933_v8 = vmul.f32 %v3589_v10, %v1635_v60  ;;  %v9058_v10 = vld [vmem:[#allocation55_spill] sm:$0xff] }
 0x418   : > { %v5393_v63 = vpop.f32.mrf.mxu0 }
 0x419   : > { %v4001_v17 = vrot.slane %v4000_v4, 2  ;;  %v4006_v38 = vadd.f32 %v4005_v41, %v3933_v8  ;;  %v3936_v43 = vmul.f32 %v5393_v63, %v1650_v36  ;;  %v9059_v63 = vld [vmem:[#allocation40_spill] sm:$0xff] }
 0x41a   : > { %v3599_v55 = vpop.f32.mrf.mxu0  ;;  %v1695_v52 = vadd.f32 %v8407_v15, %v9059_v63 }
 0x41b   : > { %v4002_v20 = vadd.f32 %v4001_v17, %v4000_v4  ;;  %v3935_v32 = vmul.f32 %v3599_v55, %v1645_v35  ;;  %v4007_v57 = vadd.f32 %v4006_v38, %v3934_v59 }
 0x41c   : > { %v5396_v1 = vpop.f32.mrf.mxu0 }
 0x41d   : > { %v4003_v25 = vrot.slane %v4002_v20, 1  ;;  %v4008_v9 = vadd.f32 %v4007_v57, %v3935_v32  ;;  %v3938_v58 = vmul.f32 %v5396_v1, %v1660_v19  ;;  %v9060_v57 = vld [vmem:[#allocation42_spill] sm:$0xff] }
 0x41e   : > { %v3609_v7 = vpop.f32.mrf.mxu0  ;;  %v1710_v1 = vadd.f32 %v9060_v57, %v8407_v15 }
 0x41f   : > { %v4004_v51 = vadd.f32 %v4003_v25, %v4002_v20  ;;  %v3937_v29 = vmul.f32 %v3609_v7, %v1655_v27  ;;  %v4009_v11 = vadd.f32 %v4008_v9, %v3936_v43  ;;  %v1705_v27 = vadd.f32 %v8407_v15, %v9061_v33 }
 0x420   : > { %v5399_v28 = vpop.f32.mrf.mxu0 }
 0x421   : > { %v4101_v3 = vadd.f32 %v4085_v45, %v4004_v51  ;;  %v4010_v23 = vadd.f32 %v4009_v11, %v3937_v29  ;;  %v3940_v6 = vmul.f32 %v5399_v28, %v1670_v39  ;;  %v9062_v29 = vld [vmem:[#allocation53_spill] sm:$0xff] }
 0x422   : > { %v3619_v49 = vpop.f32.mrf.mxu0  ;;  %v1715_v11 = vadd.f32 %v8407_v15, %v9062_v29 }
 0x423   : > { %v4139_v34 = vrot.slane %v4101_v3, 7  ;;  %v4011_v48 = vadd.f32 %v4010_v23, %v3938_v58  ;;  %v3939_v2 = vmul.f32 %v3619_v49, %v1665_v12  ;;  %v9063_v23 = vld [vmem:[#allocation48_spill] sm:$0xff] }
 0x424   : > { %v5402_v56 = vpop.f32.mrf.mxu0 }
 0x425   : > { %v4140_v30 = vsel %vm815_vm1, %v4139_v34, %v4100_v50  ;;  %v4012_v14 = vrot.slane %v4011_v48, 4  ;;  %v4018_v47 = vadd.f32 %v3940_v6, %v3939_v2  ;;  %v3942_v5 = vmul.f32 %v5402_v56, %v1680_v18  ;;  %v9064_v34 = vld [vmem:[#allocation58_spill] sm:$0xff] }
 0x426   : > { %v3629_v24 = vpop.f32.mrf.mxu0  ;;  %v1700_v50 = vadd.f32 %v9058_v10, %v8407_v15  ;;  %v1720_v6 = vadd.f32 %v9063_v23, %v8407_v15 }
 0x427   : > { %v4013_v22 = vadd.f32 %v4012_v14, %v4011_v48  ;;  %v3941_v13 = vmul.f32 %v3629_v24, %v1675_v0  ;;  %v1725_v48 = vadd.f32 %v8407_v15, %v9064_v34  ;;  %v9065_v14 = vld [vmem:[#allocation56_spill] sm:$0xff] }
 0x428   : > { %v5405_v16 = vpop.f32.mrf.mxu0 }
 0x429   : > { %v4014_v60 = vrot.slane %v4013_v22, 2  ;;  %v4019_v62 = vadd.f32 %v4018_v47, %v3941_v13  ;;  %v3944_v41 = vmul.f32 %v5405_v16, %v1690_v26  ;;  %v1730_v47 = vadd.f32 %v9065_v14, %v8407_v15  ;;  %v9066_v26 = vld [vmem:[#allocation66_spill] sm:$0xff] }
 0x42a   : > { %v3639_v59 = vpop.f32.mrf.mxu0 }
 0x42b   : > { %v4015_v53 = vadd.f32 %v4014_v60, %v4013_v22  ;;  %v3943_v36 = vmul.f32 %v3639_v59, %v1685_v46  ;;  %v4020_v4 = vadd.f32 %v4019_v62, %v3942_v5  ;;  %v1735_v22 = vadd.f32 %v8407_v15, %v9066_v26  ;;  %v9067_v46 = vld [vmem:[#allocation59_spill] sm:$0xff] }
 0x42c   : > { %v5408_v8 = vpop.f32.mrf.mxu0  ;;  %v1740_v60 = vadd.f32 %v9067_v46, %v8407_v15  ;;  %v4087_v59 = vrot.slane %v8442_v42, 3 }
 0x42d   : > { %v4016_v35 = vrot.slane %v4015_v53, 1  ;;  %v4021_v17 = vadd.f32 %v4020_v4, %v3943_v36  ;;  %v3946_v38 = vmul.f32 %v5408_v8, %v1700_v50  ;;  %v9069_v8 = vld [vmem:[#allocation68_spill] sm:$0xff] }
 0x42e   : > { %v3649_v43 = vpop.f32.mrf.mxu0  ;;  %v1745_v63 = vadd.f32 %v8407_v15, %v9069_v8 }
 0x42f   : > { %v4017_v55 = vadd.f32 %v4016_v35, %v4015_v53  ;;  %v3945_v19 = vmul.f32 %v3649_v43, %v1695_v52  ;;  %v4022_v20 = vadd.f32 %v4021_v17, %v3944_v41  ;;  %v9068_v53 = vld [vmem:[#allocation67_spill] sm:$0xff] }
 0x430   : > { %v5411_v32 = vpop.f32.mrf.mxu0  ;;  %v1750_v36 = vadd.f32 %v9068_v53, %v8407_v15 }
 0x431   : > { %v4102_v25 = vadd.f32 %v4086_v37, %v4017_v55  ;;  %v4023_v9 = vadd.f32 %v4022_v20, %v3945_v19  ;;  %v3948_v7 = vmul.f32 %v5411_v32, %v1710_v1  ;;  %v9070_v32 = vld [vmem:[#allocation22_spill] sm:$0xff] }
 0x432   : > { %v3659_v58 = vpop.f32.mrf.mxu0  ;;  %v1755_v57 = vadd.f32 %v8407_v15, %v9070_v32 }
 0x433   : > { %v4141_v44 = vrot.slane %v4102_v25, 6  ;;  %v4024_v39 = vadd.f32 %v4023_v9, %v3946_v38  ;;  %v3947_v51 = vmul.f32 %v3659_v58, %v1705_v27  ;;  %v9071_v9 = vld [vmem:[#allocation60_spill] sm:$0xff] }
 0x434   : > { %v5414_v45 = vpop.f32.mrf.mxu0  ;;  %v1760_v58 = vadd.f32 %v9071_v9, %v8407_v15 }
 0x435   : > { %v4025_v28 = vrot.slane %v4024_v39, 4  ;;  %v4031_v40 = vadd.f32 %v3948_v7, %v3947_v51  ;;  %v4142_v12 = vsel %vm818_vm2, %v4141_v44, %v4140_v30  ;;  %v3950_v31 = vmul.f32 %v5414_v45, %v1720_v6  ;;  %v9072_v51 = vld [vmem:[#allocation61_spill] sm:$0xff] }
 0x436   : > { %v3669_v3 = vpop.f32.mrf.mxu0  ;;  %v1765_v45 = vadd.f32 %v8407_v15, %v9072_v51 }
 0x437   : > { %v4026_v49 = vadd.f32 %v4025_v28, %v4024_v39  ;;  %v3949_v61 = vmul.f32 %v3669_v3, %v1715_v11  ;;  %v9073_v3 = vld [vmem:[#allocation23_spill] sm:$0xff] }
 0x438   : > { %v5417_v18 = vpop.f32.mrf.mxu0  ;;  %v1770_v23 = vadd.f32 %v9073_v3, %v8407_v15 }
 0x439   : > { %v4027_v2 = vrot.slane %v4026_v49, 2  ;;  %v4032_v0 = vadd.f32 %v4031_v40, %v3949_v61  ;;  %v3952_v16 = vmul.f32 %v5417_v18, %v1730_v47  ;;  %v9074_v18 = vld [vmem:[#allocation27_spill] sm:$0xff] }
 0x43a   : > { %v3679_v56 = vpop.f32.mrf.mxu0  ;;  %v1775_v34 = vadd.f32 %v8407_v15, %v9074_v18 }
 0x43b   : > { %v4028_v5 = vadd.f32 %v4027_v2, %v4026_v49  ;;  %v3951_v24 = vmul.f32 %v3679_v56, %v1725_v48  ;;  %v4033_v30 = vadd.f32 %v4032_v0, %v3950_v31  ;;  %v9075_v0 = vld [vmem:[#allocation62_spill] sm:$0xff] }
 0x43c   : > { %v5420_v54 = vpop.f32.mrf.mxu0  ;;  %v1780_v56 = vadd.f32 %v9075_v0, %v8407_v15 }
 0x43d   : > { %v4029_v13 = vrot.slane %v4028_v5, 1  ;;  %v4034_v21 = vadd.f32 %v4033_v30, %v3951_v24  ;;  %v3954_v35 = vmul.f32 %v5420_v54, %v1740_v60  ;;  %v9076_v54 = vld [vmem:[#allocation31_spill] sm:$0xff] }
 0x43e   : > { %v3689_v62 = vpop.f32.mrf.mxu0  ;;  %v1790_v26 = vadd.f32 %v9076_v54, %v8407_v15 }
 0x43f   : > { %v4030_v41 = vadd.f32 %v4029_v13, %v4028_v5  ;;  %v3953_v10 = vmul.f32 %v3689_v62, %v1735_v22  ;;  %v4035_v50 = vadd.f32 %v4034_v21, %v3952_v16  ;;  %v4088_v5 = vrot.slane %v8442_v42, 4  ;;  %v9077_v13 = vld [vmem:[#allocation69_spill] sm:$0xff] }
 0x440   : > { %v5423_v4 = vpop.f32.mrf.mxu0  ;;  %v1785_v16 = vadd.f32 %v8407_v15, %v9077_v13 }
 0x441   : > { %v4103_v52 = vadd.f32 %v4087_v59, %v4030_v41  ;;  %v4036_v17 = vadd.f32 %v4035_v50, %v3953_v10  ;;  %v3956_v37 = vmul.f32 %v5423_v4, %v1750_v36  ;;  %v9078_v36 = vld [vmem:[#allocation71_spill] sm:$0xff] }
 0x442   : > { %v3699_v38 = vpop.f32.mrf.mxu0  ;;  %v1795_v4 = vadd.f32 %v8407_v15, %v9078_v36 }
 0x443   : > { %v4143_v43 = vrot.slane %v4103_v52, 5  ;;  %v4037_v55 = vadd.f32 %v4036_v17, %v3954_v35  ;;  %v3955_v19 = vmul.f32 %v3699_v38, %v1745_v63  ;;  %v9079_v17 = vld [vmem:[#allocation70_spill] sm:$0xff] }
 0x444   : > { %v5426_v20 = vpop.f32.mrf.mxu0  ;;  %v1800_v38 = vadd.f32 %v9079_v17, %v8407_v15 }
 0x445   : > { %v4038_v1 = vrot.slane %v4037_v55, 4  ;;  %v4044_v33 = vadd.f32 %v3956_v37, %v3955_v19  ;;  %v4144_v27 = vsel %vm821_vm3, %v4143_v43, %v4142_v12  ;;  %v3958_v11 = vmul.f32 %v5426_v20, %v1760_v58  ;;  %v9080_v19 = vld [vmem:[#allocation73_spill] sm:$0xff] }
 0x446   : > { %v3709_v25 = vpop.f32.mrf.mxu0  ;;  %v1805_v20 = vadd.f32 %v8407_v15, %v9080_v19 }
 0x447   : > { %v4039_v44 = vadd.f32 %v4038_v1, %v4037_v55  ;;  %v3957_v39 = vmul.f32 %v3709_v25, %v1755_v57  ;;  %v9081_v25 = vld [vmem:[#allocation72_spill] sm:$0xff] }
 0x448   : > { %v5429_v7 = vpop.f32.mrf.mxu0  ;;  %v1810_v9 = vadd.f32 %v9081_v25, %v8407_v15 }
 0x449   : > { %v4040_v29 = vrot.slane %v4039_v44, 2  ;;  %v4045_v28 = vadd.f32 %v4044_v33, %v3957_v39  ;;  %v3960_v2 = vmul.f32 %v5429_v7, %v1770_v23  ;;  %v9082_v7 = vld [vmem:[#allocation75_spill] sm:$0xff] }
 0x44a   : > { %v3719_v40 = vpop.f32.mrf.mxu0  ;;  %v1815_v51 = vadd.f32 %v8407_v15, %v9082_v7 }
 0x44b   : > { %v4041_v6 = vadd.f32 %v4040_v29, %v4039_v44  ;;  %v3959_v49 = vmul.f32 %v3719_v40, %v1765_v45  ;;  %v4046_v12 = vadd.f32 %v4045_v28, %v3958_v11  ;;  %v9083_v28 = vld [vmem:[#allocation74_spill] sm:$0xff] }
 0x44c   : > { %v5432_v61 = vpop.f32.mrf.mxu0  ;;  %v1820_v40 = vadd.f32 %v9083_v28, %v8407_v15 }
 0x44d   : > { %v4042_v48 = vrot.slane %v4041_v6, 1  ;;  %v4047_v31 = vadd.f32 %v4046_v12, %v3959_v49  ;;  %v3962_v46 = vmul.f32 %v5432_v61, %v1780_v56  ;;  %v9084_v61 = vld [vmem:[#allocation76_spill] sm:$0xff] }
 0x44e   : > { %v3729_v14 = vpop.f32.mrf.mxu0  ;;  %v1830_v18 = vadd.f32 %v9084_v61, %v8407_v15 }
 0x44f   : > { %v4043_v47 = vadd.f32 %v4042_v48, %v4041_v6  ;;  %v3961_v24 = vmul.f32 %v3729_v14, %v1775_v34  ;;  %v4048_v30 = vadd.f32 %v4047_v31, %v3960_v2  ;;  %v4089_v6 = vrot.slane %v8442_v42, 5  ;;  %v9085_v48 = vld [vmem:[#allocation77_spill] sm:$0xff] }
 0x450   : > { %v5435_v22 = vpop.f32.mrf.mxu0  ;;  %v1825_v2 = vadd.f32 %v8407_v15, %v9085_v48 }
 0x451   : > { %v4104_v21 = vadd.f32 %v4088_v5, %v4043_v47  ;;  %v4049_v60 = vadd.f32 %v4048_v30, %v3961_v24  ;;  %v3964_v10 = vmul.f32 %v5435_v22, %v1790_v26  ;;  %v9086_v26 = vld [vmem:[#allocation79_spill] sm:$0xff] }
 0x452   : > { %v3739_v62 = vpop.f32.mrf.mxu0  ;;  %v1835_v22 = vadd.f32 %v8407_v15, %v9086_v26 }
 0x453   : > { %v4145_v41 = vrot.slane %v4104_v21, 4  ;;  %v4050_v59 = vadd.f32 %v4049_v60, %v3962_v46  ;;  %v3963_v50 = vmul.f32 %v3739_v62, %v1785_v16  ;;  %v9087_v60 = vld [vmem:[#allocation78_spill] sm:$0xff] }
 0x454   : > { %v5438_v53 = vpop.f32.mrf.mxu0  ;;  %v1840_v62 = vadd.f32 %v9087_v60, %v8407_v15 }
 0x455   : > { %v4051_v8 = vrot.slane %v4050_v59, 4  ;;  %v4057_v63 = vadd.f32 %v3964_v10, %v3963_v50  ;;  %v4146_v52 = vsel %vm824_vm4, %v4145_v41, %v4144_v27  ;;  %v3966_v57 = vmul.f32 %v5438_v53, %v1800_v38  ;;  %v9088_v50 = vld [vmem:[#allocation81_spill] sm:$0xff] }
 0x456   : > { %v3749_v35 = vpop.f32.mrf.mxu0  ;;  %v1845_v53 = vadd.f32 %v8407_v15, %v9088_v50 }
 0x457   : > { %v4052_v43 = vadd.f32 %v4051_v8, %v4050_v59  ;;  %v3965_v55 = vmul.f32 %v3749_v35, %v1795_v4  ;;  %v9089_v35 = vld [vmem:[#allocation80_spill] sm:$0xff] }
 0x458   : > { %v5441_v37 = vpop.f32.mrf.mxu0  ;;  %v1850_v17 = vadd.f32 %v9089_v35, %v8407_v15 }
 0x459   : > { %v4053_v32 = vrot.slane %v4052_v43, 2  ;;  %v4058_v1 = vadd.f32 %v4057_v63, %v3965_v55  ;;  %v3968_v29 = vmul.f32 %v5441_v37, %v1810_v9  ;;  %v9090_v37 = vld [vmem:[#allocation83_spill] sm:$0xff] }
 0x45a   : > { %v3759_v33 = vpop.f32.mrf.mxu0  ;;  %v1855_v19 = vadd.f32 %v8407_v15, %v9090_v37 }
 0x45b   : > { %v4054_v58 = vadd.f32 %v4053_v32, %v4052_v43  ;;  %v3967_v44 = vmul.f32 %v3759_v33, %v1805_v20  ;;  %v4059_v27 = vadd.f32 %v4058_v1, %v3966_v57  ;;  %v9091_v1 = vld [vmem:[#allocation82_spill] sm:$0xff] }
 0x45c   : > { %v5444_v39 = vpop.f32.mrf.mxu0  ;;  %v1860_v33 = vadd.f32 %v9091_v1, %v8407_v15 }
 0x45d   : > { %v4055_v45 = vrot.slane %v4054_v58, 1  ;;  %v4060_v11 = vadd.f32 %v4059_v27, %v3967_v44  ;;  %v3970_v0 = vmul.f32 %v5444_v39, %v1820_v40 }
 0x45e   : > { %v3769_v3 = vpop.f32.mrf.mxu0 }
 0x45f   : > { %v4056_v23 = vadd.f32 %v4055_v45, %v4054_v58  ;;  %v3969_v49 = vmul.f32 %v3769_v3, %v1815_v51  ;;  %v4061_v12 = vadd.f32 %v4060_v11, %v3968_v29  ;;  %v4090_v58 = vrot.slane %v8442_v42, 6 }
 0x460   : > { %v5447_v34 = vpop.f32.mrf.mxu0 }
 0x461   : > { %v4105_v31 = vadd.f32 %v4089_v6, %v4056_v23  ;;  %v4062_v56 = vadd.f32 %v4061_v12, %v3969_v49  ;;  %v3972_v24 = vmul.f32 %v5447_v34, %v1830_v18  ;;  %v4091_v49 = vrot.slane %v8442_v42, 7  ;;  %v4436_v34 = vld [vmem:[%s8628_s12] ss:$0 sm:$0xff] }
 0x462   : > { %v3779_v14 = vpop.f32.mrf.mxu0 }
 0x463   : > { %v4147_v47 = vrot.slane %v4105_v31, 3  ;;  %v4063_v5 = vadd.f32 %v4062_v56, %v3970_v0  ;;  %v3971_v30 = vmul.f32 %v3779_v14, %v1825_v2 }
 0x464   : > { %v5450_v54 = vpop.f32.mrf.mxu0 }
 0x465   : > { %v4064_v13 = vrot.slane %v4063_v5, 4  ;;  %v4070_v16 = vadd.f32 %v3972_v24, %v3971_v30  ;;  %v4148_v21 = vsel %vm827_vm5, %v4147_v47, %v4146_v52  ;;  %v3974_v4 = vmul.f32 %v5450_v54, %v1840_v62 }
 0x466   : > { %v3789_v46 = vpop.f32.mrf.mxu0 }
 0x467   : > { %v4065_v41 = vadd.f32 %v4064_v13, %v4063_v5  ;;  %v3973_v59 = vmul.f32 %v3789_v46, %v1835_v22 }
 0x468   : > { %v5453_v10 = vpop.f32.mrf.mxu0 }
 0x469   : > { %v4066_v36 = vrot.slane %v4065_v41, 2  ;;  %v4071_v8 = vadd.f32 %v4070_v16, %v3973_v59  ;;  %v3976_v32 = vmul.f32 %v5453_v10, %v1850_v17 }
 0x46a   : > { %v3799_v63 = vpop.f32.mrf.mxu0 }
 0x46b   : > { %v4067_v38 = vadd.f32 %v4066_v36, %v4065_v41  ;;  %v3975_v43 = vmul.f32 %v3799_v63, %v1845_v53  ;;  %v4072_v52 = vadd.f32 %v4071_v8, %v3974_v4 }
 0x46c   : > { %v5456_v55 = vpop.f32.mrf.mxu0 }
 0x46d   : > { %v4068_v20 = vrot.slane %v4067_v38, 1  ;;  %v4073_v57 = vadd.f32 %v4072_v52, %v3975_v43  ;;  %v3978_v7 = vmul.f32 %v5456_v55, %v1860_v33 }
 0x46e   : > { %v3809_v25 = vpop.f32.mrf.mxu0 }
 0x46f   : > { %v4069_v9 = vadd.f32 %v4068_v20, %v4067_v38  ;;  %v3977_v44 = vmul.f32 %v3809_v25, %v1855_v19  ;;  %v4074_v27 = vadd.f32 %v4073_v57, %v3976_v32 }
 0x471   : > { %v4106_v39 = vadd.f32 %v4090_v58, %v4069_v9  ;;  %v4075_v51 = vadd.f32 %v4074_v27, %v3977_v44 }
 0x473   : > { %v4076_v45 = vadd.f32 %v4075_v51, %v3978_v7  ;;  %v4149_v29 = vrot.slane %v4106_v39, 2 }
 0x475   : > { %v4077_v11 = vrot.slane %v4076_v45, 4  ;;  %v4150_v28 = vsel %vm830_vm6, %v4149_v29, %v4148_v21 }
 0x477   : > { %v4078_v40 = vadd.f32 %v4077_v11, %v4076_v45 }
 0x479   : > { %v4079_v3 = vrot.slane %v4078_v40, 2 }
 0x47b   : > { %v4080_v23 = vadd.f32 %v4079_v3, %v4078_v40 }
 0x47d   : > { %v4081_v15 = vrot.slane %v4080_v23, 1 }
 0x47f   : > { %v4082_v6 = vadd.f32 %v4081_v15, %v4080_v23 }
 0x481   : > { %v4107_v12 = vadd.f32 %v4091_v49, %v4082_v6 }
 0x483   : > { %v4151_v61 = vrot.slane %v4107_v12, 1 }
 0x485   : > { %v4152_v18 = vsel %vm833_vm7, %v4151_v61, %v4150_v28 }
 0x486   : > { %5495 = vmatmul.mubr.f32.vlgmr.msra.gmra.mxu1 %v4152_v18 }
 0x546   : > { %v4220_v48 = vpop.f32.mrf.mxu1 }
 0x547   : > { %v4221_v2 = vadd.f32 %v4436_v34, %v4220_v48 }
 0x548   : > { %v5496_v42 = vpop.f32.mrf.mxu1 }
 0x549   : > { %4224 = vst [vmem:[%s517_s9] sm:$0xff] %v4221_v2 }
 0x54a   : > { %5880 = shalt.err (!%p5877_p5)
}
 0x54b   : > { %s5881_s19 = scalar_lea.hbm %s8579_s2, 128  ;;  %s5885_s22 = scalar_lea.hbm %s8629_s13, 256 }
 0x54c   : > { %p5882_p6 = scmp.ne.s32.totalorder %s8579_s2, %s5881_s19  ;;  %p5886_p9 = scmp.lt.s32.totalorder %s8579_s2, %s8629_s13 }
 0x54d   : > { %p5887_p2 = scmp.lt.s32.totalorder %s5885_s22, %s5881_s19 }
 0x54e   : > { %p5883_p4 = pnand %p5882_p6, %p9092_p12 }
 0x54f   : > { %p5888_p3 = por %p5887_p2, %p5886_p9 }
 0x550   : > { %p5884_p8 = pneg %p5883_p4 }
 0x552   : > { %p5889_p10 = pnand %p5888_p3, %p5884_p8 }
 0x554   : > { %5892 = shalt.err (!%p5889_p10)
}
 0x555   : > { %5515 = dma.vmem_to_hbm [thread:$0]  (%p9092_p12), %s4240_s20, 128, %s8579_s2, %s4226_s7  }
 0x556 PF: > { %s9093_s9 = sld [smem:[#allocation16_spill]]  ;;  %p9096_p1 = scmp.ge.s32.totalorder %s5939_s28, 2 }
 0x557   : > { %s9094_s21 = sld [smem:[#allocation17_spill]] }
 0x55c   : > { %s4251_s23 = sand.u32 1, %s9093_s9  }
 0x55d   : > { %p9095_p7 = scmp.ne.s32.totalorder %s9094_s21, 0  ;;  %s4252_s14 = scalar_lea.sflag [#allocation4], %s4251_s23 }
 0x55f   : > { %p5535_p13 = pnand %p9096_p1, %p9095_p7 }
 0x561   : > { %p5536_p0 = pneg %p5535_p13 }
 0x563   : > { %5922 = dma.done.wait (%p5536_p0), %s4252_s14, 128  }
 0x564   : > { %5924 = vsyncadd (%p5536_p0), %s4252_s14, 4294967168  ;;  %s9097_s16 = sld [smem:[#allocation18_spill]]  ;;  %p28_p11 = scmp.ge.s32.totalorder %s6122_s18, 4  }
 0x565   : > { %s9098_s25 = smov %s5931_s26  ;;  %s9099_s26 = smov %s5935_s27 }
 0x566   : > { %s9101_s28 = smov %s6122_s18  ;;  %30 = sbr.rel (!%p28_p11) target bundleno = 12 (0xc), region = 133 }
 0x56a   : > { %s9100_s27 = smov %s9097_s16 }
 0x56b   :  { %4257 = vsyncpa [#allocation3], 1 }
 0x56c   :  { %4259 = vsyncpa [#allocation3 + $0x1], 1 }
 0x56d   :  { %4260 = vsyncpa [#allocation6], 1 }
 0x56e   :  { %4261 = vsyncpa [#allocation9], 1 }
 0x56f   :  { %4262 = vsyncpa [#allocation4], 1 }
 0x570   :  { %4264 = vsyncpa [#allocation4 + $0x1], 1 }

</bundles_post_ra>
